<compile_context>
chip_gen: v7x
topology: tpu7x:2x2x1
jax: 0.10.0
libtpu: 0.0.40
codegen_flags: <defaults>
</compile_context>

<pallas_src>
import functools

import jax
import jax.numpy as jnp
from jax.experimental import pallas as pl
from jax.experimental.pallas import tpu as pltpu

EPS = 1e-5


def _make_tap_masks(B, H, W):
    """(9, B*H*W) float32 {0,1} masks for the 9 taps of a 3x3 'same' conv.

    Activations are lane-merged as (C, B*H*W); tap (dy, dx) is a static lane
    shift by dy*W + dx, so reads that would cross an image row edge, a column
    edge, or spill into the neighbouring image must be zeroed.
    Tap order is (dy, dx) row-major, matching the HWIO weight layout.
    """
    HW = H * W
    pos = jnp.arange(B * HW, dtype=jnp.int32) % HW
    row = pos // W
    col = pos % W
    masks = []
    for dy in (-1, 0, 1):
        for dx in (-1, 0, 1):
            keep = jnp.ones((B * HW,), jnp.bool_)
            if dy == -1:
                keep = keep & (row > 0)
            elif dy == 1:
                keep = keep & (row < H - 1)
            if dx == -1:
                keep = keep & (col > 0)
            elif dx == 1:
                keep = keep & (col < W - 1)
            masks.append(keep)
    return jnp.stack(masks, axis=0).astype(jnp.float32)


def _conv3x3_bn(halo_ref, mask, x, w, gamma, beta, *, W, pad, relu):
    """3x3 'same' conv (stride 1) + train-mode BatchNorm on lane-merged layout.

    halo_ref : (C, pad + N + pad) f32 VMEM scratch, halo regions already zero
    mask     : (9, N) f32 boundary masks (shared by both convs)
    x        : (C, N)   f32 activation, N = B*H*W
    w        : (Cout, 9*C) f32
    gamma/beta : (Cout, 1) f32
    returns  : (Cout, N) f32
    """
    C, N = x.shape
    halo_ref[:, pad:pad + N] = x                 # halos stay zero from init
    taps = []
    i = 0
    for dy in (-1, 0, 1):
        for dx in (-1, 0, 1):
            start = pad + dy * W + dx            # static lane offset
            t = halo_ref[:, start:start + N]
            if not (dy == 0 and dx == 0):
                t = t * mask[i:i + 1, :]         # kill cross-row/col/image reads
            taps.append(t)
            i += 1
    patches = jnp.concatenate(taps, axis=0)      # (9*C, N)
    # Single K = 9*C contraction over the whole batch on the MXU, f32 acc.
    acc = jnp.dot(w, patches, preferred_element_type=jnp.float32)  # (Cout, N)

    # One-pass batch statistics (lane reductions), BN affine folded to one FMA.
    inv_n = 1.0 / N
    mean = jnp.sum(acc, axis=1, keepdims=True) * inv_n
    var = jnp.sum(acc * acc, axis=1, keepdims=True) * inv_n - mean * mean
    var = jnp.maximum(var, 0.0)                  # guard f32 cancellation
    scale = jax.lax.rsqrt(var + EPS) * gamma     # (Cout, 1)
    shift = beta - mean * scale
    y = acc * scale + shift
    return jnp.maximum(y, 0.0) if relu else y


def basic_block_kernel(mask_ref, x_ref, w1_ref, g1_ref, b1_ref,
                       w2_ref, g2_ref, b2_ref, o_ref, halo_ref, *, W, pad):
    halo_ref[...] = jnp.zeros_like(halo_ref)     # zero the halo buffer ONCE
    mask = mask_ref[...]                         # (9, N), shared by both convs
    x = x_ref[...]                               # (C, N) f32
    h = _conv3x3_bn(halo_ref, mask, x, w1_ref[...], g1_ref[...], b1_ref[...],
                    W=W, pad=pad, relu=True)     # ConvBnReLU
    y = _conv3x3_bn(halo_ref, mask, h, w2_ref[...], g2_ref[...], b2_ref[...],
                    W=W, pad=pad, relu=False)    # ConvBn
    o_ref[...] = y + x                           # residual add


def basic_block_forward(x_nchw, params):
    """BasicBlock with stride=1, downsample=None (required for `out += x`)."""
    B, C, H, W = x_nchw.shape
    Cout = params["w1"].shape[-1]
    assert Cout == C, "stride=1 / downsample=None requires Cin == Cout"
    HW = H * W
    N = B * HW
    pad = ((W + 1 + 127) // 128) * 128           # lane-aligned halo >= W+1

    # NCHW -> (C, B*H*W): one wrapper-side transpose, lane-dense kernel layout.
    x_flat = jnp.transpose(x_nchw, (1, 0, 2, 3)).reshape(C, N).astype(jnp.float32)
    masks = _make_tap_masks(B, H, W)             # (9, N) f32, built once
    # HWIO (3,3,Cin,Cout) -> (Cout, 9*Cin): taps row-major, channels fastest.
    w1 = jnp.transpose(params["w1"].reshape(9 * C, Cout)).astype(jnp.float32)
    w2 = jnp.transpose(params["w2"].reshape(9 * Cout, Cout)).astype(jnp.float32)
    g1 = params["g1"].reshape(Cout, 1).astype(jnp.float32)
    b1 = params["b1"].reshape(Cout, 1).astype(jnp.float32)
    g2 = params["g2"].reshape(Cout, 1).astype(jnp.float32)
    b2 = params["b2"].reshape(Cout, 1).astype(jnp.float32)

    flops = 2 * (2 * N * (9 * C) * Cout)         # two 3x3 convs
    bytes_accessed = 4 * (x_flat.size + Cout * N + masks.size
                          + w1.size + w2.size + 4 * Cout)
    vmem = pl.BlockSpec(memory_space=pltpu.MemorySpace.VMEM)

    out = pl.pallas_call(
        functools.partial(basic_block_kernel, W=W, pad=pad),
        out_shape=jax.ShapeDtypeStruct((Cout, N), jnp.float32),
        in_specs=[vmem] * 8,
        out_specs=vmem,
        scratch_shapes=[pltpu.VMEM((C, N + 2 * pad), jnp.float32)],
        cost_estimate=pl.CostEstimate(
            flops=flops, transcendentals=2 * Cout,
            bytes_accessed=bytes_accessed),
    )(masks, x_flat, w1, g1, b1, w2, g2, b2)
    return jnp.transpose(out.reshape(Cout, B, H, W), (1, 0, 2, 3))


# ----------------------------- pure-JAX reference ----------------------------
def _ref_conv_bn(x_nhwc, w_hwio, g, b, relu):
    y = jax.lax.conv_general_dilated(
        x_nhwc, w_hwio, window_strides=(1, 1), padding="SAME",
        dimension_numbers=("NHWC", "HWIO", "NHWC"))
    mean = jnp.mean(y, axis=(0, 1, 2), keepdims=True)
    var = jnp.mean((y - mean) ** 2, axis=(0, 1, 2), keepdims=True)
    y = (y - mean) * jax.lax.rsqrt(var + EPS) * g + b
    return jnp.maximum(y, 0.0) if relu else y


def basic_block_reference(x_nchw, p):
    x = jnp.transpose(x_nchw, (0, 2, 3, 1))
    out = _ref_conv_bn(x, p["w1"], p["g1"], p["b1"], relu=True)
    out = _ref_conv_bn(out, p["w2"], p["g2"], p["b2"], relu=False) + x
    return jnp.transpose(out, (0, 3, 1, 2))


if __name__ == "__main__":
    B, C, H, W = 2, 32, 16, 16   # in_channels == out_channels, stride = 1

    key = jax.random.PRNGKey(0)
    k = jax.random.split(key, 7)
    x = jax.random.normal(k[0], (B, C, H, W), jnp.float32)          # NCHW like PyTorch
    params = {
        "w1": jax.random.normal(k[1], (3, 3, C, C), jnp.float32) * 0.1,  # HWIO
        "g1": 1.0 + 0.1 * jax.random.normal(k[2], (C,), jnp.float32),
        "b1": 0.1 * jax.random.normal(k[3], (C,), jnp.float32),
        "w2": jax.random.normal(k[4], (3, 3, C, C), jnp.float32) * 0.1,
        "g2": 1.0 + 0.1 * jax.random.normal(k[5], (C,), jnp.float32),
        "b2": 0.1 * jax.random.normal(k[6], (C,), jnp.float32),
    }

    out = jax.jit(basic_block_forward)(x, params)
    out = jax.block_until_ready(out)

    ref = basic_block_reference(x, params)
    assert out.shape == (B, C, H, W)
    err = float(jnp.max(jnp.abs(out - ref)))
    assert jnp.allclose(out, ref, rtol=2e-3, atol=2e-3), f"max err {err}"

    print("KERNEL_OK")
</pallas_src>

<mosaic_0001>
module attributes {stable_mosaic.version = 11 : i64} {
  func.func @basic_block_kernel(%arg0: memref<9x512xf32, #tpu.memory_space<vmem>>, %arg1: memref<32x512xf32, #tpu.memory_space<vmem>>, %arg2: memref<32x288xf32, #tpu.memory_space<vmem>>, %arg3: memref<32x1xf32, #tpu.memory_space<vmem>>, %arg4: memref<32x1xf32, #tpu.memory_space<vmem>>, %arg5: memref<32x288xf32, #tpu.memory_space<vmem>>, %arg6: memref<32x1xf32, #tpu.memory_space<vmem>>, %arg7: memref<32x1xf32, #tpu.memory_space<vmem>>, %arg8: memref<32x512xf32, #tpu.memory_space<vmem>>, %arg9: memref<32x768xf32, #tpu.memory_space<vmem>>) attributes {dimension_semantics = [], scalar_prefetch = 0 : i64, scratch_operands = 1 : i64, tpu.core_type = #tpu.core_type<tc>} {
    %cst = arith.constant 0.000000e+00 : f32
    %0 = vector.broadcast %cst : f32 to vector<32x768xf32>
    %c0 = arith.constant 0 : index
    %c0_0 = arith.constant 0 : index
    %1 = vector.load %arg9[%c0, %c0_0] : memref<32x768xf32, #tpu.memory_space<vmem>>, vector<32x768xf32>
    tpu.vector_store %arg9[%c0, %c0_0], %0 {strides = array<i32>} : memref<32x768xf32, #tpu.memory_space<vmem>>, vector<32x768xf32>,
    %c0_1 = arith.constant 0 : index
    %c0_2 = arith.constant 0 : index
    %2 = vector.load %arg0[%c0_1, %c0_2] : memref<9x512xf32, #tpu.memory_space<vmem>>, vector<9x512xf32>
    %c0_3 = arith.constant 0 : index
    %c0_4 = arith.constant 0 : index
    %3 = vector.load %arg1[%c0_3, %c0_4] : memref<32x512xf32, #tpu.memory_space<vmem>>, vector<32x512xf32>
    %c0_5 = arith.constant 0 : index
    %c0_6 = arith.constant 0 : index
    %4 = vector.load %arg2[%c0_5, %c0_6] : memref<32x288xf32, #tpu.memory_space<vmem>>, vector<32x288xf32>
    %c0_7 = arith.constant 0 : index
    %c0_8 = arith.constant 0 : index
    %5 = vector.load %arg3[%c0_7, %c0_8] : memref<32x1xf32, #tpu.memory_space<vmem>>, vector<32x1xf32>
    %c0_9 = arith.constant 0 : index
    %c0_10 = arith.constant 0 : index
    %6 = vector.load %arg4[%c0_9, %c0_10] : memref<32x1xf32, #tpu.memory_space<vmem>>, vector<32x1xf32>
    %c0_11 = arith.constant 0 : index
    %c128 = arith.constant 128 : index
    %7 = vector.load %arg9[%c0_11, %c128] : memref<32x768xf32, #tpu.memory_space<vmem>>, vector<32x512xf32>
    tpu.vector_store %arg9[%c0_11, %c128], %3 {strides = array<i32>} : memref<32x768xf32, #tpu.memory_space<vmem>>, vector<32x512xf32>,
    %c0_12 = arith.constant 0 : index
    %c111 = arith.constant 111 : index
    %8 = vector.load %arg9[%c0_12, %c111] : memref<32x768xf32, #tpu.memory_space<vmem>>, vector<32x512xf32>
    %9 = vector.extract_strided_slice %2 {offsets = [0, 0], sizes = [1, 512], strides = [1, 1]} : vector<9x512xf32> to vector<1x512xf32>
    %10 = vector.broadcast %9 : vector<1x512xf32> to vector<32x512xf32>
    %11 = arith.mulf %8, %10 : vector<32x512xf32>
    %c0_13 = arith.constant 0 : index
    %c112 = arith.constant 112 : index
    %12 = vector.load %arg9[%c0_13, %c112] : memref<32x768xf32, #tpu.memory_space<vmem>>, vector<32x512xf32>
    %13 = vector.extract_strided_slice %2 {offsets = [1, 0], sizes = [1, 512], strides = [1, 1]} : vector<9x512xf32> to vector<1x512xf32>
    %14 = vector.broadcast %13 : vector<1x512xf32> to vector<32x512xf32>
    %15 = arith.mulf %12, %14 : vector<32x512xf32>
    %c0_14 = arith.constant 0 : index
    %c113 = arith.constant 113 : index
    %16 = vector.load %arg9[%c0_14, %c113] : memref<32x768xf32, #tpu.memory_space<vmem>>, vector<32x512xf32>
    %17 = vector.extract_strided_slice %2 {offsets = [2, 0], sizes = [1, 512], strides = [1, 1]} : vector<9x512xf32> to vector<1x512xf32>
    %18 = vector.broadcast %17 : vector<1x512xf32> to vector<32x512xf32>
    %19 = arith.mulf %16, %18 : vector<32x512xf32>
    %c0_15 = arith.constant 0 : index
    %c127 = arith.constant 127 : index
    %20 = vector.load %arg9[%c0_15, %c127] : memref<32x768xf32, #tpu.memory_space<vmem>>, vector<32x512xf32>
    %21 = vector.extract_strided_slice %2 {offsets = [3, 0], sizes = [1, 512], strides = [1, 1]} : vector<9x512xf32> to vector<1x512xf32>
    %22 = vector.broadcast %21 : vector<1x512xf32> to vector<32x512xf32>
    %23 = arith.mulf %20, %22 : vector<32x512xf32>
    %c0_16 = arith.constant 0 : index
    %c128_17 = arith.constant 128 : index
    %24 = vector.load %arg9[%c0_16, %c128_17] : memref<32x768xf32, #tpu.memory_space<vmem>>, vector<32x512xf32>
    %c0_18 = arith.constant 0 : index
    %c129 = arith.constant 129 : index
    %25 = vector.load %arg9[%c0_18, %c129] : memref<32x768xf32, #tpu.memory_space<vmem>>, vector<32x512xf32>
    %26 = vector.extract_strided_slice %2 {offsets = [5, 0], sizes = [1, 512], strides = [1, 1]} : vector<9x512xf32> to vector<1x512xf32>
    %27 = vector.broadcast %26 : vector<1x512xf32> to vector<32x512xf32>
    %28 = arith.mulf %25, %27 : vector<32x512xf32>
    %c0_19 = arith.constant 0 : index
    %c143 = arith.constant 143 : index
    %29 = vector.load %arg9[%c0_19, %c143] : memref<32x768xf32, #tpu.memory_space<vmem>>, vector<32x512xf32>
    %30 = vector.extract_strided_slice %2 {offsets = [6, 0], sizes = [1, 512], strides = [1, 1]} : vector<9x512xf32> to vector<1x512xf32>
    %31 = vector.broadcast %30 : vector<1x512xf32> to vector<32x512xf32>
    %32 = arith.mulf %29, %31 : vector<32x512xf32>
    %c0_20 = arith.constant 0 : index
    %c144 = arith.constant 144 : index
    %33 = vector.load %arg9[%c0_20, %c144] : memref<32x768xf32, #tpu.memory_space<vmem>>, vector<32x512xf32>
    %34 = vector.extract_strided_slice %2 {offsets = [7, 0], sizes = [1, 512], strides = [1, 1]} : vector<9x512xf32> to vector<1x512xf32>
    %35 = vector.broadcast %34 : vector<1x512xf32> to vector<32x512xf32>
    %36 = arith.mulf %33, %35 : vector<32x512xf32>
    %c0_21 = arith.constant 0 : index
    %c145 = arith.constant 145 : index
    %37 = vector.load %arg9[%c0_21, %c145] : memref<32x768xf32, #tpu.memory_space<vmem>>, vector<32x512xf32>
    %38 = vector.extract_strided_slice %2 {offsets = [8, 0], sizes = [1, 512], strides = [1, 1]} : vector<9x512xf32> to vector<1x512xf32>
    %39 = vector.broadcast %38 : vector<1x512xf32> to vector<32x512xf32>
    %40 = arith.mulf %37, %39 : vector<32x512xf32>
    %41 = tpu.concatenate %11, %15, %19, %23, %24, %28, %32, %36, %40 in 0 : vector<32x512xf32>, vector<32x512xf32>, vector<32x512xf32>, vector<32x512xf32>, vector<32x512xf32>, vector<32x512xf32>, vector<32x512xf32>, vector<32x512xf32>, vector<32x512xf32> -> vector<288x512xf32>
    %cst_22 = arith.constant dense<0.000000e+00> : vector<32x512xf32>
    %42 = tpu.matmul %4, %41, %cst_22 {dimension_numbers = #tpu.dot_dimension_numbers<[1], [0], [0], [1], [0, 0, 1, 1], [], []>} : vector<32x288xf32>, vector<288x512xf32>, vector<32x512xf32> -> vector<32x512xf32>
    %cst_23 = arith.constant dense<0.000000e+00> : vector<32xf32>
    %43 = vector.multi_reduction <add>, %42, %cst_23 [1] : vector<32x512xf32> to vector<32xf32>
    %44 = vector.shape_cast %43 : vector<32xf32> to vector<32x1xf32>
    %cst_24 = arith.constant 0.001953125 : f32
    %45 = vector.broadcast %cst_24 : f32 to vector<32x1xf32>
    %46 = arith.mulf %44, %45 : vector<32x1xf32>
    %47 = arith.mulf %42, %42 : vector<32x512xf32>
    %cst_25 = arith.constant dense<0.000000e+00> : vector<32xf32>
    %48 = vector.multi_reduction <add>, %47, %cst_25 [1] : vector<32x512xf32> to vector<32xf32>
    %49 = vector.shape_cast %48 : vector<32xf32> to vector<32x1xf32>
    %cst_26 = arith.constant 0.001953125 : f32
    %50 = vector.broadcast %cst_26 : f32 to vector<32x1xf32>
    %51 = arith.mulf %49, %50 : vector<32x1xf32>
    %52 = arith.mulf %46, %46 : vector<32x1xf32>
    %53 = arith.subf %51, %52 : vector<32x1xf32>
    %cst_27 = arith.constant 0.000000e+00 : f32
    %54 = vector.broadcast %cst_27 : f32 to vector<32x1xf32>
    %55 = arith.maximumf %53, %54 : vector<32x1xf32>
    %cst_28 = arith.constant 9.99999974E-6 : f32
    %56 = vector.broadcast %cst_28 : f32 to vector<32x1xf32>
    %57 = arith.addf %55, %56 : vector<32x1xf32>
    %58 = math.rsqrt %57 : vector<32x1xf32>
    %59 = arith.mulf %58, %5 : vector<32x1xf32>
    %60 = arith.mulf %46, %59 : vector<32x1xf32>
    %61 = arith.subf %6, %60 : vector<32x1xf32>
    %62 = vector.broadcast %59 : vector<32x1xf32> to vector<32x512xf32>
    %63 = arith.mulf %42, %62 : vector<32x512xf32>
    %64 = vector.broadcast %61 : vector<32x1xf32> to vector<32x512xf32>
    %65 = arith.addf %63, %64 : vector<32x512xf32>
    %cst_29 = arith.constant 0.000000e+00 : f32
    %66 = vector.broadcast %cst_29 : f32 to vector<32x512xf32>
    %67 = arith.maximumf %65, %66 : vector<32x512xf32>
    %c0_30 = arith.constant 0 : index
    %c0_31 = arith.constant 0 : index
    %68 = vector.load %arg5[%c0_30, %c0_31] : memref<32x288xf32, #tpu.memory_space<vmem>>, vector<32x288xf32>
    %c0_32 = arith.constant 0 : index
    %c0_33 = arith.constant 0 : index
    %69 = vector.load %arg6[%c0_32, %c0_33] : memref<32x1xf32, #tpu.memory_space<vmem>>, vector<32x1xf32>
    %c0_34 = arith.constant 0 : index
    %c0_35 = arith.constant 0 : index
    %70 = vector.load %arg7[%c0_34, %c0_35] : memref<32x1xf32, #tpu.memory_space<vmem>>, vector<32x1xf32>
    %c0_36 = arith.constant 0 : index
    %c128_37 = arith.constant 128 : index
    %71 = vector.load %arg9[%c0_36, %c128_37] : memref<32x768xf32, #tpu.memory_space<vmem>>, vector<32x512xf32>
    tpu.vector_store %arg9[%c0_36, %c128_37], %67 {strides = array<i32>} : memref<32x768xf32, #tpu.memory_space<vmem>>, vector<32x512xf32>,
    %c0_38 = arith.constant 0 : index
    %c111_39 = arith.constant 111 : index
    %72 = vector.load %arg9[%c0_38, %c111_39] : memref<32x768xf32, #tpu.memory_space<vmem>>, vector<32x512xf32>
    %73 = vector.extract_strided_slice %2 {offsets = [0, 0], sizes = [1, 512], strides = [1, 1]} : vector<9x512xf32> to vector<1x512xf32>
    %74 = vector.broadcast %73 : vector<1x512xf32> to vector<32x512xf32>
    %75 = arith.mulf %72, %74 : vector<32x512xf32>
    %c0_40 = arith.constant 0 : index
    %c112_41 = arith.constant 112 : index
    %76 = vector.load %arg9[%c0_40, %c112_41] : memref<32x768xf32, #tpu.memory_space<vmem>>, vector<32x512xf32>
    %77 = vector.extract_strided_slice %2 {offsets = [1, 0], sizes = [1, 512], strides = [1, 1]} : vector<9x512xf32> to vector<1x512xf32>
    %78 = vector.broadcast %77 : vector<1x512xf32> to vector<32x512xf32>
    %79 = arith.mulf %76, %78 : vector<32x512xf32>
    %c0_42 = arith.constant 0 : index
    %c113_43 = arith.constant 113 : index
    %80 = vector.load %arg9[%c0_42, %c113_43] : memref<32x768xf32, #tpu.memory_space<vmem>>, vector<32x512xf32>
    %81 = vector.extract_strided_slice %2 {offsets = [2, 0], sizes = [1, 512], strides = [1, 1]} : vector<9x512xf32> to vector<1x512xf32>
    %82 = vector.broadcast %81 : vector<1x512xf32> to vector<32x512xf32>
    %83 = arith.mulf %80, %82 : vector<32x512xf32>
    %c0_44 = arith.constant 0 : index
    %c127_45 = arith.constant 127 : index
    %84 = vector.load %arg9[%c0_44, %c127_45] : memref<32x768xf32, #tpu.memory_space<vmem>>, vector<32x512xf32>
    %85 = vector.extract_strided_slice %2 {offsets = [3, 0], sizes = [1, 512], strides = [1, 1]} : vector<9x512xf32> to vector<1x512xf32>
    %86 = vector.broadcast %85 : vector<1x512xf32> to vector<32x512xf32>
    %87 = arith.mulf %84, %86 : vector<32x512xf32>
    %c0_46 = arith.constant 0 : index
    %c128_47 = arith.constant 128 : index
    %88 = vector.load %arg9[%c0_46, %c128_47] : memref<32x768xf32, #tpu.memory_space<vmem>>, vector<32x512xf32>
    %c0_48 = arith.constant 0 : index
    %c129_49 = arith.constant 129 : index
    %89 = vector.load %arg9[%c0_48, %c129_49] : memref<32x768xf32, #tpu.memory_space<vmem>>, vector<32x512xf32>
    %90 = vector.extract_strided_slice %2 {offsets = [5, 0], sizes = [1, 512], strides = [1, 1]} : vector<9x512xf32> to vector<1x512xf32>
    %91 = vector.broadcast %90 : vector<1x512xf32> to vector<32x512xf32>
    %92 = arith.mulf %89, %91 : vector<32x512xf32>
    %c0_50 = arith.constant 0 : index
    %c143_51 = arith.constant 143 : index
    %93 = vector.load %arg9[%c0_50, %c143_51] : memref<32x768xf32, #tpu.memory_space<vmem>>, vector<32x512xf32>
    %94 = vector.extract_strided_slice %2 {offsets = [6, 0], sizes = [1, 512], strides = [1, 1]} : vector<9x512xf32> to vector<1x512xf32>
    %95 = vector.broadcast %94 : vector<1x512xf32> to vector<32x512xf32>
    %96 = arith.mulf %93, %95 : vector<32x512xf32>
    %c0_52 = arith.constant 0 : index
    %c144_53 = arith.constant 144 : index
    %97 = vector.load %arg9[%c0_52, %c144_53] : memref<32x768xf32, #tpu.memory_space<vmem>>, vector<32x512xf32>
    %98 = vector.extract_strided_slice %2 {offsets = [7, 0], sizes = [1, 512], strides = [1, 1]} : vector<9x512xf32> to vector<1x512xf32>
    %99 = vector.broadcast %98 : vector<1x512xf32> to vector<32x512xf32>
    %100 = arith.mulf %97, %99 : vector<32x512xf32>
    %c0_54 = arith.constant 0 : index
    %c145_55 = arith.constant 145 : index
    %101 = vector.load %arg9[%c0_54, %c145_55] : memref<32x768xf32, #tpu.memory_space<vmem>>, vector<32x512xf32>
    %102 = vector.extract_strided_slice %2 {offsets = [8, 0], sizes = [1, 512], strides = [1, 1]} : vector<9x512xf32> to vector<1x512xf32>
    %103 = vector.broadcast %102 : vector<1x512xf32> to vector<32x512xf32>
    %104 = arith.mulf %101, %103 : vector<32x512xf32>
    %105 = tpu.concatenate %75, %79, %83, %87, %88, %92, %96, %100, %104 in 0 : vector<32x512xf32>, vector<32x512xf32>, vector<32x512xf32>, vector<32x512xf32>, vector<32x512xf32>, vector<32x512xf32>, vector<32x512xf32>, vector<32x512xf32>, vector<32x512xf32> -> vector<288x512xf32>
    %cst_56 = arith.constant dense<0.000000e+00> : vector<32x512xf32>
    %106 = tpu.matmul %68, %105, %cst_56 {dimension_numbers = #tpu.dot_dimension_numbers<[1], [0], [0], [1], [0, 0, 1, 1], [], []>} : vector<32x288xf32>, vector<288x512xf32>, vector<32x512xf32> -> vector<32x512xf32>
    %cst_57 = arith.constant dense<0.000000e+00> : vector<32xf32>
    %107 = vector.multi_reduction <add>, %106, %cst_57 [1] : vector<32x512xf32> to vector<32xf32>
    %108 = vector.shape_cast %107 : vector<32xf32> to vector<32x1xf32>
    %cst_58 = arith.constant 0.001953125 : f32
    %109 = vector.broadcast %cst_58 : f32 to vector<32x1xf32>
    %110 = arith.mulf %108, %109 : vector<32x1xf32>
    %111 = arith.mulf %106, %106 : vector<32x512xf32>
    %cst_59 = arith.constant dense<0.000000e+00> : vector<32xf32>
    %112 = vector.multi_reduction <add>, %111, %cst_59 [1] : vector<32x512xf32> to vector<32xf32>
    %113 = vector.shape_cast %112 : vector<32xf32> to vector<32x1xf32>
    %cst_60 = arith.constant 0.001953125 : f32
    %114 = vector.broadcast %cst_60 : f32 to vector<32x1xf32>
    %115 = arith.mulf %113, %114 : vector<32x1xf32>
    %116 = arith.mulf %110, %110 : vector<32x1xf32>
    %117 = arith.subf %115, %116 : vector<32x1xf32>
    %cst_61 = arith.constant 0.000000e+00 : f32
    %118 = vector.broadcast %cst_61 : f32 to vector<32x1xf32>
    %119 = arith.maximumf %117, %118 : vector<32x1xf32>
    %cst_62 = arith.constant 9.99999974E-6 : f32
    %120 = vector.broadcast %cst_62 : f32 to vector<32x1xf32>
    %121 = arith.addf %119, %120 : vector<32x1xf32>
    %122 = math.rsqrt %121 : vector<32x1xf32>
    %123 = arith.mulf %122, %69 : vector<32x1xf32>
    %124 = arith.mulf %110, %123 : vector<32x1xf32>
    %125 = arith.subf %70, %124 : vector<32x1xf32>
    %126 = vector.broadcast %123 : vector<32x1xf32> to vector<32x512xf32>
    %127 = arith.mulf %106, %126 : vector<32x512xf32>
    %128 = vector.broadcast %125 : vector<32x1xf32> to vector<32x512xf32>
    %129 = arith.addf %127, %128 : vector<32x512xf32>
    %130 = arith.addf %129, %3 : vector<32x512xf32>
    %c0_63 = arith.constant 0 : index
    %c0_64 = arith.constant 0 : index
    %131 = vector.load %arg8[%c0_63, %c0_64] : memref<32x512xf32, #tpu.memory_space<vmem>>, vector<32x512xf32>
    tpu.vector_store %arg8[%c0_63, %c0_64], %130 {strides = array<i32>} : memref<32x512xf32, #tpu.memory_space<vmem>>, vector<32x512xf32>,
    return
  }
}

</mosaic_0001>

<bundles_post_ra>
// kernel: basic_block_forward.1
= control target key start
LH: loop header
LB: loop body
LE: loop exit
PB: predicated region body
PF: predicated region fallthrough
CT: control target
= control target key end

     0   :  { %v133_v0 = vlaneseq  ;;  %s6564_s13 = smov 111   ;;  %s6565_s14 = smov 112   ;;  %vm218_vm0 = vcmask 916480   ;;  %vm275_vm1 = vcmask 924672   ;;  %vm332_vm2 = vcmask 1039360   ;;  %s10725_s0 = inlined_call_operand.vmem [shape: f32[9,512], index: 0, kind: input, shape index: {}]   ;;  %s10726_s1 = inlined_call_operand.vmem [shape: f32[32,512], index: 1, kind: input, shape index: {}]   ;;  %s10727_s2 = inlined_call_operand.vmem [shape: f32[32,288], index: 2, kind: input, shape index: {}]   ;;  %s10728_s3 = inlined_call_operand.vmem [shape: f32[32,1], index: 3, kind: input, shape index: {}]   ;;  %s10729_s4 = inlined_call_operand.vmem [shape: f32[32,1], index: 4, kind: input, shape index: {}]   ;;  %s10730_s5 = inlined_call_operand.vmem [shape: f32[32,288], index: 5, kind: input, shape index: {}]   ;;  %s10731_s6 = inlined_call_operand.vmem [shape: f32[32,1], index: 6, kind: input, shape index: {}]   ;;  %s10732_s7 = inlined_call_operand.vmem [shape: f32[32,1], index: 7, kind: input, shape index: {}]   ;;  %s10733_s8 = inlined_call_operand.vmem [shape: f32[32,512], index: 8, kind: output, shape index: {}]  }
   0x1   :  { %v6629_v2 = vld [vmem:[%s10725_s0 + $0x10] sm:$0xff]  ;;  %v6634_v3 = vld [vmem:[%s10725_s0] sm:$0xff]  ;;  %v6640_v5 = vld [vmem:[%s10725_s0 + $0x18] sm:$0xff]  ;;  %s6566_s15 = smov 113   ;;  %s6567_s16 = smov 127   ;;  %vm409_vm3 = vcmask 7168  }
   0x2   :  { %v6624_v1 = vshrl.u32 %v133_v0, 7  ;;  %v6645_v6 = vld [vmem:[%s10725_s0 + $0x8] sm:$0xff]  ;;  %s6568_s17 = smov 1   ;;  %s6569_s18 = smov 15   ;;  %v4495_v42 = vld [vmem:[%s10725_s0 + $0x20] ss:$0 sm:$0xff] }
   0x3   :  { %s6570_s19 = smov 16   ;;  %v4496_v41 = vld [vmem:[%s10725_s0 + $0x28] ss:$0 sm:$0xff]  ;;  %s6571_s24 = smov 17   ;;  %v4498_v43 = vld [vmem:[%s10725_s0 + $0x38] ss:$0 sm:$0xff] }
   0x4   :  { %v135_v4 = vsub.s32 0, %v6624_v1  ;;  %v192_v11 = vsub.s32 1, %v6624_v1  ;;  %v249_v16 = vsub.s32 2, %v6624_v1  ;;  %v306_v21 = vsub.s32 3, %v6624_v1  ;;  %v4497_v44 = vld [vmem:[%s10725_s0 + $0x30] ss:$0 sm:$0xff] }
   0x5   :  { %v383_v26 = vsub.s32 5, %v6624_v1  ;;  %v440_v31 = vsub.s32 6, %v6624_v1  ;;  %v497_v36 = vsub.s32 7, %v6624_v1  ;;  %v6710_v45 = vld [vmem:[%s10726_s1 + $0x10] sm:$0xff]  ;;  %v6715_v46 = vld [vmem:[%s10726_s1 + $0x18] sm:$0xff]  ;;  %v6720_v47 = vld [vmem:[%s10726_s1] sm:$0xff] }
   0x6   :  { %v144_v7 = vrot.slane %v6629_v2, %v135_v4  ;;  %v136_v8 = vrot.slane %v6634_v3, %v135_v4  ;;  %v148_v9 = vrot.slane %v6640_v5, %v135_v4  ;;  %v140_v10 = vrot.slane %v6645_v6, %v135_v4  ;;  %v6725_v48 = vld [vmem:[%s10726_s1 + $0x8] sm:$0xff]  ;;  %v6748_v59 = vld [vmem:[%s10726_s1 + $0x58] sm:$0xff]  ;;  %s6573_s25 = smov 110   ;;  %s6574_s26 = smov 96  }
   0x7   :  { %v197_v12 = vrot.slane %v6645_v6, %v192_v11  ;;  %v193_v13 = vrot.slane %v6634_v3, %v192_v11  ;;  %v205_v14 = vrot.slane %v6640_v5, %v192_v11  ;;  %v201_v15 = vrot.slane %v6629_v2, %v192_v11  ;;  %s6575_s27 = smov 95   ;;  %s6576_s28 = smov 94  }
   0x8   :  { %157 = vrot.lane.b32.xlu1 %v144_v7, %s6564_s13  ;;  %153 = vrot.lane.b32.xlu0 %v136_v8, %s6564_s13  ;;  %v254_v17 = vrot.slane %v6645_v6, %v249_v16  ;;  %v250_v18 = vrot.slane %v6634_v3, %v249_v16  ;;  %v262_v19 = vrot.slane %v6640_v5, %v249_v16  ;;  %vm466_vm4 = vcmask 121856  }
   0x9   :  { %v258_v20 = vrot.slane %v6629_v2, %v249_v16  ;;  %v311_v22 = vrot.slane %v6645_v6, %v306_v21  ;;  %v307_v23 = vrot.slane %v6634_v3, %v306_v21  ;;  %v319_v24 = vrot.slane %v6640_v5, %v306_v21 }
   0xa   :  { %v315_v25 = vrot.slane %v6629_v2, %v306_v21  ;;  %v388_v27 = vrot.slane %v6645_v6, %v383_v26  ;;  %v384_v28 = vrot.slane %v6634_v3, %v383_v26  ;;  %v396_v29 = vrot.slane %v6640_v5, %v383_v26 }
   0xb   :  { %v392_v30 = vrot.slane %v6629_v2, %v383_v26  ;;  %v445_v32 = vrot.slane %v6645_v6, %v440_v31  ;;  %v441_v33 = vrot.slane %v6634_v3, %v440_v31  ;;  %v453_v34 = vrot.slane %v6640_v5, %v440_v31  ;;  %v6816_v26 = vld [vmem:[%s10726_s1 + $0x30] sm:$0xff] }
   0xc   :  { %159 = vrot.lane.b32.xlu1 %v148_v9, %s6564_s13  ;;  %155 = vrot.lane.b32.xlu0 %v140_v10, %s6564_s13  ;;  %v449_v35 = vrot.slane %v6629_v2, %v440_v31  ;;  %v502_v37 = vrot.slane %v6645_v6, %v497_v36  ;;  %v498_v38 = vrot.slane %v6634_v3, %v497_v36  ;;  %vm523_vm5 = vcmask 130048  }
   0xd   :  { %v510_v39 = vrot.slane %v6640_v5, %v497_v36  ;;  %v506_v40 = vrot.slane %v6629_v2, %v497_v36  ;;  %v4855_v49 = vpack.i.bf16 %v6715_v46, %v6710_v45  ;;  %v4850_v50 = vpack.i.bf16 %v6725_v48, %v6720_v47  ;;  %v6848_v36 = vld [vmem:[%s10726_s1 + $0x48] sm:$0xff] }
   0xe   :  { %vm580_vm6 = vcmask 138240   ;;  %vm161_vm7 = vcmask 908288   ;;  %vm745_vm8 = vcmask 1031168   ;;  %vm958_vm9 = vcmask 900096  }
   0xf   :  { %vm1035_vm10 = vcmask 785408   ;;  %vm1112_vm11 = vcmask 777216   ;;  %vm1189_vm12 = vcmask 769024   ;;  %vm1874_vm13 = vcmask 261120  }
  0x10   :  { %212 = vrot.lane.b32.xlu1 %v197_v12, %s6565_s14  ;;  %210 = vrot.lane.b32.xlu0 %v193_v13, %s6565_s14 }
  0x14   :  { %216 = vrot.lane.b32.xlu1 %v205_v14, %s6565_s14  ;;  %214 = vrot.lane.b32.xlu0 %v201_v15, %s6565_s14 }
  0x18   :  { %269 = vrot.lane.b32.xlu1 %v254_v17, %s6566_s15  ;;  %267 = vrot.lane.b32.xlu0 %v250_v18, %s6566_s15 }
  0x1c   :  { %273 = vrot.lane.b32.xlu1 %v262_v19, %s6566_s15  ;;  %271 = vrot.lane.b32.xlu0 %v258_v20, %s6566_s15 }
  0x20   :  { %326 = vrot.lane.b32.xlu1 %v311_v22, %s6567_s16  ;;  %324 = vrot.lane.b32.xlu0 %v307_v23, %s6567_s16 }
  0x24   :  { %330 = vrot.lane.b32.xlu1 %v319_v24, %s6567_s16  ;;  %328 = vrot.lane.b32.xlu0 %v315_v25, %s6567_s16  ;;  %v6811_v25 = vld [vmem:[%s10726_s1 + $0x28] sm:$0xff] }
  0x28   :  { %403 = vrot.lane.b32.xlu1 %v388_v27, %s6568_s17  ;;  %401 = vrot.lane.b32.xlu0 %v384_v28, %s6568_s17  ;;  %v6821_v27 = vld [vmem:[%s10726_s1 + $0x38] sm:$0xff] }
  0x2c   :  { %407 = vrot.lane.b32.xlu1 %v396_v29, %s6568_s17  ;;  %405 = vrot.lane.b32.xlu0 %v392_v30, %s6568_s17 }
  0x30   :  { %460 = vrot.lane.b32.xlu1 %v445_v32, %s6569_s18  ;;  %458 = vrot.lane.b32.xlu0 %v441_v33, %s6569_s18  ;;  %v6832_v32 = vld [vmem:[%s10726_s1 + $0x20] sm:$0xff] }
  0x34   :  { %464 = vrot.lane.b32.xlu1 %v453_v34, %s6569_s18  ;;  %462 = vrot.lane.b32.xlu0 %v449_v35, %s6569_s18  ;;  %v6841_v34 = vld [vmem:[%s10726_s1 + $0x40] sm:$0xff] }
  0x38   :  { %517 = vrot.lane.b32.xlu1 %v502_v37, %s6570_s19  ;;  %515 = vrot.lane.b32.xlu0 %v498_v38, %s6570_s19  ;;  %v6853_v37 = vld [vmem:[%s10726_s1 + $0x50] sm:$0xff] }
  0x3c   :  { %521 = vrot.lane.b32.xlu1 %v510_v39, %s6570_s19  ;;  %519 = vrot.lane.b32.xlu0 %v506_v40, %s6570_s19  ;;  %s6572_s19 = smov 126  }
  0x40   :  { %574 = vrot.lane.b32.xlu1 %v4496_v41, %s6571_s24  ;;  %572 = vrot.lane.b32.xlu0 %v4495_v42, %s6571_s24  ;;  %v6864_v42 = vld [vmem:[%s10726_s1 + $0x70] sm:$0xff] }
  0x44   :  { %578 = vrot.lane.b32.xlu1 %v4498_v43, %s6571_s24  ;;  %576 = vrot.lane.b32.xlu0 %v4497_v44, %s6571_s24  ;;  %v6870_v44 = vld [vmem:[%s10726_s1 + $0x78] sm:$0xff] }
  0x48   :  { %4856 = vrot.lane.b32.xlu1 %v4855_v49, %s6564_s13  ;;  %4851 = vrot.lane.b32.xlu0 %v4850_v50, %s6564_s13  ;;  %v6877_v50 = vld [vmem:[%s10726_s1 + $0x68] sm:$0xff] }
  0x7a   :  { %v6735_v51 = vpop.permute.xlu1 %157  ;;  %v6737_v52 = vpop.permute.xlu0 %153 }
  0x7e   :  { %v6739_v53 = vpop.permute.xlu1 %159  ;;  %v6741_v54 = vpop.permute.xlu0 %155 }
  0x7f   :  { %10900 = vst [vmem:[#allocation3_spill] sm:$0xff] %v6739_v53 }
  0x82   :  { %v213_v55 = vpop.permute.xlu1 %212  ;;  %v211_v56 = vpop.permute.xlu0 %210 }
  0x83   :  { %v6750_v60 = vmul.f32 0.0, %v211_v56  ;;  %v6779_v12 = vsel %vm218_vm0, %v211_v56, %v213_v55 }
  0x84   :  { %v228_v19 = vmul.f32 %v6779_v12, %v6720_v47  ;;  %v233_v33 = vmul.f32 %v6779_v12, %v6832_v32  ;;  %v238_v35 = vmul.f32 %v6779_v12, %v6841_v34 }
  0x85   :  { %10902 = vst [vmem:[#allocation5_spill] sm:$0xff] %v6750_v60 }
  0x86   :  { %v6743_v57 = vpop.permute.xlu1 %216  ;;  %v215_v58 = vpop.permute.xlu0 %214  ;;  %v4890_v24 = vpack.i.bf16 %v228_v19, %v6750_v60  ;;  %v4910_v43 = vpack.i.bf16 %v238_v35, %v6750_v60 }
  0x87   :  { %10901 = vst [vmem:[#allocation4_spill] sm:$0xff] %v6743_v57  ;;  %v241_v61 = vmul.f32 %v6743_v57, %v6748_v59  ;;  %v231_v62 = vmul.f32 %v6743_v57, %v6715_v46  ;;  %v6782_v13 = vsel %vm218_vm0, %v213_v55, %v215_v58  ;;  %v6786_v14 = vsel %vm218_vm0, %v215_v58, %v6743_v57 }
  0x88   :  { %v229_v22 = vmul.f32 %v6782_v13, %v6725_v48  ;;  %v230_v23 = vmul.f32 %v6786_v14, %v6710_v45  ;;  %v234_v29 = vmul.f32 %v6782_v13, %v6811_v25  ;;  %v235_v30 = vmul.f32 %v6786_v14, %v6816_v26 }
  0x89   :  { %v4865_v63 = vpack.i.bf16 %v6750_v60, %v241_v61  ;;  %v4860_v0 = vpack.i.bf16 %v6750_v60, %v231_v62  ;;  %v236_v31 = vmul.f32 %v6743_v57, %v6821_v27  ;;  %v239_v40 = vmul.f32 %v6782_v13, %v6848_v36 }
  0x8a   :  { %v6758_v1 = vpop.permute.xlu1 %269  ;;  %v268_v2 = vpop.permute.xlu0 %267  ;;  %v4895_v28 = vpack.i.bf16 %v230_v23, %v229_v22  ;;  %v4900_v38 = vpack.i.bf16 %v234_v29, %v233_v33  ;;  %v240_v41 = vmul.f32 %v6786_v14, %v6853_v37  ;;  %v245_v49 = vmul.f32 %v6786_v14, %v6864_v42 }
  0x8b   :  { %4866 = vrot.lane.b32.xlu1 %v4865_v63, %s6567_s16  ;;  %4861 = vrot.lane.b32.xlu0 %v4860_v0, %s6567_s16  ;;  %v6764_v5 = vmul.f32 0.0, %v268_v2  ;;  %v4905_v39 = vpack.i.bf16 %v236_v31, %v235_v30  ;;  %v6880_v55 = vsel %vm275_vm1, %v268_v2, %v6758_v1  ;;  %v246_v58 = vmul.f32 %v6743_v57, %v6870_v44  ;;  %v6895_v0 = vld [vmem:[%s10726_s1 + $0x60] sm:$0xff] }
  0x8c   :  { %10907 = vst [vmem:[#allocation10_spill] sm:$0xff] %v6880_v55  ;;  %v4915_v56 = vpack.i.bf16 %v240_v41, %v239_v40  ;;  %v244_v61 = vmul.f32 %v6782_v13, %v6877_v50  ;;  %v243_v2 = vmul.f32 %v6779_v12, %v6895_v0  ;;  %v295_v22 = vmul.f32 %v6880_v55, %v6841_v34 }
  0x8d   :  { %10904 = vst [vmem:[#allocation7_spill] sm:$0xff] %v6764_v5 }
  0x8e   :  { %v6762_v3 = vpop.permute.xlu1 %273  ;;  %v272_v4 = vpop.permute.xlu0 %271  ;;  %v4950_v33 = vpack.i.bf16 %v295_v22, %v6764_v5 }
  0x8f   :  { %10903 = vst [vmem:[#allocation6_spill] sm:$0xff] %v6762_v3  ;;  %v298_v6 = vmul.f32 %v6762_v3, %v6748_v59  ;;  %v288_v7 = vmul.f32 %v6762_v3, %v6715_v46  ;;  %v6887_v62 = vsel %vm275_vm1, %v6758_v1, %v272_v4  ;;  %v6890_v63 = vsel %vm275_vm1, %v272_v4, %v6762_v3 }
  0x90   :  { %10908 = vst [vmem:[#allocation11_spill] sm:$0xff] %v6887_v62  ;;  %10909 = vst [vmem:[#allocation12_spill] sm:$0xff] %v6890_v63  ;;  %v4925_v1 = vpack.i.bf16 %v246_v58, %v245_v49  ;;  %v286_v4 = vmul.f32 %v6887_v62, %v6725_v48  ;;  %v292_v19 = vmul.f32 %v6890_v63, %v6816_v26 }
  0x91   :  { %v4875_v8 = vpack.i.bf16 %v6764_v5, %v298_v6  ;;  %v4870_v9 = vpack.i.bf16 %v6764_v5, %v288_v7  ;;  %v285_v6 = vmul.f32 %v6880_v55, %v6720_v47  ;;  %v4920_v7 = vpack.i.bf16 %v244_v61, %v243_v2 }
  0x92   :  { %v6772_v10 = vpop.permute.xlu1 %326  ;;  %v6776_v11 = vpop.permute.xlu0 %324  ;;  %v297_v29 = vmul.f32 %v6890_v63, %v6853_v37  ;;  %v301_v40 = vmul.f32 %v6887_v62, %v6877_v50 }
  0x93   :  { %4876 = vrot.lane.b32.xlu1 %v4875_v8, %s6572_s19  ;;  %4871 = vrot.lane.b32.xlu0 %v4870_v9, %s6572_s19  ;;  %v6791_v16 = vmul.f32 0.0, %v6776_v11  ;;  %v287_v8 = vmul.f32 %v6890_v63, %v6710_v45  ;;  %v4930_v9 = vpack.i.bf16 %v285_v6, %v6764_v5  ;;  %v6931_v31 = vsel %vm332_vm2, %v6776_v11, %v6772_v10 }
  0x94   :  { %10910 = vst [vmem:[#allocation13_spill] sm:$0xff] %v6931_v31  ;;  %v342_v49 = vmul.f32 %v6931_v31, %v6720_v47  ;;  %v7291_v5 = vsel %vm161_vm7, %v6741_v54, %v6735_v51 }
  0x95   :  { %10906 = vst [vmem:[#allocation9_spill] sm:$0xff] %v6791_v16  ;;  %10934 = vst [vmem:[#allocation37_spill] sm:$0xff] %v7291_v5 }
  0x96   :  { %v6788_v15 = vpop.permute.xlu1 %330  ;;  %v329_v30 = vpop.permute.xlu0 %328  ;;  %v4970_v2 = vpack.i.bf16 %v342_v49, %v6791_v16 }
  0x97   :  { %10905 = vst [vmem:[#allocation8_spill] sm:$0xff] %v6788_v15  ;;  %v355_v17 = vmul.f32 %v6788_v15, %v6748_v59  ;;  %v345_v18 = vmul.f32 %v6788_v15, %v6715_v46  ;;  %v6942_v41 = vsel %vm332_vm2, %v6772_v10, %v329_v30  ;;  %v6946_v11 = vsel %vm332_vm2, %v329_v30, %v6788_v15 }
  0x98   :  { %10911 = vst [vmem:[#allocation14_spill] sm:$0xff] %v6942_v41  ;;  %10912 = vst [vmem:[#allocation15_spill] sm:$0xff] %v6946_v11  ;;  %v343_v10 = vmul.f32 %v6942_v41, %v6725_v48  ;;  %v344_v61 = vmul.f32 %v6946_v11, %v6710_v45 }
  0x99   :  { %v4885_v20 = vpack.i.bf16 %v6791_v16, %v355_v17  ;;  %v4880_v21 = vpack.i.bf16 %v6791_v16, %v345_v18  ;;  %v4935_v17 = vpack.i.bf16 %v287_v8, %v286_v4  ;;  %v291_v18 = vmul.f32 %v6887_v62, %v6811_v25 }
  0x9a   :  { %v4975_v6 = vpack.i.bf16 %v344_v61, %v343_v10  ;;  %v348_v4 = vmul.f32 %v6942_v41, %v6811_v25  ;;  %v347_v8 = vmul.f32 %v6931_v31, %v6832_v32 }
  0x9b   :  { %4886 = vrot.lane.b32.xlu1 %v4885_v20, %s6565_s14  ;;  %4881 = vrot.lane.b32.xlu0 %v4880_v21, %s6565_s14  ;;  %v293_v20 = vmul.f32 %v6762_v3, %v6821_v27  ;;  %v290_v21 = vmul.f32 %v6880_v55, %v6832_v32 }
  0x9d   :  { %v4940_v23 = vpack.i.bf16 %v291_v18, %v290_v21  ;;  %v4980_v18 = vpack.i.bf16 %v348_v4, %v347_v8 }
  0x9f   :  { %4896 = vrot.lane.b32.xlu1 %v4895_v28, %s6567_s16  ;;  %4891 = vrot.lane.b32.xlu0 %v4890_v24, %s6567_s16  ;;  %v4945_v24 = vpack.i.bf16 %v293_v20, %v292_v19  ;;  %v296_v28 = vmul.f32 %v6887_v62, %v6848_v36  ;;  %v353_v19 = vmul.f32 %v6942_v41, %v6848_v36 }
  0xa0   :  { %v354_v20 = vmul.f32 %v6946_v11, %v6853_v37 }
  0xa1   :  { %v4955_v35 = vpack.i.bf16 %v297_v29, %v296_v28  ;;  %v360_v28 = vmul.f32 %v6788_v15, %v6870_v44  ;;  %v357_v29 = vmul.f32 %v6931_v31, %v6895_v0 }
  0xa2   :  { %v4995_v22 = vpack.i.bf16 %v354_v20, %v353_v19 }
  0xa3   :  { %4901 = vrot.lane.b32.xlu1 %v4900_v38, %s6567_s16  ;;  %4906 = vrot.lane.b32.xlu0 %v4905_v39, %s6567_s16  ;;  %v302_v38 = vmul.f32 %v6890_v63, %v6864_v42  ;;  %v303_v39 = vmul.f32 %v6762_v3, %v6870_v44 }
  0xa7   :  { %4911 = vrot.lane.b32.xlu1 %v4910_v43, %s6567_s16  ;;  %4916 = vrot.lane.b32.xlu0 %v4915_v56, %s6567_s16  ;;  %v300_v43 = vmul.f32 %v6880_v55, %v6895_v0  ;;  %v4965_v56 = vpack.i.bf16 %v303_v39, %v302_v38  ;;  %v6990_v38 = vpop.permute.xlu0 %401  ;;  %v5005_v39 = vpack.i.bf16 %v6811_v25, %v6832_v32 }
  0xa8   :  { %10913 = vst [vmem:[#allocation16_spill] sm:$0xff] %v6990_v38 }
  0xa9   :  { %v4960_v58 = vpack.i.bf16 %v301_v40, %v300_v43  ;;  %v5015_v40 = vpack.i.bf16 %v6821_v27, %v6816_v26 }
  0xab   :  { %4926 = vrot.lane.b32.xlu1 %v4925_v1, %s6567_s16  ;;  %4921 = vrot.lane.b32.xlu0 %v4920_v7, %s6567_s16  ;;  %v349_v1 = vmul.f32 %v6946_v11, %v6816_v26  ;;  %v350_v7 = vmul.f32 %v6788_v15, %v6821_v27  ;;  %v406_v49 = vpop.permute.xlu0 %405 }
  0xaf   :  { %4936 = vrot.lane.b32.xlu1 %v4935_v17, %s6572_s19  ;;  %4931 = vrot.lane.b32.xlu0 %v4930_v9, %s6572_s19  ;;  %v352_v9 = vmul.f32 %v6931_v31, %v6841_v34  ;;  %v4985_v17 = vpack.i.bf16 %v350_v7, %v349_v1  ;;  %v5035_v1 = vpack.i.bf16 %v6870_v44, %v6864_v42 }
  0xb0   :  { %v418_v7 = vmul.f32 %v6990_v38, %v6720_v47 }
  0xb1   :  { %v4990_v21 = vpack.i.bf16 %v352_v9, %v6791_v16 }
  0xb3   :  { %4941 = vrot.lane.b32.xlu1 %v4940_v23, %s6572_s19  ;;  %4946 = vrot.lane.b32.xlu0 %v4945_v24, %s6572_s19  ;;  %v358_v23 = vmul.f32 %v6942_v41, %v6877_v50  ;;  %v359_v24 = vmul.f32 %v6946_v11, %v6864_v42 }
  0xb5   :  { %v5000_v30 = vpack.i.bf16 %v358_v23, %v357_v29 }
  0xb7   :  { %4951 = vrot.lane.b32.xlu1 %v4950_v33, %s6572_s19  ;;  %4956 = vrot.lane.b32.xlu0 %v4955_v35, %s6572_s19  ;;  %v5010_v33 = vpack.i.bf16 %v360_v28, %v359_v24  ;;  %v404_v35 = vpop.permute.xlu1 %403  ;;  %v7037_v24 = vpop.permute.xlu0 %458  ;;  %v428_v28 = vmul.f32 %v6990_v38, %v6841_v34 }
  0xb8   :  { %v7005_v10 = vsel %vm409_vm3, %v6990_v38, %v404_v35  ;;  %v7007_v61 = vsel %vm409_vm3, %v404_v35, %v406_v49  ;;  %10918 = vst [vmem:[#allocation21_spill] sm:$0xff] %v7037_v24 }
  0xb9   :  { %10914 = vst [vmem:[#allocation17_spill] sm:$0xff] %v7005_v10  ;;  %10915 = vst [vmem:[#allocation18_spill] sm:$0xff] %v7007_v61  ;;  %v419_v4 = vmul.f32 %v7005_v10, %v6725_v48  ;;  %v420_v8 = vmul.f32 %v7007_v61, %v6710_v45  ;;  %v429_v35 = vmul.f32 %v7005_v10, %v6848_v36 }
  0xbb   :  { %4966 = vrot.lane.b32.xlu1 %v4965_v56, %s6572_s19  ;;  %4961 = vrot.lane.b32.xlu0 %v4960_v58, %s6572_s19  ;;  %v408_v43 = vpop.permute.xlu1 %407  ;;  %v5020_v56 = vpack.i.bf16 %v6848_v36, %v6841_v34  ;;  %v5025_v58 = vpack.i.bf16 %v6748_v59, %v6853_v37  ;;  %v5040_v20 = vpack.i.bf16 %v419_v4, %v418_v7 }
  0xbc   :  { %v7031_v19 = vmul.f32 0.0, %v408_v43 }
  0xbe   :  { %10917 = vst [vmem:[#allocation20_spill] sm:$0xff] %v7031_v19 }
  0xbf   :  { %4971 = vrot.lane.b32.xlu0 %v4970_v2, %s6565_s14  ;;  %4976 = vrot.lane.b32.xlu1 %v4975_v6, %s6565_s14  ;;  %v7009_v2 = vsel %vm409_vm3, %v406_v49, %v408_v43  ;;  %v5030_v6 = vpack.i.bf16 %v6877_v50, %v6895_v0  ;;  %v461_v23 = vpop.permute.xlu1 %460  ;;  %v5065_v43 = vpack.i.bf16 %v429_v35, %v428_v28 }
  0xc0   :  { %10916 = vst [vmem:[#allocation19_spill] sm:$0xff] %v7009_v2  ;;  %v421_v9 = vmul.f32 %v7009_v2, %v6715_v46  ;;  %v475_v28 = vmul.f32 %v7037_v24, %v6720_v47 }
  0xc3   :  { %4986 = vrot.lane.b32.xlu0 %v4985_v17, %s6565_s14  ;;  %4981 = vrot.lane.b32.xlu1 %v4980_v18, %s6565_s14  ;;  %v423_v17 = vmul.f32 %v6990_v38, %v6832_v32  ;;  %v424_v18 = vmul.f32 %v7005_v10, %v6811_v25  ;;  %v465_v49 = vpop.permute.xlu1 %464 }
  0xc5   :  { %v5050_v29 = vpack.i.bf16 %v423_v17, %v7031_v19  ;;  %v436_v17 = vmul.f32 %v7009_v2, %v6870_v44 }
  0xc7   :  { %4996 = vrot.lane.b32.xlu0 %v4995_v22, %s6565_s14  ;;  %4991 = vrot.lane.b32.xlu1 %v4990_v21, %s6565_s14  ;;  %v5045_v21 = vpack.i.bf16 %v421_v9, %v420_v8  ;;  %v425_v22 = vmul.f32 %v7007_v61, %v6816_v26  ;;  %v434_v8 = vmul.f32 %v7005_v10, %v6877_v50 }
  0xc8   :  { %v435_v9 = vmul.f32 %v7007_v61, %v6864_v42 }
  0xcb   :  { %5001 = vrot.lane.b32.xlu0 %v5000_v30, %s6565_s14  ;;  %5011 = vrot.lane.b32.xlu1 %v5010_v33, %s6565_s14  ;;  %v5055_v30 = vpack.i.bf16 %v425_v22, %v424_v18  ;;  %v426_v33 = vmul.f32 %v7009_v2, %v6821_v27 }
  0xcf   :  { %5006 = vrot.lane.b32.xlu0 %v5005_v39, %s6564_s13  ;;  %5016 = vrot.lane.b32.xlu1 %v5015_v40, %s6564_s13  ;;  %v433_v39 = vmul.f32 %v6990_v38, %v6895_v0  ;;  %v5060_v40 = vpack.i.bf16 %v7031_v19, %v426_v33 }
  0xd1   :  { %v5075_v7 = vpack.i.bf16 %v433_v39, %v7031_v19  ;;  %v480_v39 = vmul.f32 %v7037_v24, %v6832_v32 }
  0xd3   :  { %5021 = vrot.lane.b32.xlu0 %v5020_v56, %s6564_s13  ;;  %5026 = vrot.lane.b32.xlu1 %v5025_v58, %s6564_s13  ;;  %v463_v56 = vpop.permute.xlu0 %462  ;;  %v430_v58 = vmul.f32 %v7007_v61, %v6853_v37 }
  0xd4   :  { %v7069_v18 = vsel %vm466_vm4, %v461_v23, %v463_v56 }
  0xd5   :  { %10920 = vst [vmem:[#allocation23_spill] sm:$0xff] %v7069_v18  ;;  %v477_v33 = vmul.f32 %v7069_v18, %v6710_v45 }
  0xd7   :  { %5031 = vrot.lane.b32.xlu0 %v5030_v6, %s6564_s13  ;;  %5036 = vrot.lane.b32.xlu1 %v5035_v1, %s6564_s13  ;;  %v431_v6 = vmul.f32 %v7009_v2, %v6748_v59  ;;  %v7059_v1 = vsel %vm466_vm4, %v7037_v24, %v461_v23  ;;  %v7076_v22 = vpop.permute.xlu0 %515  ;;  %v5085_v23 = vpack.i.bf16 %v7031_v19, %v436_v17 }
  0xd8   :  { %10919 = vst [vmem:[#allocation22_spill] sm:$0xff] %v7059_v1  ;;  %10922 = vst [vmem:[#allocation25_spill] sm:$0xff] %v7076_v22 }
  0xd9   :  { %v5070_v4 = vpack.i.bf16 %v431_v6, %v430_v58 }
  0xdb   :  { %5041 = vrot.lane.b32.xlu0 %v5040_v20, %s6573_s25  ;;  %5046 = vrot.lane.b32.xlu1 %v5045_v21, %s6573_s25  ;;  %v7072_v20 = vsel %vm466_vm4, %v463_v56, %v465_v49  ;;  %v518_v21 = vpop.permute.xlu1 %517  ;;  %v520_v58 = vpop.permute.xlu0 %519 }
  0xdc   :  { %10921 = vst [vmem:[#allocation24_spill] sm:$0xff] %v7072_v20  ;;  %v478_v35 = vmul.f32 %v7072_v20, %v6715_v46 }
  0xdf   :  { %5051 = vrot.lane.b32.xlu0 %v5050_v29, %s6573_s25  ;;  %5056 = vrot.lane.b32.xlu1 %v5055_v30, %s6573_s25  ;;  %v476_v29 = vmul.f32 %v7059_v1, %v6725_v48  ;;  %v5080_v30 = vpack.i.bf16 %v435_v9, %v434_v8  ;;  %v522_v56 = vpop.permute.xlu1 %521  ;;  %v485_v8 = vmul.f32 %v7037_v24, %v6841_v34 }
  0xe1   :  { %v5090_v6 = vpack.i.bf16 %v476_v29, %v475_v28  ;;  %v486_v28 = vmul.f32 %v7059_v1, %v6848_v36 }
  0xe3   :  { %5061 = vrot.lane.b32.xlu0 %v5060_v40, %s6573_s25  ;;  %5066 = vrot.lane.b32.xlu1 %v5065_v43, %s6573_s25  ;;  %v481_v40 = vmul.f32 %v7059_v1, %v6811_v25  ;;  %v7093_v43 = vmul.f32 0.0, %v465_v49  ;;  %v483_v49 = vmul.f32 %v7072_v20, %v6821_v27  ;;  %v7106_v29 = vpop.permute.xlu1 %574 }
  0xe5   :  { %10923 = vst [vmem:[#allocation26_spill] sm:$0xff] %v7093_v43  ;;  %v5100_v9 = vpack.i.bf16 %v480_v39, %v7093_v43  ;;  %v487_v39 = vmul.f32 %v7069_v18, %v6853_v37 }
  0xe7   :  { %5071 = vrot.lane.b32.xlu0 %v5070_v4, %s6573_s25  ;;  %5076 = vrot.lane.b32.xlu1 %v5075_v7, %s6573_s25  ;;  %v5095_v7 = vpack.i.bf16 %v478_v35, %v477_v33  ;;  %v482_v4 = vmul.f32 %v7069_v18, %v6816_v26  ;;  %v5110_v33 = vpack.i.bf16 %v7093_v43, %v483_v49 }
  0xe8   :  { %v5115_v35 = vpack.i.bf16 %v486_v28, %v485_v8  ;;  %v7127_v8 = vpop.permute.xlu1 %578  ;;  %v492_v49 = vmul.f32 %v7069_v18, %v6864_v42  ;;  %v493_v28 = vmul.f32 %v7072_v20, %v6870_v44 }
  0xe9   :  { %v5105_v17 = vpack.i.bf16 %v482_v4, %v481_v40  ;;  %v488_v40 = vmul.f32 %v7072_v20, %v6748_v59  ;;  %v7125_v4 = vsel %vm523_vm5, %v7076_v22, %v518_v21 }
  0xea   :  { %10925 = vst [vmem:[#allocation28_spill] sm:$0xff] %v7125_v4  ;;  %v5135_v19 = vpack.i.bf16 %v7093_v43, %v493_v28 }
  0xeb   :  { %5081 = vrot.lane.b32.xlu0 %v5080_v30, %s6573_s25  ;;  %5086 = vrot.lane.b32.xlu1 %v5085_v23, %s6573_s25  ;;  %v7108_v30 = vpop.permute.xlu0 %572  ;;  %v490_v23 = vmul.f32 %v7037_v24, %v6895_v0 }
  0xec   :  { %10924 = vst [vmem:[#allocation27_spill] sm:$0xff] %v7108_v30 }
  0xef   :  { %5091 = vrot.lane.b32.xlu0 %v5090_v6, %s6574_s26  ;;  %5096 = vrot.lane.b32.xlu1 %v5095_v7, %s6574_s26  ;;  %v5125_v6 = vpack.i.bf16 %v490_v23, %v7093_v43  ;;  %v491_v7 = vmul.f32 %v7059_v1, %v6877_v50  ;;  %v532_v23 = vmul.f32 %v7076_v22, %v6720_v47 }
  0xf3   :  { %5101 = vrot.lane.b32.xlu0 %v5100_v9, %s6574_s26  ;;  %5106 = vrot.lane.b32.xlu1 %v5105_v17, %s6574_s26  ;;  %v577_v9 = vpop.permute.xlu0 %576  ;;  %v5120_v17 = vpack.i.bf16 %v488_v40, %v487_v39  ;;  %v533_v39 = vmul.f32 %v7125_v4, %v6725_v48  ;;  %v5130_v40 = vpack.i.bf16 %v492_v49, %v491_v7  ;;  %v7158_v49 = vmul.f32 0.0, %v522_v56 }
  0xf4   :  { %v538_v7 = vmul.f32 %v7125_v4, %v6811_v25 }
  0xf5   :  { %10928 = vst [vmem:[#allocation31_spill] sm:$0xff] %v7158_v49  ;;  %v5140_v28 = vpack.i.bf16 %v533_v39, %v532_v23  ;;  %v543_v23 = vmul.f32 %v7125_v4, %v6848_v36 }
  0xf7   :  { %5111 = vrot.lane.b32.xlu0 %v5110_v33, %s6574_s26  ;;  %5116 = vrot.lane.b32.xlu1 %v5115_v35, %s6574_s26  ;;  %v7133_v33 = vsel %vm523_vm5, %v518_v21, %v520_v58  ;;  %v7135_v35 = vsel %vm523_vm5, %v520_v58, %v522_v56  ;;  %v7148_v58 = vpop.permute.xlu1 %4856 }
  0xf8   :  { %10926 = vst [vmem:[#allocation29_spill] sm:$0xff] %v7133_v33  ;;  %10927 = vst [vmem:[#allocation30_spill] sm:$0xff] %v7135_v35  ;;  %v534_v15 = vmul.f32 %v7133_v33, %v6710_v45  ;;  %v535_v21 = vmul.f32 %v7135_v35, %v6715_v46  ;;  %v539_v16 = vmul.f32 %v7133_v33, %v6816_v26 }
  0xf9   :  { %v550_v20 = vmul.f32 %v7135_v35, %v6870_v44 }
  0xfa   :  { %v5145_v43 = vpack.i.bf16 %v535_v21, %v534_v15  ;;  %v5155_v24 = vpack.i.bf16 %v539_v16, %v538_v7  ;;  %v540_v15 = vmul.f32 %v7135_v35, %v6821_v27  ;;  %v544_v7 = vmul.f32 %v7133_v33, %v6853_v37 }
  0xfb   :  { %5121 = vrot.lane.b32.xlu0 %v5120_v17, %s6574_s26  ;;  %5126 = vrot.lane.b32.xlu1 %v5125_v6, %s6574_s26  ;;  %v7150_v17 = vpop.permute.xlu0 %4851  ;;  %v537_v6 = vmul.f32 %v7076_v22, %v6832_v32 }
  0xfd   :  { %v5150_v56 = vpack.i.bf16 %v537_v6, %v7158_v49  ;;  %v5160_v6 = vpack.i.bf16 %v7158_v49, %v540_v15 }
  0xff   :  { %5131 = vrot.lane.b32.xlu0 %v5130_v40, %s6574_s26  ;;  %5136 = vrot.lane.b32.xlu1 %v5135_v19, %s6574_s26  ;;  %v542_v19 = vmul.f32 %v7076_v22, %v6841_v34  ;;  %v7166_v40 = vpop.permute.xlu1 %4866  ;;  %v7168_v1 = vpop.permute.xlu0 %4861 }
 0x101   :  { %v5165_v16 = vpack.i.bf16 %v543_v23, %v542_v19 }
 0x103   :  { %5141 = vrot.lane.b32.xlu0 %v5140_v28, %s6575_s27  ;;  %5146 = vrot.lane.b32.xlu1 %v5145_v43, %s6575_s27  ;;  %v547_v43 = vmul.f32 %v7076_v22, %v6895_v0  ;;  %v545_v28 = vmul.f32 %v7135_v35, %v6748_v59 }
 0x105   :  { %v7179_v39 = vpop.permute.xlu1 %4876  ;;  %v7181_v21 = vpop.permute.xlu0 %4871  ;;  %v5170_v15 = vpack.i.bf16 %v545_v28, %v544_v7  ;;  %v5175_v23 = vpack.i.bf16 %v547_v43, %v7158_v49  ;;  %v589_v7 = vmul.f32 %v7108_v30, %v6720_v47 }
 0x107   :  { %5151 = vrot.lane.b32.xlu0 %v5150_v56, %s6575_s27  ;;  %5156 = vrot.lane.b32.xlu1 %v5155_v24, %s6575_s27  ;;  %v548_v24 = vmul.f32 %v7125_v4, %v6877_v50  ;;  %v549_v56 = vmul.f32 %v7133_v33, %v6864_v42  ;;  %v7212_v33 = vsel %vm580_vm6, %v7108_v30, %v7106_v29 }
 0x108   :  { %10931 = vst [vmem:[#allocation34_spill] sm:$0xff] %v7212_v33  ;;  %v590_v4 = vmul.f32 %v7212_v33, %v6725_v48 }
 0x109   :  { %v5180_v43 = vpack.i.bf16 %v549_v56, %v548_v24  ;;  %v594_v24 = vmul.f32 %v7108_v30, %v6832_v32  ;;  %v595_v56 = vmul.f32 %v7212_v33, %v6811_v25 }
 0x10a   :  { %v5190_v31 = vpack.i.bf16 %v590_v4, %v589_v7  ;;  %v600_v7 = vmul.f32 %v7212_v33, %v6848_v36 }
 0x10b   :  { %5161 = vrot.lane.b32.xlu0 %v5160_v6, %s6575_s27  ;;  %5166 = vrot.lane.b32.xlu1 %v5165_v16, %s6575_s27  ;;  %v7203_v6 = vsel %vm580_vm6, %v7106_v29, %v577_v9  ;;  %v7207_v16 = vsel %vm580_vm6, %v577_v9, %v7127_v8  ;;  %v5185_v9 = vpack.i.bf16 %v7158_v49, %v550_v20  ;;  %v7236_v20 = vmul.f32 0.0, %v7127_v8 }
 0x10c   :  { %10929 = vst [vmem:[#allocation32_spill] sm:$0xff] %v7203_v6  ;;  %10930 = vst [vmem:[#allocation33_spill] sm:$0xff] %v7207_v16  ;;  %v591_v29 = vmul.f32 %v7203_v6, %v6710_v45  ;;  %v597_v4 = vmul.f32 %v7207_v16, %v6821_v27 }
 0x10d   :  { %v7194_v22 = vpop.permute.xlu1 %4886  ;;  %v7196_v19 = vpop.permute.xlu0 %4881  ;;  %10932 = vst [vmem:[#allocation35_spill] sm:$0xff] %v7236_v20  ;;  %v5200_v38 = vpack.i.bf16 %v594_v24, %v7236_v20 }
 0x10f   :  { %5171 = vrot.lane.b32.xlu0 %v5170_v15, %s6575_s27  ;;  %5176 = vrot.lane.b32.xlu1 %v5175_v23, %s6575_s27  ;;  %v592_v15 = vmul.f32 %v7207_v16, %v6715_v46 }
 0x111   :  { %v7218_v28 = vpop.permute.xlu1 %4896  ;;  %v7220_v35 = vpop.permute.xlu0 %4891  ;;  %v5195_v18 = vpack.i.bf16 %v592_v15, %v591_v29  ;;  %v5210_v15 = vpack.i.bf16 %v7236_v20, %v597_v4 }
 0x113   :  { %5181 = vrot.lane.b32.xlu0 %v5180_v43, %s6575_s27  ;;  %5186 = vrot.lane.b32.xlu1 %v5185_v9, %s6575_s27  ;;  %v596_v43 = vmul.f32 %v7203_v6, %v6816_v26  ;;  %v599_v9 = vmul.f32 %v7108_v30, %v6841_v34 }
 0x115   :  { %v7238_v23 = vpop.permute.xlu1 %4901  ;;  %v7240_v49 = vpop.permute.xlu0 %4906  ;;  %v5205_v2 = vpack.i.bf16 %v596_v43, %v595_v56  ;;  %v5215_v24 = vpack.i.bf16 %v600_v7, %v599_v9  ;;  %v601_v56 = vmul.f32 %v7203_v6, %v6853_v37  ;;  %v602_v43 = vmul.f32 %v7207_v16, %v6748_v59 }
 0x117   :  { %5191 = vrot.lane.b32.xlu0 %v5190_v31, %s6576_s28  ;;  %5196 = vrot.lane.b32.xlu1 %v5195_v18, %s6576_s28  ;;  %v604_v31 = vmul.f32 %v7108_v30, %v6895_v0  ;;  %v5220_v7 = vpack.i.bf16 %v602_v43, %v601_v56 }
 0x119   :  { %v7248_v10 = vpop.permute.xlu1 %4911  ;;  %v7250_v8 = vpop.permute.xlu0 %4916  ;;  %v5225_v30 = vpack.i.bf16 %v604_v31, %v7236_v20  ;;  %v7301_v31 = vmul.f32 0.0, %v6737_v52 }
 0x11b   :  { %5201 = vrot.lane.b32.xlu0 %v5200_v38, %s6576_s28  ;;  %5206 = vrot.lane.b32.xlu1 %v5205_v2, %s6576_s28  ;;  %v7275_v38 = vsel %vm161_vm7, %v6737_v52, %v6741_v54  ;;  %v605_v2 = vmul.f32 %v7212_v33, %v6877_v50  ;;  %v7296_v33 = vsel %vm161_vm7, %v6735_v51, %v6739_v53 }
 0x11c   :  { %10933 = vst [vmem:[#allocation36_spill] sm:$0xff] %v7275_v38  ;;  %10935 = vst [vmem:[#allocation38_spill] sm:$0xff] %v7296_v33  ;;  %v171_v56 = vmul.f32 %v7275_v38, %v6720_v47  ;;  %v172_v51 = vmul.f32 %v7291_v5, %v6725_v48  ;;  %v174_v47 = vmul.f32 %v6739_v53, %v6715_v46 }
 0x11d   :  { %v7261_v18 = vpop.permute.xlu1 %4926  ;;  %v7263_v29 = vpop.permute.xlu0 %4921  ;;  %v176_v48 = vmul.f32 %v7275_v38, %v6832_v32  ;;  %v179_v32 = vmul.f32 %v6739_v53, %v6821_v27 }
 0x11f   :  { %5211 = vrot.lane.b32.xlu0 %v5210_v15, %s6576_s28  ;;  %5216 = vrot.lane.b32.xlu1 %v5215_v24, %s6576_s28  ;;  %v606_v15 = vmul.f32 %v7203_v6, %v6864_v42  ;;  %v607_v24 = vmul.f32 %v7207_v16, %v6870_v44 }
 0x121   :  { %v7279_v4 = vpop.permute.xlu1 %4936  ;;  %v7281_v9 = vpop.permute.xlu0 %4931  ;;  %v5230_v54 = vpack.i.bf16 %v606_v15, %v605_v2  ;;  %v5235_v6 = vpack.i.bf16 %v7236_v20, %v607_v24  ;;  %v5240_v2 = vpack.i.bf16 %v171_v56, %v7301_v31  ;;  %v178_v56 = vmul.f32 %v7296_v33, %v6816_v26 }
 0x122   :  { %v4873_v20 = vunpack.i.l.bf16 %v7181_v21 }
 0x123   :  { %5221 = vrot.lane.b32.xlu0 %v5220_v7, %s6576_s28  ;;  %5226 = vrot.lane.b32.xlu1 %v5225_v30, %s6576_s28  ;;  %v173_v7 = vmul.f32 %v7296_v33, %v6710_v45  ;;  %v177_v45 = vmul.f32 %v7291_v5, %v6811_v25  ;;  %v181_v25 = vmul.f32 %v7275_v38, %v6841_v34 }
 0x124   :  { %v5260_v26 = vpack.i.bf16 %v179_v32, %v178_v56  ;;  %v184_v34 = vmul.f32 %v6739_v53, %v6748_v59  ;;  %v4894_v59 = vunpack.i.h.bf16 %v7220_v35 }
 0x125   :  { %v7305_v43 = vpop.permute.xlu1 %4941  ;;  %v7307_v16 = vpop.permute.xlu0 %4946  ;;  %v5245_v15 = vpack.i.bf16 %v173_v7, %v172_v51  ;;  %v182_v51 = vmul.f32 %v7291_v5, %v6848_v36  ;;  %v183_v7 = vmul.f32 %v7296_v33, %v6853_v37  ;;  %v5265_v27 = vpack.i.bf16 %v181_v25, %v7301_v31 }
 0x126   :  { %v186_v36 = vmul.f32 %v7275_v38, %v6895_v0  ;;  %v187_v37 = vmul.f32 %v7291_v5, %v6877_v50  ;;  %v5275_v0 = vpack.i.bf16 %v7301_v31, %v184_v34  ;;  %v4899_v50 = vunpack.i.h.bf16 %v7218_v28 }
 0x127   :  { %5231 = vrot.lane.b32.xlu0 %v5230_v54, %s6576_s28  ;;  %5236 = vrot.lane.b32.xlu1 %v5235_v6, %s6576_s28  ;;  %v5250_v6 = vpack.i.bf16 %v7301_v31, %v174_v47  ;;  %v5255_v54 = vpack.i.bf16 %v177_v45, %v176_v48  ;;  %v188_v48 = vmul.f32 %v7296_v33, %v6864_v42  ;;  %v4863_v42 = vunpack.i.l.bf16 %v7168_v1 }
 0x128   :  { %v189_v45 = vmul.f32 %v6739_v53, %v6870_v44  ;;  %v5280_v44 = vpack.i.bf16 %v187_v37, %v186_v36  ;;  %v4864_v36 = vunpack.i.h.bf16 %v7168_v1  ;;  %v4914_v1 = vunpack.i.h.bf16 %v7248_v10 }
 0x129   :  { %v7318_v52 = vpop.permute.xlu1 %4951  ;;  %v7320_v30 = vpop.permute.xlu0 %4956 }
 0x12a   :  { %v5285_v25 = vpack.i.bf16 %v189_v45, %v188_v48  ;;  %v4909_v45 = vunpack.i.h.bf16 %v7240_v49 }
 0x12b   :  { %5241 = vrot.lane.b32.xlu0 %v5240_v2, %s6571_s24  ;;  %5246 = vrot.lane.b32.xlu1 %v5245_v15, %s6571_s24  ;;  %v5270_v15 = vpack.i.bf16 %v183_v7, %v182_v51  ;;  %v4904_v7 = vunpack.i.h.bf16 %v7238_v23 }
 0x12d   :  { %v7330_v46 = vpop.permute.xlu1 %4966  ;;  %v7332_v24 = vpop.permute.xlu0 %4961 }
 0x12f   :  { %5251 = vrot.lane.b32.xlu0 %v5250_v6, %s6571_s24  ;;  %5256 = vrot.lane.b32.xlu1 %v5255_v54, %s6571_s24  ;;  %v4898_v6 = vunpack.i.l.bf16 %v7218_v28  ;;  %v4893_v54 = vunpack.i.l.bf16 %v7220_v35 }
 0x131   :  { %v7346_v47 = vpop.permute.xlu1 %4976  ;;  %v7348_v2 = vpop.permute.xlu0 %4971  ;;  %v670_v51 = vsel %vm332_vm2, %v4894_v59, %v4898_v6  ;;  %v669_v35 = vsel %vm332_vm2, %v4893_v54, %v4894_v59  ;;  %v671_v28 = vsel %vm332_vm2, %v4898_v6, %v4899_v50 }
 0x132   :  { %v5290_v37 = vpack.i.bf16 %v670_v51, %v669_v35  ;;  %v4919_v51 = vunpack.i.h.bf16 %v7250_v8 }
 0x133   :  { %5261 = vrot.lane.b32.xlu0 %v5260_v26, %s6571_s24  ;;  %5266 = vrot.lane.b32.xlu1 %v5265_v27, %s6571_s24  ;;  %v4903_v26 = vunpack.i.l.bf16 %v7238_v23 }
 0x135   :  { %v7366_v56 = vpop.permute.xlu1 %4981  ;;  %v7368_v32 = vpop.permute.xlu0 %4986  ;;  %v673_v48 = vsel %vm332_vm2, %v4864_v36, %v4903_v26  ;;  %v674_v23 = vsel %vm332_vm2, %v4903_v26, %v4904_v7  ;;  %v4923_v36 = vunpack.i.l.bf16 %v7263_v29 }
 0x137   :  { %5271 = vrot.lane.b32.xlu0 %v5270_v15, %s6571_s24  ;;  %5276 = vrot.lane.b32.xlu1 %v5275_v0, %s6571_s24  ;;  %v672_v15 = vsel %vm332_vm2, %v4899_v50, %v4863_v42  ;;  %v4908_v0 = vunpack.i.l.bf16 %v7240_v49 }
 0x138   :  { %v5295_v54 = vpack.i.bf16 %v672_v15, %v671_v28  ;;  %v5300_v28 = vpack.i.bf16 %v673_v48, %v4863_v42  ;;  %v4928_v42 = vunpack.i.l.bf16 %v7261_v18 }
 0x139   :  { %v7379_v27 = vpop.permute.xlu1 %4991  ;;  %v7381_v34 = vpop.permute.xlu0 %4996  ;;  %v675_v50 = vsel %vm332_vm2, %v4904_v7, %v4908_v0  ;;  %v676_v7 = vsel %vm332_vm2, %v4908_v0, %v4909_v45  ;;  %v4924_v0 = vunpack.i.h.bf16 %v7263_v29 }
 0x13a   :  { %v5305_v26 = vpack.i.bf16 %v675_v50, %v674_v23  ;;  %v5310_v48 = vpack.i.bf16 %v4909_v45, %v676_v7 }
 0x13b   :  { %5281 = vrot.lane.b32.xlu0 %v5280_v44, %s6571_s24  ;;  %5286 = vrot.lane.b32.xlu1 %v5285_v25, %s6571_s24  ;;  %v4913_v44 = vunpack.i.l.bf16 %v7248_v10  ;;  %v4918_v25 = vunpack.i.l.bf16 %v7250_v8  ;;  %v4869_v8 = vunpack.i.h.bf16 %v7166_v40  ;;  %v682_v45 = vsel %vm332_vm2, %v4923_v36, %v4924_v0 }
 0x13d   :  { %v7392_v59 = vpop.permute.xlu1 %5011  ;;  %v7394_v6 = vpop.permute.xlu0 %5001  ;;  %v677_v15 = vsel %vm332_vm2, %v4913_v44, %v4914_v1  ;;  %v678_v10 = vsel %vm332_vm2, %v4914_v1, %v4918_v25  ;;  %v679_v50 = vsel %vm332_vm2, %v4918_v25, %v4919_v51  ;;  %v4939_v25 = vunpack.i.h.bf16 %v7279_v4 }
 0x13f   :  { %5291 = vrot.lane.b32.xlu0 %v5290_v37, %s6571_s24  ;;  %5296 = vrot.lane.b32.xlu1 %v5295_v54, %s6571_s24  ;;  %v4868_v37 = vunpack.i.l.bf16 %v7166_v40  ;;  %v4929_v54 = vunpack.i.h.bf16 %v7261_v18  ;;  %v683_v18 = vsel %vm332_vm2, %v4924_v0, %v4928_v42 }
 0x141   :  { %v7403_v49 = vpop.permute.xlu1 %5016  ;;  %v7405_v35 = vpop.permute.xlu0 %5006  ;;  %v680_v23 = vsel %vm332_vm2, %v4919_v51, %v4868_v37  ;;  %v684_v40 = vsel %vm332_vm2, %v4928_v42, %v4929_v54  ;;  %v4938_v51 = vunpack.i.l.bf16 %v7279_v4  ;;  %v4948_v42 = vunpack.i.l.bf16 %v7307_v16 }
 0x142   :  { %v5320_v29 = vpack.i.bf16 %v680_v23, %v679_v50  ;;  %v5330_v23 = vpack.i.bf16 %v683_v18, %v682_v45  ;;  %v749_v18 = vsel %vm745_vm8, %v4939_v25, %v4873_v20 }
 0x143   :  { %5306 = vrot.lane.b32.xlu1 %v5305_v26, %s6571_s24  ;;  %5301 = vrot.lane.b32.xlu0 %v5300_v28, %s6571_s24  ;;  %v5315_v26 = vpack.i.bf16 %v678_v10, %v677_v15  ;;  %v681_v28 = vsel %vm332_vm2, %v4869_v8, %v4923_v36  ;;  %v4934_v8 = vunpack.i.h.bf16 %v7281_v9  ;;  %v5335_v36 = vpack.i.bf16 %v4929_v54, %v684_v40 }
 0x144   :  { %v5325_v10 = vpack.i.bf16 %v681_v28, %v4868_v37  ;;  %v748_v37 = vsel %vm745_vm8, %v4938_v51, %v4939_v25  ;;  %v4874_v54 = vunpack.i.h.bf16 %v7181_v21  ;;  %v4933_v40 = vunpack.i.l.bf16 %v7281_v9 }
 0x145   :  { %v7420_v1 = vpop.permute.xlu1 %5026  ;;  %v7422_v44 = vpop.permute.xlu0 %5021  ;;  %v747_v50 = vsel %vm745_vm8, %v4934_v8, %v4938_v51  ;;  %v4958_v21 = vunpack.i.l.bf16 %v7320_v30  ;;  %v4963_v25 = vunpack.i.l.bf16 %v7332_v24 }
 0x147   :  { %5316 = vrot.lane.b32.xlu1 %v5315_v26, %s6571_s24  ;;  %5311 = vrot.lane.b32.xlu0 %v5310_v48, %s6571_s24  ;;  %v4944_v48 = vunpack.i.h.bf16 %v7305_v43  ;;  %v4943_v26 = vunpack.i.l.bf16 %v7305_v43 }
 0x149   :  { %v7432_v7 = vpop.permute.xlu1 %5036  ;;  %v7434_v15 = vpop.permute.xlu0 %5031  ;;  %v751_v28 = vsel %vm745_vm8, %v4943_v26, %v4944_v48  ;;  %v752_v43 = vsel %vm745_vm8, %v4944_v48, %v4948_v42  ;;  %v5340_v48 = vpack.i.bf16 %v748_v37, %v747_v50  ;;  %v750_v53 = vsel %vm745_vm8, %v4874_v54, %v4943_v26 }
 0x14a   :  { %v5355_v26 = vpack.i.bf16 %v4873_v20, %v749_v18  ;;  %v4968_v54 = vunpack.i.l.bf16 %v7330_v46 }
 0x14b   :  { %5326 = vrot.lane.b32.xlu1 %v5325_v10, %s6571_s24  ;;  %5321 = vrot.lane.b32.xlu0 %v5320_v29, %s6571_s24  ;;  %v4949_v29 = vunpack.i.h.bf16 %v7307_v16  ;;  %v5345_v10 = vpack.i.bf16 %v752_v43, %v751_v28  ;;  %v746_v16 = vsel %vm745_vm8, %v4933_v40, %v4934_v8  ;;  %v4879_v8 = vunpack.i.h.bf16 %v7179_v39 }
 0x14c   :  { %v5350_v50 = vpack.i.bf16 %v750_v53, %v746_v16 }
 0x14d   :  { %v7442_v4 = vpop.permute.xlu1 %5046  ;;  %v7444_v0 = vpop.permute.xlu0 %5041  ;;  %v753_v9 = vsel %vm745_vm8, %v4948_v42, %v4949_v29  ;;  %v4953_v42 = vunpack.i.l.bf16 %v7318_v52  ;;  %v758_v20 = vsel %vm745_vm8, %v4879_v8, %v4963_v25  ;;  %v4983_v8 = vunpack.i.l.bf16 %v7366_v56 }
 0x14e   :  { %v5360_v40 = vpack.i.bf16 %v4949_v29, %v753_v9 }
 0x14f   :  { %5336 = vrot.lane.b32.xlu1 %v5335_v36, %s6571_s24  ;;  %5331 = vrot.lane.b32.xlu0 %v5330_v23, %s6571_s24  ;;  %v4954_v36 = vunpack.i.h.bf16 %v7318_v52  ;;  %v4959_v23 = vunpack.i.h.bf16 %v7320_v30 }
 0x151   :  { %v7457_v45 = vpop.permute.xlu1 %5056  ;;  %v7459_v51 = vpop.permute.xlu0 %5051  ;;  %v755_v43 = vsel %vm745_vm8, %v4954_v36, %v4958_v21  ;;  %v756_v30 = vsel %vm745_vm8, %v4958_v21, %v4959_v23  ;;  %v4878_v21 = vunpack.i.l.bf16 %v7179_v39  ;;  %v4974_v39 = vunpack.i.h.bf16 %v7348_v2 }
 0x153   :  { %5346 = vrot.lane.b32.xlu1 %v5345_v10, %s6571_s24  ;;  %5341 = vrot.lane.b32.xlu0 %v5340_v48, %s6571_s24  ;;  %v4964_v10 = vunpack.i.h.bf16 %v7332_v24  ;;  %v5365_v48 = vpack.i.bf16 %v756_v30, %v755_v43  ;;  %v4969_v24 = vunpack.i.h.bf16 %v7330_v46  ;;  %v757_v29 = vsel %vm745_vm8, %v4959_v23, %v4878_v21 }
 0x154   :  { %v4978_v43 = vunpack.i.l.bf16 %v7346_v47  ;;  %v4988_v23 = vunpack.i.l.bf16 %v7368_v32 }
 0x155   :  { %v7470_v28 = vpop.permute.xlu1 %5066  ;;  %v7472_v37 = vpop.permute.xlu0 %5061  ;;  %v760_v16 = vsel %vm745_vm8, %v4964_v10, %v4968_v54  ;;  %v759_v52 = vsel %vm745_vm8, %v4963_v25, %v4964_v10  ;;  %v4984_v10 = vunpack.i.h.bf16 %v7366_v56 }
 0x156   :  { %v5370_v25 = vpack.i.bf16 %v760_v16, %v759_v52  ;;  %v4884_v52 = vunpack.i.h.bf16 %v7196_v19 }
 0x157   :  { %5356 = vrot.lane.b32.xlu1 %v5355_v26, %s6571_s24  ;;  %5351 = vrot.lane.b32.xlu0 %v5350_v50, %s6571_s24  ;;  %v754_v26 = vsel %vm745_vm8, %v4953_v42, %v4954_v36  ;;  %v4979_v50 = vunpack.i.h.bf16 %v7346_v47  ;;  %v761_v36 = vsel %vm745_vm8, %v4968_v54, %v4969_v24  ;;  %v5380_v54 = vpack.i.bf16 %v4878_v21, %v757_v29 }
 0x158   :  { %v5375_v9 = vpack.i.bf16 %v758_v20, %v754_v26  ;;  %v5385_v47 = vpack.i.bf16 %v4969_v24, %v761_v36  ;;  %v827_v16 = vsel %vm218_vm0, %v4983_v8, %v4984_v10  ;;  %v828_v56 = vsel %vm218_vm0, %v4984_v10, %v4988_v23 }
 0x159   :  { %v7483_v53 = vpop.permute.xlu1 %5076  ;;  %v7485_v18 = vpop.permute.xlu0 %5071  ;;  %v824_v42 = vsel %vm218_vm0, %v4978_v43, %v4979_v50  ;;  %v4883_v24 = vunpack.i.l.bf16 %v7196_v19  ;;  %v4973_v26 = vunpack.i.l.bf16 %v7348_v2  ;;  %v4998_v21 = vunpack.i.l.bf16 %v7381_v34 }
 0x15a   :  { %v5395_v10 = vpack.i.bf16 %v828_v56, %v827_v16  ;;  %v4999_v19 = vunpack.i.h.bf16 %v7381_v34  ;;  %v5013_v34 = vunpack.i.l.bf16 %v7392_v59  ;;  %v5004_v56 = vunpack.i.h.bf16 %v7394_v6 }
 0x15b   :  { %5366 = vrot.lane.b32.xlu1 %v5365_v48, %s6571_s24  ;;  %5361 = vrot.lane.b32.xlu0 %v5360_v40, %s6571_s24  ;;  %v823_v40 = vsel %vm218_vm0, %v4974_v39, %v4978_v43  ;;  %v4989_v43 = vunpack.i.h.bf16 %v7368_v32  ;;  %v822_v2 = vsel %vm218_vm0, %v4973_v26, %v4974_v39  ;;  %v4889_v39 = vunpack.i.h.bf16 %v7194_v22 }
 0x15d   :  { %v7498_v46 = vpop.permute.xlu1 %5086  ;;  %v7500_v30 = vpop.permute.xlu0 %5081  ;;  %v829_v32 = vsel %vm218_vm0, %v4988_v23, %v4989_v43  ;;  %v4993_v23 = vunpack.i.l.bf16 %v7379_v27 }
 0x15e   :  { %v5410_v26 = vpack.i.bf16 %v4989_v43, %v829_v32  ;;  %v4854_v43 = vunpack.i.h.bf16 %v7150_v17 }
 0x15f   :  { %5376 = vrot.lane.b32.xlu1 %v5375_v9, %s6571_s24  ;;  %5371 = vrot.lane.b32.xlu0 %v5370_v25, %s6571_s24  ;;  %v5390_v9 = vpack.i.bf16 %v824_v42, %v823_v40  ;;  %v4994_v25 = vunpack.i.h.bf16 %v7379_v27  ;;  %v4858_v27 = vunpack.i.l.bf16 %v7148_v58 }
 0x161   :  { %v7510_v20 = vpop.permute.xlu1 %5096  ;;  %v7512_v48 = vpop.permute.xlu0 %5091  ;;  %v831_v42 = vsel %vm218_vm0, %v4994_v25, %v4998_v21  ;;  %v830_v32 = vsel %vm218_vm0, %v4993_v23, %v4994_v25 }
 0x163   :  { %5386 = vrot.lane.b32.xlu1 %v5385_v47, %s6571_s24  ;;  %5381 = vrot.lane.b32.xlu0 %v5380_v54, %s6571_s24  ;;  %v825_v47 = vsel %vm218_vm0, %v4979_v50, %v4883_v24  ;;  %v826_v54 = vsel %vm218_vm0, %v4884_v52, %v4983_v8  ;;  %v832_v8 = vsel %vm218_vm0, %v4998_v21, %v4999_v19  ;;  %v5003_v52 = vunpack.i.l.bf16 %v7394_v6 }
 0x164   :  { %v5405_v16 = vpack.i.bf16 %v4883_v24, %v825_v47  ;;  %v5400_v50 = vpack.i.bf16 %v826_v54, %v822_v2  ;;  %v5415_v21 = vpack.i.bf16 %v832_v8, %v831_v42  ;;  %v836_v47 = vsel %vm218_vm0, %v5004_v56, %v5013_v34 }
 0x165   :  { %v7524_v29 = vpop.permute.xlu1 %5106  ;;  %v7526_v36 = vpop.permute.xlu0 %5101  ;;  %v834_v6 = vsel %vm218_vm0, %v4889_v39, %v5003_v52  ;;  %v835_v54 = vsel %vm218_vm0, %v5003_v52, %v5004_v56  ;;  %v4888_v2 = vunpack.i.l.bf16 %v7194_v22  ;;  %v5018_v52 = vunpack.i.l.bf16 %v7403_v49 }
 0x166   :  { %v5425_v8 = vpack.i.bf16 %v834_v6, %v830_v32  ;;  %v5420_v22 = vpack.i.bf16 %v836_v47, %v835_v54  ;;  %v5009_v39 = vunpack.i.h.bf16 %v7405_v35 }
 0x167   :  { %5396 = vrot.lane.b32.xlu1 %v5395_v10, %s6571_s24  ;;  %5391 = vrot.lane.b32.xlu0 %v5390_v9, %s6571_s24  ;;  %v5014_v10 = vunpack.i.h.bf16 %v7392_v59  ;;  %v4853_v59 = vunpack.i.l.bf16 %v7150_v17  ;;  %v833_v42 = vsel %vm218_vm0, %v4999_v19, %v4888_v2  ;;  %v4859_v17 = vunpack.i.h.bf16 %v7148_v58 }
 0x168   :  { %v890_v6 = vsel %vm161_vm7, %v5009_v39, %v5018_v52 }
 0x169   :  { %v7536_v40 = vpop.permute.xlu1 %5116  ;;  %v7538_v33 = vpop.permute.xlu0 %5111  ;;  %v837_v56 = vsel %vm218_vm0, %v5013_v34, %v5014_v10  ;;  %v887_v34 = vsel %vm161_vm7, %v4854_v43, %v4858_v27  ;;  %v886_v47 = vsel %vm161_vm7, %v4853_v59, %v4854_v43  ;;  %v888_v58 = vsel %vm161_vm7, %v4858_v27, %v4859_v17 }
 0x16a   :  { %v5435_v25 = vpack.i.bf16 %v5014_v10, %v837_v56  ;;  %v5028_v43 = vunpack.i.l.bf16 %v7420_v1  ;;  %v5455_v56 = vpack.i.bf16 %v4859_v17, %v888_v58 }
 0x16b   :  { %5406 = vrot.lane.b32.xlu1 %v5405_v16, %s6571_s24  ;;  %5401 = vrot.lane.b32.xlu0 %v5400_v50, %s6571_s24 }
 0x16d   :  { %v7548_v9 = vpop.permute.xlu1 %5126  ;;  %v7550_v24 = vpop.permute.xlu0 %5121 }
 0x16f   :  { %5416 = vrot.lane.b32.xlu1 %v5415_v21, %s6571_s24  ;;  %5411 = vrot.lane.b32.xlu0 %v5410_v26, %s6571_s24  ;;  %v5008_v26 = vunpack.i.l.bf16 %v7405_v35  ;;  %v5430_v21 = vpack.i.bf16 %v4888_v2, %v833_v42  ;;  %v5440_v2 = vpack.i.bf16 %v887_v34, %v886_v47  ;;  %v5019_v42 = vunpack.i.h.bf16 %v7403_v49 }
 0x171   :  { %v7564_v16 = vpop.permute.xlu1 %5136  ;;  %v7566_v50 = vpop.permute.xlu0 %5131  ;;  %v889_v35 = vsel %vm161_vm7, %v5008_v26, %v5009_v39  ;;  %v5450_v27 = vpack.i.bf16 %v5008_v26, %v4853_v59  ;;  %v5038_v39 = vunpack.i.l.bf16 %v7432_v7  ;;  %v891_v47 = vsel %vm161_vm7, %v5018_v52, %v5019_v42 }
 0x172   :  { %v5445_v32 = vpack.i.bf16 %v890_v6, %v889_v35  ;;  %v5029_v35 = vunpack.i.h.bf16 %v7420_v1  ;;  %v5039_v59 = vunpack.i.h.bf16 %v7432_v7  ;;  %v5460_v26 = vpack.i.bf16 %v5019_v42, %v891_v47 }
 0x173   :  { %5426 = vrot.lane.b32.xlu1 %v5425_v8, %s6571_s24  ;;  %5421 = vrot.lane.b32.xlu0 %v5420_v22, %s6571_s24  ;;  %v5024_v8 = vunpack.i.h.bf16 %v7422_v44  ;;  %v5023_v22 = vunpack.i.l.bf16 %v7422_v44  ;;  %v5048_v42 = vunpack.i.l.bf16 %v7442_v4  ;;  %v5058_v47 = vunpack.i.l.bf16 %v7457_v45 }
 0x174   :  { %v897_v1 = vsel %vm161_vm7, %v5038_v39, %v5039_v59 }
 0x175   :  { %v7575_v19 = vpop.permute.xlu1 %5146  ;;  %v7577_v23 = vpop.permute.xlu0 %5141  ;;  %v893_v44 = vsel %vm161_vm7, %v5024_v8, %v5028_v43  ;;  %v892_v6 = vsel %vm161_vm7, %v5023_v22, %v5024_v8  ;;  %v5044_v8 = vunpack.i.h.bf16 %v7444_v0 }
 0x177   :  { %5436 = vrot.lane.b32.xlu1 %v5435_v25, %s6571_s24  ;;  %5431 = vrot.lane.b32.xlu0 %v5430_v21, %s6571_s24  ;;  %v5034_v25 = vunpack.i.h.bf16 %v7434_v15  ;;  %v5033_v21 = vunpack.i.l.bf16 %v7434_v15 }
 0x179   :  { %v7586_v10 = vpop.permute.xlu1 %5156  ;;  %v7588_v54 = vpop.permute.xlu0 %5151  ;;  %v896_v15 = vsel %vm161_vm7, %v5034_v25, %v5038_v39  ;;  %v895_v17 = vsel %vm161_vm7, %v5033_v21, %v5034_v25  ;;  %v5475_v7 = vpack.i.bf16 %v5033_v21, %v5023_v22  ;;  %v5059_v25 = vunpack.i.h.bf16 %v7457_v45 }
 0x17a   :  { %v5485_v21 = vpack.i.bf16 %v5039_v59, %v897_v1  ;;  %v5064_v1 = vunpack.i.h.bf16 %v7472_v37 }
 0x17b   :  { %5446 = vrot.lane.b32.xlu1 %v5445_v32, %s6571_s24  ;;  %5441 = vrot.lane.b32.xlu0 %v5440_v2, %s6571_s24  ;;  %v5465_v32 = vpack.i.bf16 %v893_v44, %v892_v6  ;;  %v894_v2 = vsel %vm161_vm7, %v5028_v43, %v5029_v35  ;;  %v5054_v43 = vunpack.i.h.bf16 %v7459_v51  ;;  %v5053_v6 = vunpack.i.l.bf16 %v7459_v51 }
 0x17c   :  { %v5480_v22 = vpack.i.bf16 %v5029_v35, %v894_v2  ;;  %v964_v45 = vsel %vm958_vm9, %v5058_v47, %v5059_v25  ;;  %v5063_v35 = vunpack.i.l.bf16 %v7472_v37  ;;  %v5068_v37 = vunpack.i.l.bf16 %v7470_v28 }
 0x17d   :  { %v7599_v34 = vpop.permute.xlu1 %5166  ;;  %v7601_v49 = vpop.permute.xlu0 %5161 }
 0x17f   :  { %5456 = vrot.lane.b32.xlu1 %v5455_v56, %s6571_s24  ;;  %5451 = vrot.lane.b32.xlu0 %v5450_v27, %s6571_s24  ;;  %v5470_v56 = vpack.i.bf16 %v896_v15, %v895_v17  ;;  %v5043_v27 = vunpack.i.l.bf16 %v7444_v0  ;;  %v960_v0 = vsel %vm958_vm9, %v5044_v8, %v5048_v42  ;;  %v963_v15 = vsel %vm958_vm9, %v5054_v43, %v5058_v47 }
 0x180   :  { %v5495_v59 = vpack.i.bf16 %v964_v45, %v963_v15  ;;  %v5073_v47 = vunpack.i.l.bf16 %v7485_v18  ;;  %v965_v45 = vsel %vm958_vm9, %v5059_v25, %v5063_v35  ;;  %v5079_v15 = vunpack.i.h.bf16 %v7483_v53 }
 0x181   :  { %v7612_v58 = vpop.permute.xlu1 %5176  ;;  %v7614_v52 = vpop.permute.xlu0 %5171  ;;  %v5098_v25 = vunpack.i.l.bf16 %v7510_v20 }
 0x182   :  { %v5525_v61 = vpack.i.bf16 %v5079_v15, %v5068_v37 }
 0x183   :  { %5466 = vrot.lane.b32.xlu1 %v5465_v32, %s6571_s24  ;;  %5461 = vrot.lane.b32.xlu0 %v5460_v26, %s6571_s24  ;;  %v959_v26 = vsel %vm958_vm9, %v5043_v27, %v5044_v8  ;;  %v5078_v8 = vunpack.i.l.bf16 %v7483_v53 }
 0x184   :  { %v5490_v2 = vpack.i.bf16 %v960_v0, %v959_v26  ;;  %v5069_v0 = vunpack.i.h.bf16 %v7470_v28  ;;  %v5084_v26 = vunpack.i.h.bf16 %v7500_v30 }
 0x185   :  { %v7626_v44 = vpop.permute.xlu1 %5186  ;;  %v7628_v39 = vpop.permute.xlu0 %5181 }
 0x186   :  { %v968_v28 = vsel %vm958_vm9, %v5069_v0, %v5073_v47 }
 0x187   :  { %5476 = vrot.lane.b32.xlu1 %v5475_v7, %s6571_s24  ;;  %5471 = vrot.lane.b32.xlu0 %v5470_v56, %s6571_s24  ;;  %v5049_v7 = vunpack.i.h.bf16 %v7442_v4  ;;  %v5074_v56 = vunpack.i.h.bf16 %v7485_v18 }
 0x189   :  { %v7637_v17 = vpop.permute.xlu1 %5196  ;;  %v7639_v32 = vpop.permute.xlu0 %5191  ;;  %v962_v51 = vsel %vm958_vm9, %v5049_v7, %v5053_v6  ;;  %v5083_v6 = vunpack.i.l.bf16 %v7500_v30  ;;  %v7671_v30 = vsel %vm958_vm9, %v5073_v47, %v5074_v56  ;;  %v967_v47 = vsel %vm958_vm9, %v5068_v37, %v5069_v0 }
 0x18a   :  { %v5515_v11 = vpack.i.bf16 %v968_v28, %v967_v47  ;;  %v5148_v47 = vunpack.i.l.bf16 %v7575_v19 }
 0x18b   :  { %5486 = vrot.lane.b32.xlu1 %v5485_v21, %s6571_s24  ;;  %5481 = vrot.lane.b32.xlu0 %v5480_v22, %s6571_s24  ;;  %v961_v22 = vsel %vm958_vm9, %v5048_v42, %v5049_v7  ;;  %v5500_v21 = vpack.i.bf16 %v5054_v43, %v5043_v27  ;;  %v5089_v42 = vunpack.i.h.bf16 %v7498_v46  ;;  %v5088_v27 = vunpack.i.l.bf16 %v7498_v46 }
 0x18c   :  { %v5505_v18 = vpack.i.bf16 %v962_v51, %v961_v22  ;;  %v966_v43 = vsel %vm958_vm9, %v5063_v35, %v5064_v1  ;;  %v7667_v7 = vsel %vm958_vm9, %v5074_v56, %v5078_v8  ;;  %v971_v53 = vsel %vm958_vm9, %v5079_v15, %v5083_v6 }
 0x18d   :  { %v7650_v5 = vpop.permute.xlu1 %5206  ;;  %v7652_v4 = vpop.permute.xlu0 %5201  ;;  %v5094_v46 = vunpack.i.h.bf16 %v7512_v48  ;;  %v5093_v35 = vunpack.i.l.bf16 %v7512_v48  ;;  %v5109_v1 = vunpack.i.h.bf16 %v7524_v29  ;;  %v5108_v8 = vunpack.i.l.bf16 %v7524_v29 }
 0x18e   :  { %v5104_v56 = vunpack.i.h.bf16 %v7526_v36  ;;  %v974_v22 = vsel %vm958_vm9, %v5088_v27, %v5089_v42  ;;  %v973_v38 = vsel %vm958_vm9, %v5084_v26, %v5088_v27  ;;  %v5103_v48 = vunpack.i.l.bf16 %v7526_v36 }
 0x18f   :  { %5496 = vrot.lane.b32.xlu1 %v5495_v59, %s6571_s24  ;;  %5491 = vrot.lane.b32.xlu0 %v5490_v2, %s6571_s24  ;;  %v972_v2 = vsel %vm958_vm9, %v5083_v6, %v5084_v26  ;;  %v5099_v6 = vunpack.i.h.bf16 %v7510_v20  ;;  %v5510_v41 = vpack.i.bf16 %v966_v43, %v965_v45  ;;  %v5530_v36 = vpack.i.bf16 %v7667_v7, %v7671_v30 }
 0x190   :  { %v5520_v0 = vpack.i.bf16 %v972_v2, %v971_v53  ;;  %v7705_v37 = vsel %vm1035_vm10, %v5108_v8, %v5109_v1  ;;  %v1040_v20 = vsel %vm1035_vm10, %v5104_v56, %v5108_v8  ;;  %v5113_v26 = vunpack.i.l.bf16 %v7538_v33 }
 0x191   :  { %v7673_v59 = vpop.permute.xlu1 %5216  ;;  %v7675_v51 = vpop.permute.xlu0 %5211  ;;  %v5535_v45 = vpack.i.bf16 %v974_v22, %v973_v38  ;;  %v7712_v15 = vsel %vm1035_vm10, %v5099_v6, %v5103_v48  ;;  %v5114_v42 = vunpack.i.h.bf16 %v7538_v33  ;;  %v5128_v27 = vunpack.i.l.bf16 %v7548_v9 }
 0x192   :  { %v5124_v43 = vunpack.i.h.bf16 %v7550_v24  ;;  %v7718_v7 = vsel %vm1035_vm10, %v5098_v25, %v5099_v6  ;;  %v7720_v28 = vpack.i.bf16 %v5104_v56, %v5093_v35  ;;  %v5123_v30 = vunpack.i.l.bf16 %v7550_v24 }
 0x193   :  { %5506 = vrot.lane.b32.xlu1 %v5505_v18, %s6571_s24  ;;  %5501 = vrot.lane.b32.xlu0 %v5500_v21, %s6571_s24  ;;  %v7697_v18 = vsel %vm1035_vm10, %v5094_v46, %v5098_v25  ;;  %v7700_v21 = vsel %vm1035_vm10, %v5093_v35, %v5094_v46  ;;  %v5119_v33 = vunpack.i.h.bf16 %v7536_v40  ;;  %v5118_v53 = vunpack.i.l.bf16 %v7536_v40 }
 0x194   :  { %v5540_v38 = vpack.i.bf16 %v7697_v18, %v7700_v21  ;;  %v5134_v46 = vunpack.i.h.bf16 %v7566_v50  ;;  %v5133_v25 = vunpack.i.l.bf16 %v7566_v50  ;;  %v7734_v35 = vsel %vm1035_vm10, %v5109_v1, %v5113_v26 }
 0x195   :  { %v7692_v3 = vpop.permute.xlu1 %5226  ;;  %v7694_v29 = vpop.permute.xlu0 %5221  ;;  %v5129_v24 = vunpack.i.h.bf16 %v7548_v9  ;;  %v5545_v2 = vpack.i.bf16 %v7705_v37, %v1040_v20  ;;  %v5555_v8 = vpack.i.bf16 %v7712_v15, %v7718_v7  ;;  %v7743_v40 = vsel %vm1035_vm10, %v5113_v26, %v5114_v42 }
 0x196   :  { %v7746_v56 = vsel %vm1035_vm10, %v5124_v43, %v5128_v27  ;;  %v5139_v50 = vunpack.i.h.bf16 %v7564_v16  ;;  %v5138_v1 = vunpack.i.l.bf16 %v7564_v16  ;;  %v7751_v9 = vsel %vm1035_vm10, %v5119_v33, %v5123_v30 }
 0x197   :  { %5516 = vrot.lane.b32.xlu1 %v5515_v11, %s6571_s24  ;;  %5511 = vrot.lane.b32.xlu0 %v5510_v41, %s6571_s24  ;;  %v5144_v22 = vunpack.i.h.bf16 %v7577_v23  ;;  %v7759_v18 = vsel %vm1035_vm10, %v5118_v53, %v5119_v33  ;;  %v7762_v21 = vsel %vm1035_vm10, %v5129_v24, %v5133_v25  ;;  %v7765_v16 = vsel %vm1035_vm10, %v5133_v25, %v5134_v46 }
 0x198   :  { %v7768_v37 = vpack.i.bf16 %v5129_v24, %v5118_v53  ;;  %v7775_v42 = vsel %vm1035_vm10, %v5138_v1, %v5139_v50  ;;  %v7782_v7 = vsel %vm1035_vm10, %v5134_v46, %v5138_v1  ;;  %v5158_v46 = vunpack.i.l.bf16 %v7586_v10 }
 0x199   :  { %v7723_v11 = vpop.permute.xlu1 %5236  ;;  %v7725_v41 = vpop.permute.xlu0 %5231 }
 0x19b   :  { %5526 = vrot.lane.b32.xlu1 %v5525_v61, %s6571_s24  ;;  %5521 = vrot.lane.b32.xlu0 %v5520_v0, %s6571_s24  ;;  %v7754_v61 = vsel %vm1035_vm10, %v5123_v30, %v5124_v43  ;;  %v5143_v0 = vunpack.i.l.bf16 %v7577_v23  ;;  %v5565_v43 = vpack.i.bf16 %v7751_v9, %v7759_v18 }
 0x19d   :  { %v5247_v48 = vpop.permute.xlu1 %5246  ;;  %v5242_v6 = vpop.permute.xlu0 %5241  ;;  %v7791_v25 = vsel %vm1112_vm11, %v5143_v0, %v5144_v22 }
 0x19e   :  { %v5248_v20 = vunpack.i.l.bf16 %v5247_v48  ;;  %v5244_v26 = vunpack.i.h.bf16 %v5242_v6  ;;  %v5243_v27 = vunpack.i.l.bf16 %v5242_v6  ;;  %v5159_v6 = vunpack.i.h.bf16 %v7586_v10 }
 0x19f   :  { %5536 = vrot.lane.b32.xlu1 %v5535_v45, %s6571_s24  ;;  %5531 = vrot.lane.b32.xlu0 %v5530_v36, %s6571_s24  ;;  %v5149_v45 = vunpack.i.h.bf16 %v7575_v19  ;;  %v7786_v36 = vsel %vm1112_vm11, %v5144_v22, %v5148_v47  ;;  %v5249_v1 = vunpack.i.h.bf16 %v5247_v48 }
 0x1a0   :  { %v1587_v19 = vsel %vm580_vm6, %v5244_v26, %v5248_v20  ;;  %v1586_v22 = vsel %vm580_vm6, %v5243_v27, %v5244_v26  ;;  %v7809_v26 = vsel %vm1112_vm11, %v5158_v46, %v5159_v6  ;;  %v5164_v27 = vunpack.i.h.bf16 %v7601_v49 }
 0x1a1   :  { %v5257_v30 = vpop.permute.xlu1 %5256  ;;  %v5252_v33 = vpop.permute.xlu0 %5251 }
 0x1a2   :  { %v5259_v24 = vunpack.i.h.bf16 %v5257_v30  ;;  %v5258_v50 = vunpack.i.l.bf16 %v5257_v30  ;;  %v5254_v9 = vunpack.i.h.bf16 %v5252_v33  ;;  %v5253_v18 = vunpack.i.l.bf16 %v5252_v33 }
 0x1a3   :  { %5546 = vrot.lane.b32.xlu1 %v5545_v2, %s6571_s24  ;;  %5541 = vrot.lane.b32.xlu0 %v5540_v38, %s6571_s24  ;;  %v7802_v30 = vsel %vm1112_vm11, %v5148_v47, %v5149_v45  ;;  %v5585_v2 = vpack.i.bf16 %v7775_v42, %v7782_v7  ;;  %v5154_v38 = vunpack.i.h.bf16 %v7588_v54  ;;  %v5153_v33 = vunpack.i.l.bf16 %v7588_v54 }
 0x1a4   :  { %v1591_v23 = vsel %vm580_vm6, %v5258_v50, %v5259_v24  ;;  %v1590_v53 = vsel %vm580_vm6, %v5254_v9, %v5258_v50  ;;  %v1588_v47 = vsel %vm580_vm6, %v5248_v20, %v5249_v1  ;;  %v5178_v9 = vunpack.i.l.bf16 %v7612_v58 }
 0x1a5   :  { %v5267_v15 = vpop.permute.xlu1 %5266  ;;  %v5262_v63 = vpop.permute.xlu0 %5261  ;;  %v4515_v10 = vpack.c.bf16 %v1591_v23, %v1587_v19  ;;  %v4517_v48 = vpack.c.bf16 %v1590_v53, %v1586_v22  ;;  %v5163_v53 = vunpack.i.l.bf16 %v7601_v49  ;;  %v7825_v49 = vsel %vm1112_vm11, %v5154_v38, %v5158_v46 }
 0x1a6   :  { %v5264_v62 = vunpack.i.h.bf16 %v5262_v63  ;;  %v5263_v55 = vunpack.i.l.bf16 %v5262_v63  ;;  %v1589_v63 = vsel %vm580_vm6, %v5249_v1, %v5253_v18  ;;  %v5269_v1 = vunpack.i.h.bf16 %v5267_v15 }
 0x1a7   :  { %4516 = vmatprep.subr.bf16.mxu0 %v4515_v10  ;;  %5556 = vrot.lane.b32.xlu1 %v5555_v8, %s6571_s24  ;;  %v5174_v8 = vunpack.i.h.bf16 %v7614_v52  ;;  %v5169_v23 = vunpack.i.h.bf16 %v7599_v34  ;;  %v7836_v46 = vsel %vm1112_vm11, %v5159_v6, %v5163_v53 }
 0x1a8   :  { %5551 = vrot.lane.b32.xlu0 %v7720_v28, %s6571_s24  ;;  %4518 = vmatpush1.bf16.msra.mxu0 %v4517_v48  ;;  %v1593_v54 = vsel %vm580_vm6, %v5263_v55, %v5264_v62  ;;  %v1592_v50 = vsel %vm580_vm6, %v5259_v24, %v5263_v55  ;;  %v7828_v28 = vsel %vm1112_vm11, %v5149_v45, %v5153_v33  ;;  %v5268_v62 = vunpack.i.l.bf16 %v5267_v15 }
 0x1a9   :  { %v5277_v20 = vpop.permute.xlu1 %5276  ;;  %v5272_v19 = vpop.permute.xlu0 %5271  ;;  %v4587_v22 = vpack.c.bf16 %v1593_v54, %v1589_v63  ;;  %v4589_v10 = vpack.c.bf16 %v1592_v50, %v1588_v47  ;;  %v7830_v48 = vpack.i.bf16 %v5154_v38, %v5143_v0  ;;  %v5168_v47 = vunpack.i.l.bf16 %v7599_v34 }
 0x1aa   :  { %v5278_v18 = vunpack.i.l.bf16 %v5277_v20  ;;  %v5274_v55 = vunpack.i.h.bf16 %v5272_v19  ;;  %v5273_v24 = vunpack.i.l.bf16 %v5272_v19  ;;  %v7839_v45 = vsel %vm1112_vm11, %v5163_v53, %v5164_v27 }
 0x1ab   :  { %4588 = vmatprep.subr.bf16.mxu1 %v4587_v22  ;;  %5566 = vrot.lane.b32.xlu1 %v5565_v43, %s6571_s24  ;;  %v10936_v0 = vpack.i.bf16 %v7743_v40, %v7734_v35  ;;  %v5179_v15 = vunpack.i.h.bf16 %v7612_v58  ;;  %v7847_v43 = vsel %vm1112_vm11, %v5174_v8, %v5178_v9  ;;  %v5173_v38 = vunpack.i.l.bf16 %v7614_v52 }
 0x1ac   :  { %4590 = vmatpush1.bf16.msra.mxu1 %v4589_v10  ;;  %v5279_v34 = vunpack.i.h.bf16 %v5277_v20  ;;  %v1595_v35 = vsel %vm580_vm6, %v5269_v1, %v5273_v24  ;;  %v1597_v40 = vsel %vm580_vm6, %v5274_v55, %v5278_v18  ;;  %v1594_v50 = vsel %vm580_vm6, %v5268_v62, %v5269_v1 }
 0x1ad   :  { %5561 = vrot.lane.b32.xlu0 %v10936_v0, %s6571_s24  ;;  %v5287_v33 = vpop.permute.xlu1 %5286  ;;  %v5282_v6 = vpop.permute.xlu0 %5281  ;;  %v1596_v9 = vsel %vm580_vm6, %v5273_v24, %v5274_v55  ;;  %v10937_v52 = vpack.i.bf16 %v7765_v16, %v7762_v21  ;;  %v7867_v24 = vsel %vm1112_vm11, %v5169_v23, %v5173_v38  ;;  %v7870_v21 = vsel %vm1112_vm11, %v5173_v38, %v5174_v8 }
 0x1ae   :  { %v5289_v63 = vunpack.i.h.bf16 %v5287_v33  ;;  %v5288_v54 = vunpack.i.l.bf16 %v5287_v33  ;;  %v5284_v27 = vunpack.i.h.bf16 %v5282_v6  ;;  %v5283_v53 = vunpack.i.l.bf16 %v5282_v6 }
 0x1af   :  { %5576 = vrot.lane.b32.xlu1 %v7768_v37, %s6571_s24  ;;  %v5189_v16 = vunpack.i.h.bf16 %v7626_v44  ;;  %v5188_v33 = vunpack.i.l.bf16 %v7626_v44  ;;  %v10938_v44 = vpack.i.bf16 %v7746_v56, %v7754_v61  ;;  %v5605_v38 = vpack.i.bf16 %v7828_v28, %v7802_v30 }
 0x1b0   :  { %v1599_v20 = vsel %vm580_vm6, %v5283_v53, %v5284_v27  ;;  %v1601_v19 = vsel %vm580_vm6, %v5288_v54, %v5289_v63  ;;  %v1598_v22 = vsel %vm580_vm6, %v5279_v34, %v5283_v53  ;;  %v1600_v37 = vsel %vm580_vm6, %v5284_v27, %v5288_v54 }
 0x1b1   :  { %5571 = vrot.lane.b32.xlu0 %v10937_v52, %s6571_s24  ;;  %v5292_v10 = vpop.permute.xlu0 %5291  ;;  %v7864_v0 = vpop.permute.xlu1 %5296  ;;  %v4519_v18 = vpack.c.bf16 %v1599_v20, %v1595_v35  ;;  %v4591_v1 = vpack.c.bf16 %v1601_v19, %v1597_v40  ;;  %v4521_v62 = vpack.c.bf16 %v1598_v22, %v1594_v50  ;;  %v4593_v55 = vpack.c.bf16 %v1600_v37, %v1596_v9 }
 0x1b2   :  { %v5184_v34 = vunpack.i.h.bf16 %v7628_v39  ;;  %v5294_v6 = vunpack.i.h.bf16 %v5292_v10  ;;  %v5298_v63 = vunpack.i.l.bf16 %v7864_v0  ;;  %v5595_v54 = vpack.i.bf16 %v7809_v26, %v7825_v49 }
 0x1b3   :  { %4520 = vmatprep.subr.bf16.mxu0 %v4519_v18  ;;  %4592 = vmatprep.subr.bf16.mxu1 %v4591_v1  ;;  %v7879_v27 = vsel %vm1112_vm11, %v5168_v47, %v5169_v23  ;;  %v5293_v8 = vunpack.i.l.bf16 %v5292_v10  ;;  %v5610_v26 = vpack.i.bf16 %v7839_v45, %v7836_v46  ;;  %v7895_v23 = vpack.i.bf16 %v5179_v15, %v5168_v47 }
 0x1b4   :  { %5586 = vrot.lane.b32.xlu1 %v5585_v2, %s6571_s24  ;;  %v5183_v49 = vunpack.i.l.bf16 %v7628_v39  ;;  %4522 = vmatpush1.bf16.msra.mxu0 %v4521_v62  ;;  %v5615_v56 = vpack.i.bf16 %v7867_v24, %v7879_v27  ;;  %v5630_v61 = vpack.i.bf16 %v7847_v43, %v7870_v21  ;;  %v7903_v30 = vsel %vm1112_vm11, %v5188_v33, %v5189_v16 }
 0x1b5   :  { %5581 = vrot.lane.b32.xlu0 %v10938_v44, %s6571_s24  ;;  %4594 = vmatpush1.bf16.msra.mxu1 %v4593_v55  ;;  %v5307_v42 = vpop.permute.xlu1 %5306  ;;  %v5302_v7 = vpop.permute.xlu0 %5301  ;;  %v7906_v47 = vsel %vm1112_vm11, %v5184_v34, %v5188_v33  ;;  %v5198_v39 = vunpack.i.l.bf16 %v7637_v17  ;;  %v5299_v35 = vunpack.i.h.bf16 %v7864_v0  ;;  %v1603_v40 = vsel %vm580_vm6, %v5294_v6, %v5298_v63 }
 0x1b6   :  { %v5309_v2 = vunpack.i.h.bf16 %v5307_v42  ;;  %v5308_v28 = vunpack.i.l.bf16 %v5307_v42  ;;  %v5304_v53 = vunpack.i.h.bf16 %v5302_v7  ;;  %v5303_v50 = vunpack.i.l.bf16 %v5302_v7 }
 0x1b7   :  { %v10939_v9 = vpack.i.bf16 %v7786_v36, %v7791_v25  ;;  %v1602_v20 = vsel %vm580_vm6, %v5293_v8, %v5294_v6  ;;  %v5194_v22 = vunpack.i.h.bf16 %v7639_v32  ;;  %v5193_v37 = vunpack.i.l.bf16 %v7639_v32 }
 0x1b8   :  { %5596 = vrot.lane.b32.xlu1 %v5595_v54, %s6571_s24  ;;  %v1607_v52 = vsel %vm580_vm6, %v5308_v28, %v5309_v2  ;;  %v1606_v19 = vsel %vm580_vm6, %v5304_v53, %v5308_v28  ;;  %v1125_v62 = vsel %vm1112_vm11, %v5179_v15, %v5183_v49  ;;  %v5199_v36 = vunpack.i.h.bf16 %v7637_v17 }
 0x1b9   :  { %5591 = vrot.lane.b32.xlu0 %v10939_v9, %s6571_s24  ;;  %v5317_v10 = vpop.permute.xlu1 %5316  ;;  %v5312_v0 = vpop.permute.xlu0 %5311  ;;  %v4523_v18 = vpack.c.bf16 %v1607_v52, %v1603_v40  ;;  %v4525_v1 = vpack.c.bf16 %v1606_v19, %v1602_v20  ;;  %v1126_v24 = vsel %vm1112_vm11, %v5183_v49, %v5184_v34  ;;  %v5209_v16 = vunpack.i.h.bf16 %v7650_v5 }
 0x1ba   :  { %v5314_v25 = vunpack.i.h.bf16 %v5312_v0  ;;  %v5313_v55 = vunpack.i.l.bf16 %v5312_v0  ;;  %v5208_v33 = vunpack.i.l.bf16 %v7650_v5  ;;  %v1604_v6 = vsel %vm580_vm6, %v5298_v63, %v5299_v35 }
 0x1bb   :  { %4524 = vmatprep.subr.bf16.mxu0 %v4523_v18  ;;  %v5204_v54 = vunpack.i.h.bf16 %v7652_v4  ;;  %v1605_v58 = vsel %vm580_vm6, %v5299_v35, %v5303_v50  ;;  %v7937_v27 = vsel %vm1189_vm12, %v5194_v22, %v5198_v39  ;;  %v7942_v63 = vsel %vm1189_vm12, %v5193_v37, %v5194_v22 }
 0x1bc   :  { %5606 = vrot.lane.b32.xlu1 %v5605_v38, %s6571_s24  ;;  %v1609_v15 = vsel %vm580_vm6, %v5313_v55, %v5314_v25  ;;  %v1608_v34 = vsel %vm580_vm6, %v5309_v2, %v5313_v55  ;;  %4526 = vmatpush1.bf16.msra.mxu0 %v4525_v1  ;;  %v5319_v42 = vunpack.i.h.bf16 %v5317_v10  ;;  %v5620_v7 = vpack.i.bf16 %v1126_v24, %v1125_v62 }
 0x1bd   :  { %5601 = vrot.lane.b32.xlu0 %v7830_v48, %s6571_s24  ;;  %v5327_v8 = vpop.permute.xlu1 %5326  ;;  %v5322_v44 = vpop.permute.xlu0 %5321  ;;  %v4595_v38 = vpack.c.bf16 %v1609_v15, %v1605_v58  ;;  %v4597_v49 = vpack.c.bf16 %v1608_v34, %v1604_v6  ;;  %v7947_v48 = vsel %vm1189_vm12, %v5198_v39, %v5199_v36  ;;  %v5635_v2 = vpack.i.bf16 %v7903_v30, %v7906_v47 }
 0x1be   :  { %v5318_v28 = vunpack.i.l.bf16 %v5317_v10  ;;  %v5328_v53 = vunpack.i.l.bf16 %v5327_v8  ;;  %v5324_v35 = vunpack.i.h.bf16 %v5322_v44  ;;  %v5323_v40 = vunpack.i.l.bf16 %v5322_v44 }
 0x1bf   :  { %4596 = vmatprep.subr.bf16.mxu1 %v4595_v38  ;;  %v7954_v50 = vsel %vm1189_vm12, %v5208_v33, %v5209_v16  ;;  %v7959_v39 = vsel %vm1189_vm12, %v5204_v54, %v5208_v33  ;;  %v5203_v9 = vunpack.i.l.bf16 %v7652_v4  ;;  %v5640_v30 = vpack.i.bf16 %v7937_v27, %v7942_v63 }
 0x1c0   :  { %5616 = vrot.lane.b32.xlu1 %v5615_v56, %s6571_s24  ;;  %v5219_v47 = vunpack.i.h.bf16 %v7673_v59  ;;  %v5218_v52 = vunpack.i.l.bf16 %v7673_v59  ;;  %v5213_v20 = vunpack.i.l.bf16 %v7675_v51  ;;  %v5329_v19 = vunpack.i.h.bf16 %v5327_v8  ;;  %4598 = vmatpush1.bf16.msra.mxu1 %v4597_v49 }
 0x1c1   :  { %5611 = vrot.lane.b32.xlu0 %v5610_v26, %s6571_s24  ;;  %v5337_v22 = vpop.permute.xlu1 %5336  ;;  %v5332_v10 = vpop.permute.xlu0 %5331  ;;  %v1611_v46 = vsel %vm580_vm6, %v5319_v42, %v5323_v40  ;;  %v1613_v45 = vsel %vm580_vm6, %v5324_v35, %v5328_v53  ;;  %v1610_v26 = vsel %vm580_vm6, %v5318_v28, %v5319_v42  ;;  %v1612_v62 = vsel %vm580_vm6, %v5323_v40, %v5324_v35  ;;  %v78_v35 = vld [vmem:[%s10727_s2 + $0x8] sm:$0xff] }
 0x1c2   :  { %v5339_v0 = vunpack.i.h.bf16 %v5337_v22  ;;  %v5338_v56 = vunpack.i.l.bf16 %v5337_v22  ;;  %v5334_v18 = vunpack.i.h.bf16 %v5332_v10  ;;  %v5333_v1 = vunpack.i.l.bf16 %v5332_v10  ;;  %1951 = vmatprep.mubr.f32.mxu0 %v78_v35  ;;  %2129 = vmatprep.mubr.f32.mxu1 %v78_v35 }
 0x1c3   :  { %v5214_v25 = vunpack.i.h.bf16 %v7675_v51  ;;  %v1193_v42 = vsel %vm1189_vm12, %v5199_v36, %v5203_v9  ;;  %v5223_v28 = vunpack.i.l.bf16 %v7694_v29  ;;  %v5650_v36 = vpack.i.bf16 %v5204_v54, %v5193_v37 }
 0x1c4   :  { %5626 = vrot.lane.b32.xlu1 %v7895_v23, %s6571_s24  ;;  %v1615_v55 = vsel %vm580_vm6, %v5333_v1, %v5334_v18  ;;  %v1617_v24 = vsel %vm580_vm6, %v5338_v56, %v5339_v0  ;;  %v1614_v33 = vsel %vm580_vm6, %v5329_v19, %v5333_v1  ;;  %v1616_v51 = vsel %vm580_vm6, %v5334_v18, %v5338_v56 }
 0x1c5   :  { %5621 = vrot.lane.b32.xlu0 %v5620_v7, %s6571_s24  ;;  %v7983_v6 = vpop.permute.xlu1 %5346  ;;  %v7985_v58 = vpop.permute.xlu0 %5341  ;;  %v4527_v15 = vpack.c.bf16 %v1615_v55, %v1611_v46  ;;  %v4599_v34 = vpack.c.bf16 %v1617_v24, %v1613_v45  ;;  %v4529_v8 = vpack.c.bf16 %v1614_v33, %v1610_v26  ;;  %v7998_v7 = vsel %vm1189_vm12, %v5209_v16, %v5213_v20 }
 0x1c6   :  { %v5349_v44 = vunpack.i.h.bf16 %v7983_v6  ;;  %v5348_v23 = vunpack.i.l.bf16 %v7983_v6  ;;  %v5344_v38 = vunpack.i.h.bf16 %v7985_v58  ;;  %v5343_v49 = vunpack.i.l.bf16 %v7985_v58 }
 0x1c7   :  { %4528 = vmatprep.subr.bf16.mxu0 %v4527_v15  ;;  %4600 = vmatprep.subr.bf16.mxu1 %v4599_v34  ;;  %v4601_v53 = vpack.c.bf16 %v1616_v51, %v1612_v62  ;;  %v8005_v40 = vsel %vm1189_vm12, %v5213_v20, %v5214_v25  ;;  %v5229_v16 = vunpack.i.h.bf16 %v7692_v3  ;;  %v5645_v20 = vpack.i.bf16 %v7954_v50, %v7959_v39 }
 0x1c8   :  { %5636 = vrot.lane.b32.xlu1 %v5635_v2, %s6571_s24  ;;  %v1619_v5 = vsel %vm580_vm6, %v5343_v49, %v5344_v38  ;;  %v1623_v17 = vsel %vm580_vm6, %v5348_v23, %v5349_v44  ;;  %4530 = vmatpush1.bf16.msra.mxu0 %v4529_v8  ;;  %v1198_v21 = vsel %vm1189_vm12, %v5218_v52, %v5219_v47  ;;  %v5228_v39 = vunpack.i.l.bf16 %v7692_v3 }
 0x1c9   :  { %5631 = vrot.lane.b32.xlu0 %v5630_v61, %s6571_s24  ;;  %4602 = vmatpush1.bf16.msra.mxu1 %v4601_v53  ;;  %v5357_v9 = vpop.permute.xlu1 %5356  ;;  %v5352_v2 = vpop.permute.xlu0 %5351  ;;  %v4531_v43 = vpack.c.bf16 %v1623_v17, %v1619_v5  ;;  %v5655_v32 = vpack.i.bf16 %v1193_v42, %v7947_v48  ;;  %v1199_v4 = vsel %vm1189_vm12, %v5219_v47, %v5223_v28  ;;  %v5224_v22 = vunpack.i.h.bf16 %v7694_v29 }
 0x1ca   :  { %v5354_v61 = vunpack.i.h.bf16 %v5352_v2  ;;  %v5353_v19 = vunpack.i.l.bf16 %v5352_v2  ;;  %v5359_v37 = vunpack.i.h.bf16 %v5357_v9  ;;  %v5358_v54 = vunpack.i.l.bf16 %v5357_v9 }
 0x1cb   :  { %4532 = vmatprep.subr.bf16.mxu0 %v4531_v43  ;;  %v5660_v50 = vpack.i.bf16 %v8005_v40, %v7998_v7  ;;  %v5675_v10 = vpack.i.bf16 %v5229_v16, %v5218_v52  ;;  %v5234_v0 = vunpack.i.h.bf16 %v7725_v41  ;;  %v5233_v3 = vunpack.i.l.bf16 %v7725_v41 }
 0x1cc   :  { %5646 = vrot.lane.b32.xlu1 %v5645_v20, %s6571_s24  ;;  %v1618_v48 = vsel %vm580_vm6, %v5353_v19, %v5343_v49  ;;  %v1622_v47 = vsel %vm580_vm6, %v5354_v61, %v5348_v23  ;;  %v5239_v46 = vunpack.i.h.bf16 %v7723_v11  ;;  %v5665_v27 = vpack.i.bf16 %v1199_v4, %v1198_v21 }
 0x1cd   :  { %5641 = vrot.lane.b32.xlu0 %v5640_v30, %s6571_s24  ;;  %v5367_v56 = vpop.permute.xlu1 %5366  ;;  %v5362_v18 = vpop.permute.xlu0 %5361  ;;  %v4533_v1 = vpack.c.bf16 %v1622_v47, %v1618_v48  ;;  %v5238_v63 = vunpack.i.l.bf16 %v7723_v11  ;;  %v1621_v59 = vsel %vm580_vm6, %v5358_v54, %v5359_v37  ;;  %v1620_v52 = vsel %vm580_vm6, %v5344_v38, %v5358_v54 }
 0x1ce   :  { %v5364_v45 = vunpack.i.h.bf16 %v5362_v18  ;;  %v5363_v26 = vunpack.i.l.bf16 %v5362_v18  ;;  %v5369_v30 = vunpack.i.h.bf16 %v5367_v56  ;;  %v5368_v62 = vunpack.i.l.bf16 %v5367_v56 }
 0x1cf   :  { %4534 = vmatpush1.bf16.msra.mxu0 %v4533_v1  ;;  %v1202_v55 = vsel %vm1189_vm12, %v5229_v16, %v5233_v3  ;;  %v1203_v24 = vsel %vm1189_vm12, %v5233_v3, %v5234_v0  ;;  %v1201_v23 = vsel %vm1189_vm12, %v5224_v22, %v5228_v39  ;;  %v1200_v38 = vsel %vm1189_vm12, %v5223_v28, %v5224_v22 }
 0x1d0   :  { %5656 = vrot.lane.b32.xlu1 %v5655_v32, %s6571_s24  ;;  %v1625_v41 = vsel %vm580_vm6, %v5363_v26, %v5364_v45  ;;  %v1624_v25 = vsel %vm580_vm6, %v5349_v44, %v5363_v26  ;;  %v1205_v44 = vsel %vm1189_vm12, %v5238_v63, %v5239_v46  ;;  %v1627_v49 = vsel %vm580_vm6, %v5368_v62, %v5369_v30 }
 0x1d1   :  { %5651 = vrot.lane.b32.xlu0 %v5650_v36, %s6571_s24  ;;  %v5377_v11 = vpop.permute.xlu1 %5376  ;;  %v5372_v33 = vpop.permute.xlu0 %5371  ;;  %v4603_v6 = vpack.c.bf16 %v1625_v41, %v1621_v59  ;;  %v4605_v58 = vpack.c.bf16 %v1624_v25, %v1620_v52  ;;  %v1204_v35 = vsel %vm1189_vm12, %v5234_v0, %v5238_v63  ;;  %v5670_v5 = vpack.i.bf16 %v1203_v24, %v1202_v55 }
 0x1d2   :  { %v5379_v15 = vunpack.i.h.bf16 %v5377_v11  ;;  %v5378_v34 = vunpack.i.l.bf16 %v5377_v11  ;;  %v5374_v8 = vunpack.i.h.bf16 %v5372_v33  ;;  %v5373_v51 = vunpack.i.l.bf16 %v5372_v33 }
 0x1d3   :  { %4604 = vmatprep.subr.bf16.mxu1 %v4603_v6  ;;  %v5685_v32 = vpack.i.bf16 %v1205_v44, %v1204_v35  ;;  %v5680_v37 = vpack.i.bf16 %v1201_v23, %v1200_v38  ;;  %v5695_v45 = vpack.i.bf16 %v7301_v31, %v7301_v31 }
 0x1d4   :  { %5666 = vrot.lane.b32.xlu1 %v5665_v27, %s6571_s24  ;;  %v1631_v42 = vsel %vm580_vm6, %v5373_v51, %v5374_v8  ;;  %v1626_v7 = vsel %vm580_vm6, %v5378_v34, %v5368_v62  ;;  %v1630_v53 = vsel %vm580_vm6, %v5379_v15, %v5373_v51  ;;  %4606 = vmatpush1.bf16.msra.mxu1 %v4605_v58 }
 0x1d5   :  { %5661 = vrot.lane.b32.xlu0 %v5660_v50, %s6571_s24  ;;  %v5387_v29 = vpop.permute.xlu1 %5386  ;;  %v5382_v28 = vpop.permute.xlu0 %5381  ;;  %v4535_v40 = vpack.c.bf16 %v1631_v42, %v1627_v49  ;;  %v4537_v17 = vpack.c.bf16 %v1630_v53, %v1626_v7 }
 0x1d6   :  { %v5389_v36 = vunpack.i.h.bf16 %v5387_v29  ;;  %v5388_v16 = vunpack.i.l.bf16 %v5387_v29  ;;  %v5384_v9 = vunpack.i.h.bf16 %v5382_v28  ;;  %v5383_v2 = vunpack.i.l.bf16 %v5382_v28 }
 0x1d7   :  { %4536 = vmatprep.subr.bf16.mxu0 %v4535_v40 }
 0x1d8   :  { %5676 = vrot.lane.b32.xlu1 %v5675_v10, %s6571_s24  ;;  %v1629_v20 = vsel %vm580_vm6, %v5383_v2, %v5384_v9  ;;  %v1633_v43 = vsel %vm580_vm6, %v5388_v16, %v5389_v36  ;;  %v1628_v21 = vsel %vm580_vm6, %v5369_v30, %v5383_v2  ;;  %4538 = vmatpush1.bf16.msra.mxu0 %v4537_v17 }
 0x1d9   :  { %5671 = vrot.lane.b32.xlu0 %v5670_v5, %s6571_s24  ;;  %v5397_v61 = vpop.permute.xlu1 %5396  ;;  %v5392_v19 = vpop.permute.xlu0 %5391  ;;  %v4607_v4 = vpack.c.bf16 %v1633_v43, %v1629_v20  ;;  %v1632_v54 = vsel %vm580_vm6, %v5374_v8, %v5388_v16 }
 0x1da   :  { %v5399_v50 = vunpack.i.h.bf16 %v5397_v61  ;;  %v5398_v39 = vunpack.i.l.bf16 %v5397_v61  ;;  %v5394_v22 = vunpack.i.h.bf16 %v5392_v19  ;;  %v5393_v48 = vunpack.i.l.bf16 %v5392_v19 }
 0x1db   :  { %4608 = vmatprep.subr.bf16.mxu1 %v4607_v4  ;;  %v4609_v47 = vpack.c.bf16 %v1632_v54, %v1628_v21 }
 0x1dc   :  { %5686 = vrot.lane.b32.xlu1 %v5685_v32, %s6571_s24  ;;  %v1635_v10 = vsel %vm580_vm6, %v5393_v48, %v5394_v22  ;;  %v1639_v0 = vsel %vm580_vm6, %v5398_v39, %v5399_v50 }
 0x1dd   :  { %5681 = vrot.lane.b32.xlu0 %v5680_v37, %s6571_s24  ;;  %4610 = vmatpush1.bf16.msra.mxu1 %v4609_v47  ;;  %v5407_v3 = vpop.permute.xlu1 %5406  ;;  %v5402_v56 = vpop.permute.xlu0 %5401  ;;  %v4539_v18 = vpack.c.bf16 %v1639_v0, %v1635_v10 }
 0x1de   :  { %v5404_v1 = vunpack.i.h.bf16 %v5402_v56  ;;  %v5403_v46 = vunpack.i.l.bf16 %v5402_v56  ;;  %v5409_v26 = vunpack.i.h.bf16 %v5407_v3  ;;  %v5408_v27 = vunpack.i.l.bf16 %v5407_v3 }
 0x1df   :  { %4540 = vmatprep.subr.bf16.mxu0 %v4539_v18 }
 0x1e0   :  { %5696 = vrot.lane.b32.xlu1 %v5695_v45, %s6571_s24  ;;  %v1634_v63 = vsel %vm580_vm6, %v5403_v46, %v5393_v48  ;;  %v1638_v30 = vsel %vm580_vm6, %v5404_v1, %v5398_v39  ;;  %v1637_v55 = vsel %vm580_vm6, %v5408_v27, %v5409_v26  ;;  %v1636_v31 = vsel %vm580_vm6, %v5394_v22, %v5408_v27 }
 0x1e1   :  { %5691 = vrot.lane.b32.xlu0 %v5695_v45, %s6571_s24  ;;  %v5417_v62 = vpop.permute.xlu1 %5416  ;;  %v5412_v59 = vpop.permute.xlu0 %5411  ;;  %v4541_v41 = vpack.c.bf16 %v1638_v30, %v1634_v63 }
 0x1e2   :  { %v5414_v52 = vunpack.i.h.bf16 %v5412_v59  ;;  %v5413_v25 = vunpack.i.l.bf16 %v5412_v59  ;;  %v5419_v24 = vunpack.i.h.bf16 %v5417_v62  ;;  %v5418_v11 = vunpack.i.l.bf16 %v5417_v62 }
 0x1e3   :  { %4542 = vmatpush1.bf16.msra.mxu0 %v4541_v41 }
 0x1e4   :  { %v1641_v33 = vsel %vm580_vm6, %v5413_v25, %v5414_v52  ;;  %v1640_v6 = vsel %vm580_vm6, %v5399_v50, %v5413_v25  ;;  %v1643_v49 = vsel %vm580_vm6, %v5418_v11, %v5419_v24 }
 0x1e5   :  { %v5427_v58 = vpop.permute.xlu1 %5426  ;;  %v5422_v15 = vpop.permute.xlu0 %5421  ;;  %v4611_v34 = vpack.c.bf16 %v1641_v33, %v1637_v55  ;;  %v4613_v8 = vpack.c.bf16 %v1640_v6, %v1636_v31 }
 0x1e6   :  { %v5429_v51 = vunpack.i.h.bf16 %v5427_v58  ;;  %v5428_v23 = vunpack.i.l.bf16 %v5427_v58  ;;  %v5424_v38 = vunpack.i.h.bf16 %v5422_v15  ;;  %v5423_v44 = vunpack.i.l.bf16 %v5422_v15 }
 0x1e7   :  { %4612 = vmatprep.subr.bf16.mxu1 %v4611_v34 }
 0x1e8   :  { %4614 = vmatpush1.bf16.msra.mxu1 %v4613_v8  ;;  %v1647_v42 = vsel %vm580_vm6, %v5423_v44, %v5424_v38  ;;  %v1642_v7 = vsel %vm580_vm6, %v5428_v23, %v5418_v11  ;;  %v1646_v53 = vsel %vm580_vm6, %v5429_v51, %v5423_v44 }
 0x1e9   :  { %v5437_v35 = vpop.permute.xlu1 %5436  ;;  %v5432_v29 = vpop.permute.xlu0 %5431  ;;  %v4543_v28 = vpack.c.bf16 %v1647_v42, %v1643_v49  ;;  %v4545_v40 = vpack.c.bf16 %v1646_v53, %v1642_v7 }
 0x1ea   :  { %v5439_v5 = vunpack.i.h.bf16 %v5437_v35  ;;  %v5438_v17 = vunpack.i.l.bf16 %v5437_v35  ;;  %v5434_v36 = vunpack.i.h.bf16 %v5432_v29  ;;  %v5433_v16 = vunpack.i.l.bf16 %v5432_v29 }
 0x1eb   :  { %4544 = vmatprep.subr.bf16.mxu0 %v4543_v28 }
 0x1ec   :  { %4546 = vmatpush1.bf16.msra.mxu0 %v4545_v40  ;;  %v1645_v9 = vsel %vm580_vm6, %v5433_v16, %v5434_v36  ;;  %v1649_v2 = vsel %vm580_vm6, %v5438_v17, %v5439_v5  ;;  %v1644_v20 = vsel %vm580_vm6, %v5419_v24, %v5433_v16  ;;  %v1648_v43 = vsel %vm580_vm6, %v5424_v38, %v5438_v17 }
 0x1ed   :  { %v5447_v21 = vpop.permute.xlu1 %5446  ;;  %v5442_v61 = vpop.permute.xlu0 %5441  ;;  %v4615_v19 = vpack.c.bf16 %v1649_v2, %v1645_v9  ;;  %v4617_v32 = vpack.c.bf16 %v1648_v43, %v1644_v20 }
 0x1ee   :  { %v5449_v4 = vunpack.i.h.bf16 %v5447_v21  ;;  %v5448_v37 = vunpack.i.l.bf16 %v5447_v21  ;;  %v5444_v54 = vunpack.i.h.bf16 %v5442_v61  ;;  %v5443_v50 = vunpack.i.l.bf16 %v5442_v61 }
 0x1ef   :  { %4616 = vmatprep.subr.bf16.mxu1 %v4615_v19 }
 0x1f0   :  { %4618 = vmatpush1.bf16.msra.mxu1 %v4617_v32  ;;  %v1651_v39 = vsel %vm580_vm6, %v5443_v50, %v5444_v54  ;;  %v1655_v22 = vsel %vm580_vm6, %v5448_v37, %v5449_v4 }
 0x1f1   :  { %v5457_v48 = vpop.permute.xlu1 %5456  ;;  %v5452_v47 = vpop.permute.xlu0 %5451  ;;  %v4547_v10 = vpack.c.bf16 %v1655_v22, %v1651_v39 }
 0x1f2   :  { %v5454_v0 = vunpack.i.h.bf16 %v5452_v47  ;;  %v5453_v3 = vunpack.i.l.bf16 %v5452_v47  ;;  %v5459_v56 = vunpack.i.h.bf16 %v5457_v48  ;;  %v5458_v18 = vunpack.i.l.bf16 %v5457_v48 }
 0x1f3   :  { %4548 = vmatprep.subr.bf16.mxu0 %v4547_v10 }
 0x1f4   :  { %v1650_v1 = vsel %vm580_vm6, %v5453_v3, %v5443_v50  ;;  %v1654_v46 = vsel %vm580_vm6, %v5454_v0, %v5448_v37  ;;  %v1653_v62 = vsel %vm580_vm6, %v5458_v18, %v5459_v56  ;;  %v1652_v59 = vsel %vm580_vm6, %v5444_v54, %v5458_v18 }
 0x1f5   :  { %v5467_v45 = vpop.permute.xlu1 %5466  ;;  %v5462_v26 = vpop.permute.xlu0 %5461  ;;  %v4549_v27 = vpack.c.bf16 %v1654_v46, %v1650_v1 }
 0x1f6   :  { %v5464_v63 = vunpack.i.h.bf16 %v5462_v26  ;;  %v5463_v30 = vunpack.i.l.bf16 %v5462_v26  ;;  %v5469_v41 = vunpack.i.h.bf16 %v5467_v45  ;;  %v5468_v52 = vunpack.i.l.bf16 %v5467_v45 }
 0x1f7   :  { %4550 = vmatpush1.bf16.msra.mxu0 %v4549_v27 }
 0x1f8   :  { %v1657_v25 = vsel %vm580_vm6, %v5463_v30, %v5464_v63  ;;  %v1656_v55 = vsel %vm580_vm6, %v5449_v4, %v5463_v30  ;;  %v1659_v8 = vsel %vm580_vm6, %v5468_v52, %v5469_v41 }
 0x1f9   :  { %v5477_v31 = vpop.permute.xlu1 %5476  ;;  %v5472_v24 = vpop.permute.xlu0 %5471  ;;  %v4619_v11 = vpack.c.bf16 %v1657_v25, %v1653_v62  ;;  %v4621_v33 = vpack.c.bf16 %v1656_v55, %v1652_v59 }
 0x1fa   :  { %v5479_v6 = vunpack.i.h.bf16 %v5477_v31  ;;  %v5478_v58 = vunpack.i.l.bf16 %v5477_v31  ;;  %v5474_v15 = vunpack.i.h.bf16 %v5472_v24  ;;  %v5473_v34 = vunpack.i.l.bf16 %v5472_v24 }
 0x1fb   :  { %4620 = vmatprep.subr.bf16.mxu1 %v4619_v11 }
 0x1fc   :  { %4622 = vmatpush1.bf16.msra.mxu1 %v4621_v33  ;;  %v1663_v51 = vsel %vm580_vm6, %v5473_v34, %v5474_v15  ;;  %v1658_v23 = vsel %vm580_vm6, %v5478_v58, %v5468_v52  ;;  %v1662_v38 = vsel %vm580_vm6, %v5479_v6, %v5473_v34 }
 0x1fd   :  { %v5487_v44 = vpop.permute.xlu1 %5486  ;;  %v5482_v49 = vpop.permute.xlu0 %5481  ;;  %v4551_v42 = vpack.c.bf16 %v1663_v51, %v1659_v8  ;;  %v4553_v7 = vpack.c.bf16 %v1662_v38, %v1658_v23 }
 0x1fe   :  { %v5489_v53 = vunpack.i.h.bf16 %v5487_v44  ;;  %v5488_v35 = vunpack.i.l.bf16 %v5487_v44  ;;  %v5484_v29 = vunpack.i.h.bf16 %v5482_v49  ;;  %v5483_v28 = vunpack.i.l.bf16 %v5482_v49 }
 0x1ff   :  { %4552 = vmatprep.subr.bf16.mxu0 %v4551_v42 }
 0x200   :  { %4554 = vmatpush1.bf16.msra.mxu0 %v4553_v7  ;;  %v1661_v40 = vsel %vm580_vm6, %v5483_v28, %v5484_v29  ;;  %v1665_v5 = vsel %vm580_vm6, %v5488_v35, %v5489_v53  ;;  %v1660_v17 = vsel %vm580_vm6, %v5469_v41, %v5483_v28  ;;  %v1664_v36 = vsel %vm580_vm6, %v5474_v15, %v5488_v35 }
 0x201   :  { %v5497_v16 = vpop.permute.xlu1 %5496  ;;  %v5492_v9 = vpop.permute.xlu0 %5491  ;;  %v4623_v2 = vpack.c.bf16 %v1665_v5, %v1661_v40  ;;  %v4625_v20 = vpack.c.bf16 %v1664_v36, %v1660_v17 }
 0x202   :  { %v5499_v43 = vunpack.i.h.bf16 %v5497_v16  ;;  %v5498_v21 = vunpack.i.l.bf16 %v5497_v16  ;;  %v5494_v61 = vunpack.i.h.bf16 %v5492_v9  ;;  %v5493_v19 = vunpack.i.l.bf16 %v5492_v9 }
 0x203   :  { %4624 = vmatprep.subr.bf16.mxu1 %v4623_v2 }
 0x204   :  { %4626 = vmatpush1.bf16.msra.mxu1 %v4625_v20  ;;  %v1667_v32 = vsel %vm580_vm6, %v5493_v19, %v5494_v61  ;;  %v1671_v4 = vsel %vm580_vm6, %v5498_v21, %v5499_v43 }
 0x205   :  { %v5507_v37 = vpop.permute.xlu1 %5506  ;;  %v5502_v54 = vpop.permute.xlu0 %5501  ;;  %v4555_v50 = vpack.c.bf16 %v1671_v4, %v1667_v32 }
 0x206   :  { %v5504_v39 = vunpack.i.h.bf16 %v5502_v54  ;;  %v5503_v22 = vunpack.i.l.bf16 %v5502_v54  ;;  %v5509_v48 = vunpack.i.h.bf16 %v5507_v37  ;;  %v5508_v47 = vunpack.i.l.bf16 %v5507_v37 }
 0x207   :  { %4556 = vmatprep.subr.bf16.mxu0 %v4555_v50 }
 0x208   :  { %v1666_v10 = vsel %vm580_vm6, %v5503_v22, %v5493_v19  ;;  %v1670_v0 = vsel %vm580_vm6, %v5504_v39, %v5498_v21  ;;  %v1669_v45 = vsel %vm580_vm6, %v5508_v47, %v5509_v48  ;;  %v1668_v26 = vsel %vm580_vm6, %v5494_v61, %v5508_v47 }
 0x209   :  { %v5517_v3 = vpop.permute.xlu1 %5516  ;;  %v5512_v56 = vpop.permute.xlu0 %5511  ;;  %v4557_v18 = vpack.c.bf16 %v1670_v0, %v1666_v10 }
 0x20a   :  { %v5514_v1 = vunpack.i.h.bf16 %v5512_v56  ;;  %v5513_v46 = vunpack.i.l.bf16 %v5512_v56  ;;  %v5519_v27 = vunpack.i.h.bf16 %v5517_v3  ;;  %v5518_v63 = vunpack.i.l.bf16 %v5517_v3 }
 0x20b   :  { %4558 = vmatpush1.bf16.msra.mxu0 %v4557_v18 }
 0x20c   :  { %v1673_v30 = vsel %vm580_vm6, %v5513_v46, %v5514_v1  ;;  %v1672_v62 = vsel %vm580_vm6, %v5499_v43, %v5513_v46  ;;  %v1675_v33 = vsel %vm580_vm6, %v5518_v63, %v5519_v27 }
 0x20d   :  { %v5527_v59 = vpop.permute.xlu1 %5526  ;;  %v5522_v41 = vpop.permute.xlu0 %5521  ;;  %v4627_v52 = vpack.c.bf16 %v1673_v30, %v1669_v45  ;;  %v4629_v25 = vpack.c.bf16 %v1672_v62, %v1668_v26 }
 0x20e   :  { %v5529_v55 = vunpack.i.h.bf16 %v5527_v59  ;;  %v5528_v31 = vunpack.i.l.bf16 %v5527_v59  ;;  %v5524_v24 = vunpack.i.h.bf16 %v5522_v41  ;;  %v5523_v11 = vunpack.i.l.bf16 %v5522_v41 }
 0x20f   :  { %4628 = vmatprep.subr.bf16.mxu1 %v4627_v52 }
 0x210   :  { %4630 = vmatpush1.bf16.msra.mxu1 %v4629_v25  ;;  %v1679_v6 = vsel %vm580_vm6, %v5523_v11, %v5524_v24  ;;  %v1674_v58 = vsel %vm580_vm6, %v5528_v31, %v5518_v63  ;;  %v1678_v15 = vsel %vm580_vm6, %v5529_v55, %v5523_v11 }
 0x211   :  { %v5537_v34 = vpop.permute.xlu1 %5536  ;;  %v5532_v8 = vpop.permute.xlu0 %5531  ;;  %v4559_v51 = vpack.c.bf16 %v1679_v6, %v1675_v33  ;;  %v4561_v23 = vpack.c.bf16 %v1678_v15, %v1674_v58 }
 0x212   :  { %v5539_v38 = vunpack.i.h.bf16 %v5537_v34  ;;  %v5538_v44 = vunpack.i.l.bf16 %v5537_v34  ;;  %v5534_v49 = vunpack.i.h.bf16 %v5532_v8  ;;  %v5533_v42 = vunpack.i.l.bf16 %v5532_v8 }
 0x213   :  { %4560 = vmatprep.subr.bf16.mxu0 %v4559_v51 }
 0x214   :  { %4562 = vmatpush1.bf16.msra.mxu0 %v4561_v23  ;;  %v1677_v7 = vsel %vm580_vm6, %v5533_v42, %v5534_v49  ;;  %v1681_v53 = vsel %vm580_vm6, %v5538_v44, %v5539_v38  ;;  %v1676_v35 = vsel %vm580_vm6, %v5519_v27, %v5533_v42  ;;  %v1680_v29 = vsel %vm580_vm6, %v5524_v24, %v5538_v44 }
 0x215   :  { %v5547_v28 = vpop.permute.xlu1 %5546  ;;  %v5542_v40 = vpop.permute.xlu0 %5541  ;;  %v4631_v5 = vpack.c.bf16 %v1681_v53, %v1677_v7  ;;  %v4633_v17 = vpack.c.bf16 %v1680_v29, %v1676_v35 }
 0x216   :  { %v5549_v36 = vunpack.i.h.bf16 %v5547_v28  ;;  %v5548_v16 = vunpack.i.l.bf16 %v5547_v28  ;;  %v5544_v9 = vunpack.i.h.bf16 %v5542_v40  ;;  %v5543_v2 = vunpack.i.l.bf16 %v5542_v40 }
 0x217   :  { %4632 = vmatprep.subr.bf16.mxu1 %v4631_v5 }
 0x218   :  { %4634 = vmatpush1.bf16.msra.mxu1 %v4633_v17  ;;  %v1683_v20 = vsel %vm580_vm6, %v5543_v2, %v5544_v9  ;;  %v1687_v43 = vsel %vm580_vm6, %v5548_v16, %v5549_v36 }
 0x219   :  { %v5557_v21 = vpop.permute.xlu1 %5556  ;;  %v4563_v61 = vpack.c.bf16 %v1687_v43, %v1683_v20 }
 0x21a   :  { %v5552_v19 = vpop.permute.xlu0 %5551  ;;  %v5559_v37 = vunpack.i.h.bf16 %v5557_v21  ;;  %v5558_v54 = vunpack.i.l.bf16 %v5557_v21 }
 0x21b   :  { %v5554_v32 = vunpack.i.h.bf16 %v5552_v19  ;;  %v5553_v4 = vunpack.i.l.bf16 %v5552_v19  ;;  %4564 = vmatprep.subr.bf16.mxu0 %v4563_v61 }
 0x21c   :  { %v1685_v3 = vsel %vm580_vm6, %v5558_v54, %v5559_v37  ;;  %v1684_v56 = vsel %vm580_vm6, %v5544_v9, %v5558_v54 }
 0x21d   :  { %v5567_v50 = vpop.permute.xlu1 %5566  ;;  %v1682_v39 = vsel %vm580_vm6, %v5553_v4, %v5543_v2  ;;  %v1686_v22 = vsel %vm580_vm6, %v5554_v32, %v5548_v16 }
 0x21e   :  { %v4565_v47 = vpack.c.bf16 %v1686_v22, %v1682_v39  ;;  %v5569_v18 = vunpack.i.h.bf16 %v5567_v50  ;;  %v5568_v1 = vunpack.i.l.bf16 %v5567_v50 }
 0x21f   :  { %v5562_v48 = vpop.permute.xlu0 %5561 }
 0x220   :  { %v5564_v10 = vunpack.i.h.bf16 %v5562_v48  ;;  %v5563_v0 = vunpack.i.l.bf16 %v5562_v48  ;;  %4566 = vmatpush1.bf16.msra.mxu0 %v4565_v47  ;;  %v1691_v55 = vsel %vm580_vm6, %v5568_v1, %v5569_v18 }
 0x221   :  { %v5577_v46 = vpop.permute.xlu1 %5576 }
 0x222   :  { %v1689_v45 = vsel %vm580_vm6, %v5563_v0, %v5564_v10  ;;  %v1688_v26 = vsel %vm580_vm6, %v5549_v36, %v5563_v0  ;;  %v5579_v27 = vunpack.i.h.bf16 %v5577_v46  ;;  %v5578_v63 = vunpack.i.l.bf16 %v5577_v46 }
 0x223   :  { %v5572_v30 = vpop.permute.xlu0 %5571  ;;  %v4635_v62 = vpack.c.bf16 %v1689_v45, %v1685_v3  ;;  %v4637_v59 = vpack.c.bf16 %v1688_v26, %v1684_v56 }
 0x224   :  { %v5574_v41 = vunpack.i.h.bf16 %v5572_v30  ;;  %v5573_v52 = vunpack.i.l.bf16 %v5572_v30  ;;  %v1690_v25 = vsel %vm580_vm6, %v5578_v63, %v5568_v1 }
 0x225   :  { %4636 = vmatprep.subr.bf16.mxu1 %v4635_v62 }
 0x226   :  { %4638 = vmatpush1.bf16.msra.mxu1 %v4637_v59  ;;  %v1695_v31 = vsel %vm580_vm6, %v5573_v52, %v5574_v41  ;;  %v1694_v24 = vsel %vm580_vm6, %v5579_v27, %v5573_v52  ;;  %v5587_v11 = vpop.permute.xlu1 %5586 }
 0x227   :  { %v5582_v33 = vpop.permute.xlu0 %5581  ;;  %v4567_v6 = vpack.c.bf16 %v1695_v31, %v1691_v55  ;;  %v4569_v58 = vpack.c.bf16 %v1694_v24, %v1690_v25  ;;  %v5589_v15 = vunpack.i.h.bf16 %v5587_v11  ;;  %v5588_v34 = vunpack.i.l.bf16 %v5587_v11 }
 0x228   :  { %v5584_v8 = vunpack.i.h.bf16 %v5582_v33  ;;  %v5583_v51 = vunpack.i.l.bf16 %v5582_v33 }
 0x229   :  { %4568 = vmatprep.subr.bf16.mxu0 %v4567_v6  ;;  %v1697_v38 = vsel %vm580_vm6, %v5588_v34, %v5589_v15  ;;  %v1696_v49 = vsel %vm580_vm6, %v5574_v41, %v5588_v34 }
 0x22a   :  { %4570 = vmatpush1.bf16.msra.mxu0 %v4569_v58  ;;  %v1693_v23 = vsel %vm580_vm6, %v5583_v51, %v5584_v8  ;;  %v1692_v44 = vsel %vm580_vm6, %v5569_v18, %v5583_v51  ;;  %v5597_v42 = vpop.permute.xlu1 %5596  ;;  %v77_v51 = vld [vmem:[%s10727_s2] sm:$0xff] }
 0x22b   :  { %v5592_v7 = vpop.permute.xlu0 %5591  ;;  %v4639_v53 = vpack.c.bf16 %v1697_v38, %v1693_v23  ;;  %v4641_v35 = vpack.c.bf16 %v1696_v49, %v1692_v44  ;;  %v5599_v29 = vunpack.i.h.bf16 %v5597_v42  ;;  %v5598_v28 = vunpack.i.l.bf16 %v5597_v42  ;;  %v81_v42 = vld [vmem:[%s10727_s2 + $0x20] sm:$0xff] }
 0x22c   :  { %v5594_v40 = vunpack.i.h.bf16 %v5592_v7  ;;  %v5593_v5 = vunpack.i.l.bf16 %v5592_v7 }
 0x22d   :  { %4640 = vmatprep.subr.bf16.mxu1 %v4639_v53  ;;  %v1703_v36 = vsel %vm580_vm6, %v5598_v28, %v5599_v29 }
 0x22e   :  { %4642 = vmatpush1.bf16.msra.mxu1 %v4641_v35  ;;  %v1699_v17 = vsel %vm580_vm6, %v5593_v5, %v5594_v40  ;;  %v5607_v16 = vpop.permute.xlu1 %5606 }
 0x22f   :  { %v5602_v9 = vpop.permute.xlu0 %5601  ;;  %v4571_v2 = vpack.c.bf16 %v1703_v36, %v1699_v17  ;;  %v5609_v21 = vunpack.i.h.bf16 %v5607_v16  ;;  %v5608_v61 = vunpack.i.l.bf16 %v5607_v16 }
 0x230   :  { %v5604_v20 = vunpack.i.h.bf16 %v5602_v9  ;;  %v5603_v43 = vunpack.i.l.bf16 %v5602_v9  ;;  %v84_v9 = vld [vmem:[%s10727_s2 + $0x38] sm:$0xff] }
 0x231   :  { %4572 = vmatprep.subr.bf16.mxu0 %v4571_v2  ;;  %v1701_v22 = vsel %vm580_vm6, %v5608_v61, %v5609_v21  ;;  %v1700_v48 = vsel %vm580_vm6, %v5594_v40, %v5608_v61 }
 0x232   :  { %v1698_v19 = vsel %vm580_vm6, %v5603_v43, %v5593_v5  ;;  %v1702_v32 = vsel %vm580_vm6, %v5604_v20, %v5598_v28  ;;  %v5617_v4 = vpop.permute.xlu1 %5616  ;;  %v80_v5 = vld [vmem:[%s10727_s2 + $0x18] sm:$0xff] }
 0x233   :  { %v5612_v37 = vpop.permute.xlu0 %5611  ;;  %v4573_v54 = vpack.c.bf16 %v1702_v32, %v1698_v19  ;;  %v5619_v47 = vunpack.i.h.bf16 %v5617_v4  ;;  %v5618_v10 = vunpack.i.l.bf16 %v5617_v4 }
 0x234   :  { %v5614_v50 = vunpack.i.h.bf16 %v5612_v37  ;;  %v5613_v39 = vunpack.i.l.bf16 %v5612_v37 }
 0x235   :  { %4574 = vmatpush1.bf16.msra.mxu0 %v4573_v54  ;;  %v1707_v30 = vsel %vm580_vm6, %v5618_v10, %v5619_v47  ;;  %v83_v54 = vld [vmem:[%s10727_s2 + $0x30] sm:$0xff] }
 0x236   :  { %v1705_v0 = vsel %vm580_vm6, %v5613_v39, %v5614_v50  ;;  %v1704_v3 = vsel %vm580_vm6, %v5599_v29, %v5613_v39  ;;  %v5627_v56 = vpop.permute.xlu1 %5626 }
 0x237   :  { %v5622_v18 = vpop.permute.xlu0 %5621  ;;  %v4643_v1 = vpack.c.bf16 %v1705_v0, %v1701_v22  ;;  %v4645_v46 = vpack.c.bf16 %v1704_v3, %v1700_v48  ;;  %v5629_v45 = vunpack.i.h.bf16 %v5627_v56  ;;  %v5628_v26 = vunpack.i.l.bf16 %v5627_v56  ;;  %v87_v22 = vld [vmem:[%s10727_s2 + $0x50] sm:$0xff] }
 0x238   :  { %v5624_v27 = vunpack.i.h.bf16 %v5622_v18  ;;  %v5623_v63 = vunpack.i.l.bf16 %v5622_v18 }
 0x239   :  { %4644 = vmatprep.subr.bf16.mxu1 %v4643_v1  ;;  %v1706_v59 = vsel %vm580_vm6, %v5628_v26, %v5618_v10  ;;  %v86_v26 = vld [vmem:[%s10727_s2 + $0x48] sm:$0xff] }
 0x23a   :  { %4646 = vmatpush1.bf16.msra.mxu1 %v4645_v46  ;;  %v1711_v62 = vsel %vm580_vm6, %v5623_v63, %v5624_v27  ;;  %v1710_v41 = vsel %vm580_vm6, %v5629_v45, %v5623_v63  ;;  %v5637_v52 = vpop.permute.xlu1 %5636 }
 0x23b   :  { %v5632_v25 = vpop.permute.xlu0 %5631  ;;  %v4575_v55 = vpack.c.bf16 %v1711_v62, %v1707_v30  ;;  %v4577_v31 = vpack.c.bf16 %v1710_v41, %v1706_v59  ;;  %v5639_v24 = vunpack.i.h.bf16 %v5637_v52  ;;  %v5638_v11 = vunpack.i.l.bf16 %v5637_v52 }
 0x23c   :  { %v5634_v33 = vunpack.i.h.bf16 %v5632_v25  ;;  %v5633_v6 = vunpack.i.l.bf16 %v5632_v25 }
 0x23d   :  { %4576 = vmatprep.subr.bf16.mxu0 %v4575_v55  ;;  %v1713_v15 = vsel %vm580_vm6, %v5638_v11, %v5639_v24  ;;  %v1712_v8 = vsel %vm580_vm6, %v5624_v27, %v5638_v11 }
 0x23e   :  { %4578 = vmatpush1.bf16.msra.mxu0 %v4577_v31  ;;  %v1709_v58 = vsel %vm580_vm6, %v5633_v6, %v5634_v33  ;;  %v1708_v34 = vsel %vm580_vm6, %v5619_v47, %v5633_v6  ;;  %v5647_v23 = vpop.permute.xlu1 %5646  ;;  %v10802_v33 = vmov 0.0  }
 0x23f   :  { %v5642_v38 = vpop.permute.xlu0 %5641  ;;  %v4647_v44 = vpack.c.bf16 %v1713_v15, %v1709_v58  ;;  %v4649_v49 = vpack.c.bf16 %v1712_v8, %v1708_v34  ;;  %v5649_v7 = vunpack.i.h.bf16 %v5647_v23  ;;  %v5648_v53 = vunpack.i.l.bf16 %v5647_v23  ;;  %v79_v23 = vld [vmem:[%s10727_s2 + $0x10] sm:$0xff] }
 0x240   :  { %v5644_v35 = vunpack.i.h.bf16 %v5642_v38  ;;  %v5643_v29 = vunpack.i.l.bf16 %v5642_v38 }
 0x241   :  { %4648 = vmatprep.subr.bf16.mxu1 %v4647_v44  ;;  %1952 = vmatmul.mubr.f32.vlgmr.msra.gmra.mrb[0].mxu0 %v77_v51  ;;  %v1719_v40 = vsel %vm580_vm6, %v5648_v53, %v5649_v7 }
 0x242   :  { %4650 = vmatpush1.bf16.msra.mxu1 %v4649_v49  ;;  %v1715_v28 = vsel %vm580_vm6, %v5643_v29, %v5644_v35  ;;  %1957 = vmatprep.mubr.f32.mxu0 %v81_v42  ;;  %v5657_v17 = vpop.permute.xlu1 %5656 }
 0x243   :  { %v5652_v36 = vpop.permute.xlu0 %5651  ;;  %v4579_v16 = vpack.c.bf16 %v1719_v40, %v1715_v28  ;;  %v5658_v43 = vunpack.i.l.bf16 %v5657_v17  ;;  %v5659_v21 = vunpack.i.h.bf16 %v5657_v17 }
 0x244   :  { %v5654_v2 = vunpack.i.h.bf16 %v5652_v36  ;;  %v5653_v20 = vunpack.i.l.bf16 %v5652_v36 }
 0x245   :  { %4580 = vmatprep.subr.bf16.mxu0 %v4579_v16  ;;  %1958 = vmatmul.mubr.f32.gmra.mrb[2].mxu0 %v80_v5  ;;  %v1716_v48 = vsel %vm580_vm6, %v5644_v35, %v5658_v43  ;;  %v1717_v3 = vsel %vm580_vm6, %v5658_v43, %v5659_v21  ;;  %v88_v35 = vld [vmem:[%s10727_s2 + $0x58] sm:$0xff] }
 0x246   :  { %v1718_v61 = vsel %vm580_vm6, %v5654_v2, %v5648_v53  ;;  %v1714_v19 = vsel %vm580_vm6, %v5653_v20, %v5643_v29  ;;  %2130 = vmatmul.mubr.f32.vlgmr.msra.gmra.mrb[0].mxu1 %v77_v51  ;;  %1963 = vmatprep.mubr.f32.mxu0 %v84_v9  ;;  %v5667_v32 = vpop.permute.xlu1 %5666  ;;  %v85_v53 = vld [vmem:[%s10727_s2 + $0x40] sm:$0xff] }
 0x247   :  { %v5662_v4 = vpop.permute.xlu0 %5661  ;;  %v4581_v37 = vpack.c.bf16 %v1718_v61, %v1714_v19  ;;  %2135 = vmatprep.mubr.f32.mxu1 %v81_v42  ;;  %v5669_v47 = vunpack.i.h.bf16 %v5667_v32  ;;  %v5668_v10 = vunpack.i.l.bf16 %v5667_v32 }
 0x248   :  { %v5664_v50 = vunpack.i.h.bf16 %v5662_v4  ;;  %v5663_v39 = vunpack.i.l.bf16 %v5662_v4 }
 0x249   :  { %4582 = vmatpush1.bf16.msra.mxu0 %v4581_v37  ;;  %v1723_v59 = vsel %vm580_vm6, %v5668_v10, %v5669_v47 }
 0x24a   :  { %v1720_v0 = vsel %vm580_vm6, %v5649_v7, %v5663_v39  ;;  %1964 = vmatmul.mubr.f32.gmra.mrb[4].mxu0 %v83_v54  ;;  %2136 = vmatmul.mubr.f32.gmra.mrb[2].mxu1 %v80_v5  ;;  %v1721_v56 = vsel %vm580_vm6, %v5663_v39, %v5664_v50  ;;  %v5677_v18 = vpop.permute.xlu1 %5676  ;;  %v82_v7 = vld [vmem:[%s10727_s2 + $0x28] sm:$0xff] }
 0x24b   :  { %v5672_v1 = vpop.permute.xlu0 %5671  ;;  %v4651_v46 = vpack.c.bf16 %v1721_v56, %v1717_v3  ;;  %v4653_v45 = vpack.c.bf16 %v1720_v0, %v1716_v48  ;;  %1969 = vmatprep.mubr.f32.mxu0 %v87_v22  ;;  %2141 = vmatprep.mubr.f32.mxu1 %v84_v9  ;;  %v5679_v27 = vunpack.i.h.bf16 %v5677_v18  ;;  %v5678_v63 = vunpack.i.l.bf16 %v5677_v18 }
 0x24c   :  { %v5674_v30 = vunpack.i.h.bf16 %v5672_v1  ;;  %v5673_v62 = vunpack.i.l.bf16 %v5672_v1 }
 0x24d   :  { %4652 = vmatprep.subr.bf16.mxu1 %v4651_v46  ;;  %v1722_v41 = vsel %vm580_vm6, %v5678_v63, %v5668_v10 }
 0x24e   :  { %v1726_v52 = vsel %vm580_vm6, %v5679_v27, %v5673_v62  ;;  %4654 = vmatpush1.bf16.msra.mxu1 %v4653_v45  ;;  %1970 = vmatmul.mubr.f32.gmra.mrb[6].mxu0 %v86_v26  ;;  %v1727_v25 = vsel %vm580_vm6, %v5673_v62, %v5674_v30  ;;  %v5687_v55 = vpop.permute.xlu1 %5686 }
 0x24f   :  { %v5682_v31 = vpop.permute.xlu0 %5681  ;;  %v4583_v24 = vpack.c.bf16 %v1727_v25, %v1723_v59  ;;  %2142 = vmatmul.mubr.f32.gmra.mrb[4].mxu1 %v83_v54  ;;  %v4585_v11 = vpack.c.bf16 %v1726_v52, %v1722_v41  ;;  %2040 = vmatprep.mubr.f32.mxu0 %v10802_v33  ;;  %v5689_v6 = vunpack.i.h.bf16 %v5687_v55  ;;  %v5688_v58 = vunpack.i.l.bf16 %v5687_v55 }
 0x250   :  { %v5684_v15 = vunpack.i.h.bf16 %v5682_v31  ;;  %v5683_v34 = vunpack.i.l.bf16 %v5682_v31  ;;  %2147 = vmatprep.mubr.f32.mxu1 %v87_v22 }
 0x251   :  { %4584 = vmatprep.subr.bf16.mxu0 %v4583_v24  ;;  %v1728_v8 = vsel %vm580_vm6, %v5674_v30, %v5688_v58  ;;  %v1729_v44 = vsel %vm580_vm6, %v5688_v58, %v5689_v6 }
 0x252   :  { %v1724_v51 = vsel %vm580_vm6, %v5669_v47, %v5683_v34  ;;  %4586 = vmatpush1.bf16.msra.mxu0 %v4585_v11  ;;  %v1725_v38 = vsel %vm580_vm6, %v5683_v34, %v5684_v15 }
 0x253   :  { %2148 = vmatmul.mubr.f32.gmra.mrb[6].mxu1 %v86_v26  ;;  %v4655_v49 = vpack.c.bf16 %v1729_v44, %v1725_v38  ;;  %v4657_v42 = vpack.c.bf16 %v1728_v8, %v1724_v51 }
 0x254   :  { %2218 = vmatprep.mubr.f32.mxu1 %v10802_v33 }
 0x255   :  { %4499 = vmatmul.mubr.msk.f32.vlgmr.msra.gmra.mrb[0].mxu0 %vm1874_vm13, %v79_v23  ;;  %4656 = vmatprep.subr.bf16.mxu1 %v4655_v49 }
 0x256   :  { %4658 = vmatpush1.bf16.msra.mxu1 %v4657_v42  ;;  %2046 = vmatprep.mubr.f32.mxu0 %v10802_v33 }
 0x259   :  { %4500 = vmatmul.mubr.msk.f32.gmra.mrb[2].mxu0 %vm1874_vm13, %v82_v7  ;;  %4503 = vmatmul.mubr.msk.f32.vlgmr.msra.gmra.mrb[0].mxu1 %vm1874_vm13, %v79_v23 }
 0x25a   :  { %2052 = vmatprep.mubr.f32.mxu0 %v10802_v33  ;;  %2224 = vmatprep.mubr.f32.mxu1 %v10802_v33 }
 0x25d   :  { %4501 = vmatmul.mubr.msk.f32.gmra.mrb[4].mxu0 %vm1874_vm13, %v85_v53  ;;  %4504 = vmatmul.mubr.msk.f32.gmra.mrb[2].mxu1 %vm1874_vm13, %v82_v7 }
 0x25e   :  { %2058 = vmatprep.mubr.f32.mxu0 %v10802_v33  ;;  %2230 = vmatprep.mubr.f32.mxu1 %v10802_v33 }
 0x261   :  { %4502 = vmatmul.mubr.msk.f32.gmra.mrb[6].mxu0 %vm1874_vm13, %v88_v35  ;;  %4505 = vmatmul.mubr.msk.f32.gmra.mrb[4].mxu1 %vm1874_vm13, %v85_v53  ;;  %v6578_v53 = vmov 0  }
 0x262   :  { %2236 = vmatprep.mubr.f32.mxu1 %v10802_v33  ;;  %5700 = vset.pattern.permute.xlu1 %v6578_v53  ;;  %v10962_v33 = vld [vmem:[#allocation38_spill] sm:$0xff] }
 0x263   :  { %5701 = vset.pattern.permute.xlu0 %v6578_v53 }
 0x265   :  { %4506 = vmatmul.mubr.msk.f32.gmra.mrb[6].mxu1 %vm1874_vm13, %v88_v35  ;;  %v8302_v35 = vpop.permute.xlu0 %5691 }
 0x266   :  { %10940 = vst [vmem:[#allocation39_spill] sm:$0xff] %v8302_v35  ;;  %v10964_v35 = vld [vmem:[#allocation8_spill] sm:$0xff] }
 0x328   :  { %v8222_v29 = vpop.f32.mrb[0].mxu0 }
 0x329   :  { %v2267_v28 = vmul.f32 %v8222_v29, %v8222_v29  ;;  %v8226_v40 = vpop.f32.mrb[1].mxu0 }
 0x32a   :  { %v2243_v5 = vadd.f32 %v8226_v40, %v8222_v29  ;;  %v2268_v17 = vmul.f32 %v8226_v40, %v8226_v40 }
 0x32c   :  { %v2283_v36 = vadd.f32 %v2268_v17, %v2267_v28  ;;  %v8232_v16 = vpop.f32.mrb[2].mxu0  ;;  %v8234_v9 = vpop.f32.mrb[0].mxu1 }
 0x32d   :  { %v2271_v2 = vmul.f32 %v8232_v16, %v8232_v16  ;;  %v2244_v20 = vadd.f32 %v2243_v5, %v8234_v9  ;;  %v2269_v43 = vmul.f32 %v8234_v9, %v8234_v9  ;;  %v8241_v21 = vpop.f32.mrb[3].mxu0  ;;  %v8243_v61 = vpop.f32.mrb[1].mxu1 }
 0x32e   :  { %v2248_v19 = vadd.f32 %v8241_v21, %v8232_v16  ;;  %v2272_v32 = vmul.f32 %v8241_v21, %v8241_v21  ;;  %v2270_v4 = vmul.f32 %v8243_v61, %v8243_v61  ;;  %v8304_v28 = vpop.permute.xlu1 %5696 }
 0x32f   :  { %v2284_v37 = vadd.f32 %v2283_v36, %v2269_v43  ;;  %v2245_v54 = vadd.f32 %v2244_v20, %v8243_v61  ;;  %10941 = vst [vmem:[#allocation40_spill] sm:$0xff] %v8304_v28 }
 0x330   :  { %v2288_v50 = vadd.f32 %v2272_v32, %v2271_v2  ;;  %v8252_v39 = vpop.f32.mrb[4].mxu0  ;;  %v8254_v22 = vpop.f32.mrb[2].mxu1 }
 0x331   :  { %v2275_v48 = vmul.f32 %v8252_v39, %v8252_v39  ;;  %v2249_v47 = vadd.f32 %v2248_v19, %v8254_v22  ;;  %v2273_v10 = vmul.f32 %v8254_v22, %v8254_v22  ;;  %v8261_v0 = vpop.f32.mrb[3].mxu1  ;;  %2246 = vadd.xlane.f32.xlu0 %v2245_v54  ;;  %v8263_v3 = vpop.f32.mrb[5].mxu0  ;;  %v2285_v56 = vadd.f32 %v2284_v37, %v2270_v4 }
 0x332   :  { %v2274_v18 = vmul.f32 %v8261_v0, %v8261_v0  ;;  %v2253_v1 = vadd.f32 %v8263_v3, %v8252_v39  ;;  %v2276_v46 = vmul.f32 %v8263_v3, %v8263_v3 }
 0x333   :  { %v2289_v45 = vadd.f32 %v2288_v50, %v2273_v10  ;;  %v2250_v26 = vadd.f32 %v2249_v47, %v8261_v0  ;;  %2286 = vadd.xlane.f32.xlu1 %v2285_v56 }
 0x334   :  { %v2293_v27 = vadd.f32 %v2276_v46, %v2275_v48  ;;  %v8272_v63 = vpop.f32.mrb[6].mxu0  ;;  %v8274_v30 = vpop.f32.mrb[4].mxu1 }
 0x335   :  { %v2279_v62 = vmul.f32 %v8272_v63, %v8272_v63  ;;  %v2254_v59 = vadd.f32 %v2253_v1, %v8274_v30  ;;  %v2277_v41 = vmul.f32 %v8274_v30, %v8274_v30  ;;  %v8281_v52 = vpop.f32.mrb[7].mxu0  ;;  %v8283_v25 = vpop.f32.mrb[5].mxu1  ;;  %v2290_v55 = vadd.f32 %v2289_v45, %v2274_v18 }
 0x336   :  { %v2258_v31 = vadd.f32 %v8281_v52, %v8272_v63  ;;  %v2280_v24 = vmul.f32 %v8281_v52, %v8281_v52  ;;  %v2278_v11 = vmul.f32 %v8283_v25, %v8283_v25 }
 0x337   :  { %v2294_v6 = vadd.f32 %v2293_v27, %v2277_v41  ;;  %v2255_v58 = vadd.f32 %v2254_v59, %v8283_v25  ;;  %2291 = vadd.xlane.f32.xlu0 %v2290_v55  ;;  %2251 = vadd.xlane.f32.xlu1 %v2250_v26 }
 0x338   :  { %v2298_v15 = vadd.f32 %v2280_v24, %v2279_v62  ;;  %v8292_v34 = vpop.f32.mrb[6].mxu1 }
 0x339   :  { %v2259_v8 = vadd.f32 %v2258_v31, %v8292_v34  ;;  %v2281_v51 = vmul.f32 %v8292_v34, %v8292_v34  ;;  %v8297_v23 = vpop.f32.mrb[7].mxu1  ;;  %v2295_v38 = vadd.f32 %v2294_v6, %v2278_v11  ;;  %v89_v6 = vld [vmem:[%s10728_s3] sm:$0xff] }
 0x33a   :  { %v2282_v44 = vmul.f32 %v8297_v23, %v8297_v23 }
 0x33b   :  { %v2299_v49 = vadd.f32 %v2298_v15, %v2281_v51  ;;  %v2260_v42 = vadd.f32 %v2259_v8, %v8297_v23  ;;  %2296 = vadd.xlane.f32.xlu1 %v2295_v38  ;;  %2256 = vadd.xlane.f32.xlu0 %v2255_v58  ;;  %v93_v38 = vld [vmem:[%s10729_s4] sm:$0xff] }
 0x33d   :  { %v2300_v7 = vadd.f32 %v2299_v49, %v2282_v44  ;;  %v90_v49 = vld [vmem:[%s10728_s3 + $0x8] sm:$0xff] }
 0x33f   :  { %2261 = vadd.xlane.f32.xlu0 %v2260_v42 }
 0x343   :  { %2301 = vadd.xlane.f32.xlu0 %v2300_v7 }
 0x3be   :  { %v2247_v5 = vpop.xlane.xlu0 %2246 }
 0x3bf   :  { %v2263_v17 = vmul.f32 0.001953125, %v2247_v5 }
 0x3c0   :  { %v2287_v36 = vpop.xlane.xlu1 %2286 }
 0x3c1   :  { %v2307_v2 = vmul.f32 %v2263_v17, %v2263_v17  ;;  %v2303_v20 = vmul.f32 0.001953125, %v2287_v36  ;;  %v91_v36 = vld [vmem:[%s10728_s3 + $0x10] sm:$0xff] }
 0x3c3   :  { %v2311_v43 = vsub.f32 %v2303_v20, %v2307_v2 }
 0x3c4   :  { %v2292_v19 = vpop.xlane.xlu0 %2291  ;;  %v2252_v32 = vpop.xlane.xlu1 %2251 }
 0x3c5   :  { %v2315_v4 = vmax.f32 %v2311_v43, 0.0  ;;  %v2264_v37 = vmul.f32 0.001953125, %v2252_v32  ;;  %v2304_v50 = vmul.f32 0.001953125, %v2292_v19 }
 0x3c7   :  { %v2319_v54 = vadd.f32 1e-05, %v2315_v4  ;;  %v2308_v48 = vmul.f32 %v2264_v37, %v2264_v37  ;;  %v92_v4 = vld [vmem:[%s10728_s3 + $0x18] sm:$0xff] }
 0x3c8   :  { %v2297_v47 = vpop.xlane.xlu1 %2296  ;;  %v2257_v10 = vpop.xlane.xlu0 %2256 }
 0x3c9   :  { %6532 = vrsqrt.f32 %v2319_v54  ;;  %v2312_v56 = vsub.f32 %v2304_v50, %v2308_v48  ;;  %v2265_v18 = vmul.f32 0.001953125, %v2257_v10  ;;  %v2305_v46 = vmul.f32 0.001953125, %v2297_v47  ;;  %v95_v48 = vld [vmem:[%s10729_s4 + $0x10] sm:$0xff]  ;;  %v96_v10 = vld [vmem:[%s10729_s4 + $0x18] sm:$0xff] }
 0x3cb   :  { %v2316_v1 = vmax.f32 %v2312_v56, 0.0  ;;  %v2309_v45 = vmul.f32 %v2265_v18, %v2265_v18 }
 0x3cc   :  { %v2262_v26 = vpop.xlane.xlu0 %2261 }
 0x3cd   :  { %v2320_v27 = vadd.f32 1e-05, %v2316_v1  ;;  %v2313_v62 = vsub.f32 %v2305_v46, %v2309_v45  ;;  %v2266_v59 = vmul.f32 0.001953125, %v2262_v26 }
 0x3cf   :  { %6534 = vrsqrt.f32 %v2320_v27  ;;  %v2317_v41 = vmax.f32 %v2313_v62, 0.0  ;;  %v2310_v24 = vmul.f32 %v2266_v59, %v2266_v59 }
 0x3d0   :  { %v2302_v55 = vpop.xlane.xlu0 %2301 }
 0x3d1   :  { %v2321_v31 = vadd.f32 1e-05, %v2317_v41  ;;  %v2306_v11 = vmul.f32 0.001953125, %v2302_v55 }
 0x3d3   :  { %v6533_v58 = vpop.eup %6532  ;;  %6536 = vrsqrt.f32 %v2321_v31  ;;  %v2314_v15 = vsub.f32 %v2306_v11, %v2310_v24 }
 0x3d4   :  { %v2327_v8 = vmul.f32 %v6533_v58, %v89_v6 }
 0x3d5   :  { %v2318_v51 = vmax.f32 %v2314_v15, 0.0 }
 0x3d6   :  { %2341 = vperm.xlu1 %5700, %v2327_v8   ;;  %v2331_v44 = vmul.f32 %v2327_v8, %v2263_v17  ;;  %v94_v17 = vld [vmem:[%s10729_s4 + $0x8] sm:$0xff] }
 0x3d7   :  { %v2322_v42 = vadd.f32 1e-05, %v2318_v51 }
 0x3d8   :  { %v2335_v7 = vsub.f32 %v93_v38, %v2331_v44 }
 0x3d9   :  { %v6535_v53 = vpop.eup %6534  ;;  %6538 = vrsqrt.f32 %v2322_v42 }
 0x3da   :  { %v2328_v5 = vmul.f32 %v6535_v53, %v90_v49  ;;  %2377 = vperm.xlu1 %5700, %v2335_v7   ;;  %v10942_v49 = vld [vmem:[#allocation10_spill] sm:$0xff]  ;;  %v10943_v7 = vld [vmem:[#allocation11_spill] sm:$0xff] }
 0x3dc   :  { %2346 = vperm.xlu0 %5701, %v2328_v5   ;;  %v2332_v20 = vmul.f32 %v2328_v5, %v2264_v37  ;;  %v10944_v5 = vld [vmem:[#allocation12_spill] sm:$0xff] }
 0x3dd   :  { %v6537_v2 = vpop.eup %6536 }
 0x3de   :  { %v2329_v43 = vmul.f32 %v6537_v2, %v91_v36  ;;  %v2336_v19 = vsub.f32 %v94_v17, %v2332_v20 }
 0x3e0   :  { %2351 = vperm.xlu1 %5700, %v2329_v43   ;;  %v2333_v54 = vmul.f32 %v2329_v43, %v2265_v18  ;;  %v10945_v43 = vld [vmem:[#allocation14_spill] sm:$0xff] }
 0x3e2   :  { %v2337_v37 = vsub.f32 %v95_v48, %v2333_v54 }
 0x3e3   :  { %v6539_v32 = vpop.eup %6538 }
 0x3e4   :  { %2382 = vperm.xlu1 %5700, %v2336_v19   ;;  %v2330_v50 = vmul.f32 %v6539_v32, %v92_v4  ;;  %v10946_v19 = vld [vmem:[#allocation15_spill] sm:$0xff] }
 0x3e6   :  { %v2334_v47 = vmul.f32 %v2330_v50, %v2266_v59 }
 0x3e8   :  { %2356 = vperm.xlu1 %5700, %v2330_v50   ;;  %v2338_v56 = vsub.f32 %v96_v10, %v2334_v47  ;;  %v10947_v50 = vld [vmem:[#allocation6_spill] sm:$0xff] }
 0x3ec   :  { %2387 = vperm.xlu1 %5700, %v2337_v37  }
 0x3f0   :  { %2392 = vperm.xlu1 %5700, %v2338_v56   ;;  %v10948_v56 = vld [vmem:[#allocation18_spill] sm:$0xff] }
 0x455   :  { %v2342_v1 = vpop.permute.xlu1 %2341 }
 0x456   :  { %v2359_v46 = vmul.f32 %v2342_v1, %v8222_v29  ;;  %v2360_v18 = vmul.f32 %v2342_v1, %v8226_v40  ;;  %v2361_v45 = vmul.f32 %v2342_v1, %v8234_v9  ;;  %v2362_v26 = vmul.f32 %v2342_v1, %v8243_v61 }
 0x459   :  { %v2378_v27 = vpop.permute.xlu1 %2377 }
 0x45a   :  { %v2395_v62 = vadd.f32 %v2378_v27, %v2359_v46  ;;  %v2396_v41 = vadd.f32 %v2378_v27, %v2360_v18  ;;  %v2397_v59 = vadd.f32 %v2378_v27, %v2361_v45  ;;  %v2398_v55 = vadd.f32 %v2378_v27, %v2362_v26  ;;  %v10950_v26 = vld [vmem:[#allocation19_spill] sm:$0xff] }
 0x45b   :  { %v2347_v51 = vpop.permute.xlu0 %2346 }
 0x45c   :  { %v8334_v31 = vmax.f32 %v2395_v62, 0.0  ;;  %v8336_v24 = vmax.f32 %v2396_v41, 0.0  ;;  %v8338_v11 = vmax.f32 %v2397_v59, 0.0  ;;  %v8340_v6 = vmax.f32 %v2398_v55, 0.0  ;;  %v10951_v62 = vld [vmem:[#allocation16_spill] sm:$0xff]  ;;  %v10952_v41 = vld [vmem:[#allocation17_spill] sm:$0xff] }
 0x45d   :  { %v2363_v4 = vmul.f32 %v2347_v51, %v8232_v16  ;;  %v2364_v54 = vmul.f32 %v2347_v51, %v8241_v21  ;;  %v2365_v37 = vmul.f32 %v2347_v51, %v8254_v22  ;;  %v2366_v46 = vmul.f32 %v2347_v51, %v8261_v0  ;;  %v10949_v21 = vld [vmem:[#allocation7_spill] sm:$0xff] }
 0x45e   :  { %v5702_v29 = vpack.i.bf16 %v8336_v24, %v8334_v31  ;;  %v5707_v40 = vpack.i.bf16 %v8340_v6, %v8338_v11  ;;  %v2507_v9 = vmul.f32 %v8340_v6, %v6743_v57  ;;  %v2504_v58 = vmul.f32 %v8334_v31, %v6779_v12  ;;  %v10953_v55 = vld [vmem:[#allocation23_spill] sm:$0xff] }
 0x45f   :  { %v8348_v61 = vpop.permute.xlu1 %2351  ;;  %v2505_v15 = vmul.f32 %v8336_v24, %v6782_v13  ;;  %v2506_v8 = vmul.f32 %v8338_v11, %v6786_v14  ;;  %v2524_v42 = vmul.f32 %v8334_v31, %v10942_v49  ;;  %v2525_v53 = vmul.f32 %v8336_v24, %v10943_v7 }
 0x460   :  { %5703 = vrot.lane.b32.xlu0 %v5702_v29, %s6564_s13  ;;  %5708 = vrot.lane.b32.xlu1 %v5707_v40, %s6564_s13  ;;  %v5722_v44 = vpack.i.bf16 %v6750_v60, %v2507_v9  ;;  %v2526_v36 = vmul.f32 %v8338_v11, %v10944_v5  ;;  %v5712_v20 = vpack.i.bf16 %v2504_v58, %v6750_v60  ;;  %v10954_v58 = vld [vmem:[#allocation13_spill] sm:$0xff] }
 0x461   :  { %v5717_v38 = vpack.i.bf16 %v2506_v8, %v2505_v15  ;;  %v2545_v17 = vmul.f32 %v8336_v24, %v10945_v43  ;;  %v2546_v32 = vmul.f32 %v8338_v11, %v10946_v19  ;;  %v2527_v48 = vmul.f32 %v8340_v6, %v10947_v50 }
 0x462   :  { %v5732_v47 = vpack.i.bf16 %v2526_v36, %v2525_v53  ;;  %v8379_v1 = vmul.f32 %v8338_v11, %v10948_v56  ;;  %v5727_v45 = vpack.i.bf16 %v2524_v42, %v10949_v21  ;;  %v2586_v27 = vmul.f32 %v8340_v6, %v10950_v26  ;;  %v10956_v53 = vld [vmem:[#allocation21_spill] sm:$0xff] }
 0x463   :  { %v2383_v2 = vpop.permute.xlu1 %2382  ;;  %v5747_v10 = vpack.i.bf16 %v2546_v32, %v2545_v17  ;;  %v8387_v22 = vmul.f32 %v8334_v31, %v10951_v62  ;;  %v8391_v59 = vmul.f32 %v8336_v24, %v10952_v41  ;;  %v8395_v29 = vmul.f32 %v8338_v11, %v10953_v55 }
 0x464   :  { %5723 = vrot.lane.b32.xlu0 %v5722_v44, %s6567_s16  ;;  %5713 = vrot.lane.b32.xlu1 %v5712_v20, %s6567_s16  ;;  %v2399_v16 = vadd.f32 %v2383_v2, %v2363_v4  ;;  %v2400_v18 = vadd.f32 %v2383_v2, %v2364_v54  ;;  %v2401_v0 = vadd.f32 %v2383_v2, %v2365_v37  ;;  %v10955_v44 = vld [vmem:[#allocation24_spill] sm:$0xff]  ;;  %v10957_v20 = vld [vmem:[#allocation22_spill] sm:$0xff] }
 0x465   :  { %v2402_v40 = vadd.f32 %v2383_v2, %v2366_v46  ;;  %v5737_v9 = vpack.i.bf16 %v10949_v21, %v2527_v48  ;;  %v2544_v15 = vmul.f32 %v8334_v31, %v10954_v58  ;;  %v5762_v8 = vpack.i.bf16 %v2586_v27, %v8379_v1  ;;  %v10959_v4 = vld [vmem:[#allocation28_spill] sm:$0xff]  ;;  %v10965_v21 = vld [vmem:[#allocation3_spill] sm:$0xff] }
 0x466   :  { %v5757_v51 = vpack.i.bf16 %v8391_v59, %v8387_v22  ;;  %v8407_v42 = vmul.f32 %v8340_v6, %v10955_v44  ;;  %v8411_v36 = vmul.f32 %v8334_v31, %v10956_v53  ;;  %v8413_v2 = vmax.f32 %v2399_v16, 0.0  ;;  %v10960_v1 = vld [vmem:[#allocation36_spill] sm:$0xff]  ;;  %v10961_v16 = vld [vmem:[#allocation37_spill] sm:$0xff] }
 0x467   :  { %v8417_v17 = vmul.f32 %v8336_v24, %v10957_v20  ;;  %v8425_v54 = vmul.f32 %v8336_v24, %v10959_v4  ;;  %v8427_v48 = vmax.f32 %v2400_v18, 0.0  ;;  %v8433_v46 = vmul.f32 %v8334_v31, %v10960_v1  ;;  %v8443_v59 = vpop.permute.xlu1 %2356 }
 0x468   :  { %5728 = vrot.lane.b32.xlu0 %v5727_v45, %s6572_s19  ;;  %5718 = vrot.lane.b32.xlu1 %v5717_v38, %s6567_s16  ;;  %v10958_v38 = vld [vmem:[#allocation25_spill] sm:$0xff]  ;;  %v5772_v37 = vpack.i.bf16 %v8407_v42, %v8395_v29  ;;  %v8437_v45 = vmul.f32 %v8336_v24, %v10961_v16  ;;  %v8439_v27 = vmax.f32 %v2401_v0, 0.0  ;;  %v8441_v22 = vmax.f32 %v2402_v40, 0.0  ;;  %v10968_v42 = vld [vmem:[#allocation34_spill] sm:$0xff] }
 0x469   :  { %v8421_v32 = vmul.f32 %v8334_v31, %v10958_v38  ;;  %v5767_v18 = vpack.i.bf16 %v8417_v17, %v8411_v36  ;;  %v8455_v0 = vmul.f32 %v8338_v11, %v10962_v33  ;;  %v10963_v40 = vld [vmem:[#allocation9_spill] sm:$0xff]  ;;  %v10966_v17 = vld [vmem:[#allocation27_spill] sm:$0xff]  ;;  %v8472_v60 = vmul.f32 %v8336_v24, %v10968_v42 }
 0x46a   :  { %v5742_v28 = vpack.i.bf16 %v2544_v15, %v10963_v40  ;;  %v8468_v29 = vmul.f32 %v8334_v31, %v10966_v17  ;;  %v2367_v15 = vmul.f32 %v8348_v61, %v8252_v39  ;;  %v8484_v31 = vmul.f32 %v8439_v27, %v6786_v14 }
 0x46b   :  { %10969 = vst [vmem:[#allocation11_spill] sm:$0xff] %v8472_v60  ;;  %v8488_v24 = vmul.f32 %v8441_v22, %v6743_v57  ;;  %v2368_v39 = vmul.f32 %v8348_v61, %v8263_v3  ;;  %v2388_v44 = vpop.permute.xlu1 %2387  ;;  %v8503_v57 = vmul.f32 %v8439_v27, %v10944_v5  ;;  %v8507_v3 = vmul.f32 %v8441_v22, %v10947_v50 }
 0x46c   :  { %5738 = vrot.lane.b32.xlu0 %v5737_v9, %s6572_s19  ;;  %5733 = vrot.lane.b32.xlu1 %v5732_v47, %s6572_s19  ;;  %v2547_v9 = vmul.f32 %v8340_v6, %v10964_v35  ;;  %v8462_v47 = vmul.f32 %v8340_v6, %v10965_v21  ;;  %10967 = vst [vmem:[#allocation10_spill] sm:$0xff] %v8468_v29 }
 0x46d   :  { %v2371_v29 = vmul.f32 %v8443_v59, %v8272_v63  ;;  %10970 = vst [vmem:[#allocation12_spill] sm:$0xff] %v8503_v57  ;;  %10971 = vst [vmem:[#allocation14_spill] sm:$0xff] %v8507_v3  ;;  %v8516_v63 = vmul.f32 %v8439_v27, %v10946_v19  ;;  %v8545_v57 = vmul.f32 %v8427_v48, %v10943_v7 }
 0x46e   :  { %v5752_v36 = vpack.i.bf16 %v10963_v40, %v2547_v9  ;;  %v8520_v9 = vmul.f32 %v8441_v22, %v10964_v35  ;;  %v8527_v40 = vmul.f32 %v8413_v2, %v6779_v12  ;;  %v8549_v3 = vmul.f32 %v8413_v2, %v10954_v58 }
 0x46f   :  { %10973 = vst [vmem:[#allocation15_spill] sm:$0xff] %v8516_v63  ;;  %10977 = vst [vmem:[#allocation13_spill] sm:$0xff] %v8545_v57  ;;  %v8555_v63 = vmul.f32 %v8427_v48, %v10945_v43 }
 0x470   :  { %5743 = vrot.lane.b32.xlu0 %v5742_v28, %s6565_s14  ;;  %5748 = vrot.lane.b32.xlu1 %v5747_v10, %s6565_s14  ;;  %v2369_v28 = vmul.f32 %v8348_v61, %v8274_v30  ;;  %v2370_v10 = vmul.f32 %v8348_v61, %v8283_v25  ;;  %v10972_v30 = vld [vmem:[#allocation30_spill] sm:$0xff]  ;;  %10974 = vst [vmem:[#allocation18_spill] sm:$0xff] %v8527_v40  ;;  %10978 = vst [vmem:[#allocation21_spill] sm:$0xff] %v8549_v3  ;;  %v2393_v3 = vpop.permute.xlu1 %2392 }
 0x471   :  { %v2626_v25 = vmul.f32 %v8340_v6, %v10972_v30  ;;  %v8531_v61 = vmul.f32 %v8427_v48, %v6782_v13  ;;  %v2372_v30 = vmul.f32 %v8443_v59, %v8281_v52  ;;  %v2404_v52 = vadd.f32 %v2388_v44, %v2368_v39  ;;  %10980 = vst [vmem:[#allocation22_spill] sm:$0xff] %v8555_v63 }
 0x472   :  { %v2405_v60 = vadd.f32 %v2388_v44, %v2369_v28  ;;  %v2406_v50 = vadd.f32 %v2388_v44, %v2370_v10  ;;  %v10979_v10 = vld [vmem:[#allocation31_spill] sm:$0xff]  ;;  %v8620_v63 = vmul.f32 %v8413_v2, %v10960_v1 }
 0x473   :  { %10975 = vst [vmem:[#allocation17_spill] sm:$0xff] %v8531_v61  ;;  %v5782_v28 = vpack.i.bf16 %v10979_v10, %v2626_v25  ;;  %v8613_v57 = vmax.f32 %v2404_v52, 0.0 }
 0x474   :  { %5753 = vrot.lane.b32.xlu0 %v5752_v36, %s6565_s14  ;;  %5763 = vrot.lane.b32.xlu1 %v5762_v8, %s6573_s25  ;;  %v8539_v8 = vmul.f32 %v8413_v2, %v10942_v49  ;;  %v2403_v36 = vadd.f32 %v2388_v44, %v2367_v15  ;;  %v8559_v15 = vmul.f32 %v8427_v48, %v10952_v41  ;;  %v8561_v35 = vmax.f32 %v2405_v60, 0.0  ;;  %v10984_v60 = vld [vmem:[#allocation29_spill] sm:$0xff] }
 0x475   :  { %v8572_v44 = vmul.f32 %v8427_v48, %v10959_v4  ;;  %v8574_v39 = vmax.f32 %v2406_v50, 0.0  ;;  %v8580_v10 = vmul.f32 %v8439_v27, %v10984_v60  ;;  %v8592_v50 = vmul.f32 %v8439_v27, %v10953_v55 }
 0x476   :  { %10976 = vst [vmem:[#allocation23_spill] sm:$0xff] %v8539_v8  ;;  %10981 = vst [vmem:[#allocation25_spill] sm:$0xff] %v8559_v15  ;;  %v8586_v40 = vmax.f32 %v2403_v36, 0.0  ;;  %v8596_v25 = vmul.f32 %v8338_v11, %v10984_v60  ;;  %v8603_v36 = vmul.f32 %v8413_v2, %v10958_v38  ;;  %v8607_v8 = vmul.f32 %v8427_v48, %v10968_v42  ;;  %v10990_v15 = vld [vmem:[#allocation32_spill] sm:$0xff] }
 0x477   :  { %10983 = vst [vmem:[#allocation36_spill] sm:$0xff] %v8572_v44  ;;  %10985 = vst [vmem:[#allocation37_spill] sm:$0xff] %v8580_v10  ;;  %v8624_v44 = vmul.f32 %v8427_v48, %v10961_v16  ;;  %v8642_v10 = vmul.f32 %v8441_v22, %v10965_v21  ;;  %v8650_v52 = vmul.f32 %v8338_v11, %v10990_v15  ;;  %v11002_v11 = vld [vmem:[#allocation33_spill] sm:$0xff] }
 0x478   :  { %5758 = vrot.lane.b32.xlu0 %v5757_v51, %s6573_s25  ;;  %5773 = vrot.lane.b32.xlu1 %v5772_v37, %s6574_s26  ;;  %v8568_v51 = vmul.f32 %v8439_v27, %v10948_v56  ;;  %v8584_v37 = vmul.f32 %v8427_v48, %v10957_v20  ;;  %10987 = vst [vmem:[#allocation3_spill] sm:$0xff] %v8592_v50  ;;  %10988 = vst [vmem:[#allocation27_spill] sm:$0xff] %v8596_v25 }
 0x479   :  { %10989 = vst [vmem:[#allocation34_spill] sm:$0xff] %v8607_v8  ;;  %v2407_v50 = vadd.f32 %v2393_v3, %v2371_v29  ;;  %v2408_v25 = vadd.f32 %v2393_v3, %v2372_v30  ;;  %v2374_v29 = vmul.f32 %v8443_v59, %v8297_v23  ;;  %v10992_v30 = vpack.i.bf16 %v8437_v45, %v8433_v46 }
 0x47a   :  { %10982 = vst [vmem:[#allocation28_spill] sm:$0xff] %v8568_v51  ;;  %10986 = vst [vmem:[#allocation38_spill] sm:$0xff] %v8584_v37  ;;  %v8611_v51 = vmul.f32 %v8439_v27, %v10990_v15  ;;  %v2373_v37 = vmul.f32 %v8443_v59, %v8292_v34  ;;  %v8654_v34 = vmul.f32 %v8413_v2, %v10966_v17 }
 0x47b   :  { %v8668_v8 = vmax.f32 %v2407_v50, 0.0  ;;  %v8672_v23 = vmul.f32 %v8613_v57, %v6782_v13  ;;  %v8676_v46 = vmul.f32 %v8561_v35, %v6786_v14  ;;  %v8678_v45 = vmax.f32 %v2408_v25, 0.0 }
 0x47c   :  { %5768 = vrot.lane.b32.xlu0 %v5767_v18, %s6574_s26  ;;  %5783 = vrot.lane.b32.xlu1 %v5782_v28, %s6575_s27  ;;  %v8634_v18 = vmul.f32 %v8439_v27, %v10962_v33  ;;  %v10991_v28 = vpack.i.bf16 %v8425_v54, %v8421_v32  ;;  %v2409_v61 = vadd.f32 %v2393_v3, %v2373_v37 }
 0x47d   :  { %10993 = vst [vmem:[#allocation29_spill] sm:$0xff] %v8672_v23  ;;  %10994 = vst [vmem:[#allocation32_spill] sm:$0xff] %v8676_v46  ;;  %v10995_v59 = vpack.i.bf16 %v8427_v48, %v8413_v2  ;;  %v8690_v37 = vmul.f32 %v8561_v35, %v10944_v5  ;;  %v8694_v50 = vmul.f32 %v8613_v57, %v10945_v43  ;;  %v11009_v23 = vld [vmem:[#allocation10_spill] sm:$0xff] }
 0x47e   :  { %v10999_v25 = vpack.i.bf16 %v8462_v47, %v8455_v0  ;;  %v8718_v0 = vmul.f32 %v8613_v57, %v10952_v41  ;;  %v8722_v47 = vmul.f32 %v8561_v35, %v10948_v56  ;;  %v8728_v48 = vmul.f32 %v8574_v39, %v10950_v26 }
 0x47f   :  { %10997 = vst [vmem:[#allocation42_spill] sm:$0xff] %v8690_v37  ;;  %10998 = vst [vmem:[#allocation43_spill] sm:$0xff] %v8694_v50  ;;  %v8736_v54 = vmul.f32 %v8613_v57, %v10957_v20  ;;  %v11005_v32 = vpack.i.bf16 %v8488_v24, %v8484_v31  ;;  %v11008_v37 = vld [vmem:[#allocation11_spill] sm:$0xff]  ;;  %v8768_v50 = vmul.f32 %v8574_v39, %v10965_v21 }
 0x480   :  { %5778 = vrot.lane.b32.xlu0 %v10991_v28, %s6575_s27  ;;  %5788 = vrot.lane.b32.xlu1 %v10992_v30, %s6571_s24  ;;  %v2410_v28 = vadd.f32 %v2393_v3, %v2374_v29  ;;  %v8686_v3 = vmul.f32 %v8613_v57, %v10943_v7  ;;  %v8696_v29 = vmax.f32 %v2409_v61, 0.0  ;;  %v8706_v30 = vmul.f32 %v8561_v35, %v10946_v19 }
 0x481   :  { %v2646_v61 = vmul.f32 %v8340_v6, %v11002_v11  ;;  %11003 = vst [vmem:[#allocation33_spill] sm:$0xff] %v8718_v0  ;;  %v8732_v6 = vmul.f32 %v8586_v40, %v10956_v53  ;;  %v11010_v46 = vpack.i.bf16 %v11008_v37, %v11009_v23  ;;  %11012 = vst [vmem:[#allocation10_spill] sm:$0xff] %v8768_v50  ;;  %v11015_v23 = vld [vmem:[#allocation12_spill] sm:$0xff] }
 0x482   :  { %10996 = vst [vmem:[#allocation41_spill] sm:$0xff] %v8686_v3  ;;  %11000 = vst [vmem:[#allocation44_spill] sm:$0xff] %v8706_v30  ;;  %v8748_v30 = vmul.f32 %v8586_v40, %v10958_v38  ;;  %v8752_v3 = vmul.f32 %v8613_v57, %v10959_v4  ;;  %v8781_v24 = vmul.f32 %v8586_v40, %v10960_v1 }
 0x483   :  { %11004 = vst [vmem:[#allocation46_spill] sm:$0xff] %v8732_v6  ;;  %v8785_v31 = vmul.f32 %v8613_v57, %v10961_v16  ;;  %v8801_v37 = vmul.f32 %v8586_v40, %v10966_v17  ;;  %v8839_v6 = vmul.f32 %v8678_v45, %v10952_v41 }
 0x484   :  { %5808 = vrot.lane.b32.xlu0 %v10995_v59, %s6564_s13  ;;  %5793 = vrot.lane.b32.xlu1 %v10999_v25, %s6571_s24  ;;  %v8710_v59 = vmul.f32 %v8586_v40, %v10951_v62  ;;  %v2588_v25 = vmul.f32 %v8413_v2, %v10951_v62  ;;  %11006 = vst [vmem:[#allocation47_spill] sm:$0xff] %v8748_v30  ;;  %11007 = vst [vmem:[#allocation48_spill] sm:$0xff] %v8752_v3  ;;  %v8770_v62 = vmax.f32 %v2410_v28, 0.0 }
 0x485   :  { %v8789_v28 = vmul.f32 %v8668_v8, %v6779_v12  ;;  %v8805_v3 = vmul.f32 %v8613_v57, %v10968_v42  ;;  %11023 = vst [vmem:[#allocation50_spill] sm:$0xff] %v8839_v6  ;;  %v11032_v6 = vld [vmem:[#allocation8_spill] sm:$0xff] }
 0x486   :  { %11001 = vst [vmem:[#allocation45_spill] sm:$0xff] %v8710_v59  ;;  %v11013_v59 = vld [vmem:[#allocation35_spill] sm:$0xff] }
 0x487   :  { %v5802_v0 = vpack.i.bf16 %v11013_v59, %v2646_v61  ;;  %v11014_v61 = vld [vmem:[#allocation14_spill] sm:$0xff]  ;;  %11017 = vst [vmem:[#allocation35_spill] sm:$0xff] %v8801_v37  ;;  %v11024_v37 = vld [vmem:[#allocation15_spill] sm:$0xff] }
 0x488   :  { %5823 = vrot.lane.b32.xlu0 %v11005_v32, %s6567_s16  ;;  %5798 = vrot.lane.b32.xlu1 %v11010_v46, %s6576_s28  ;;  %v8764_v32 = vmul.f32 %v8561_v35, %v10962_v33  ;;  %v11016_v30 = vpack.i.bf16 %v11014_v61, %v11015_v23  ;;  %v8797_v46 = vmul.f32 %v8678_v45, %v6782_v13  ;;  %v11027_v61 = vld [vmem:[#allocation4_spill] sm:$0xff] }
 0x489   :  { %11018 = vst [vmem:[#allocation14_spill] sm:$0xff] %v8805_v3  ;;  %v8817_v13 = vmul.f32 %v8678_v45, %v10943_v7  ;;  %v2591_v23 = vmul.f32 %v8441_v22, %v10950_v26  ;;  %v11025_v3 = vpack.i.bf16 %v8520_v9, %v11024_v37  ;;  %v8849_v26 = vmul.f32 %v8696_v29, %v10948_v56  ;;  %v11030_v37 = vld [vmem:[#allocation6_spill] sm:$0xff] }
 0x48a   :  { %11011 = vst [vmem:[#allocation11_spill] sm:$0xff] %v8764_v32  ;;  %v11019_v32 = vld [vmem:[#allocation20_spill] sm:$0xff]  ;;  %v8853_v7 = vmul.f32 %v8696_v29, %v6786_v14  ;;  %v8857_v41 = vmul.f32 %v8770_v62, %v11027_v61  ;;  %v11028_v9 = vpack.i.bf16 %v8441_v22, %v8439_v27  ;;  %v8869_v56 = vmul.f32 %v8668_v8, %v10956_v53 }
 0x48b   :  { %v5847_v50 = vpack.i.bf16 %v2588_v25, %v11019_v32  ;;  %v8829_v25 = vmul.f32 %v8678_v45, %v10945_v43  ;;  %v8873_v14 = vmul.f32 %v8696_v29, %v10944_v5  ;;  %v8877_v43 = vmul.f32 %v8770_v62, %v11030_v37  ;;  %v11033_v5 = vld [vmem:[#allocation17_spill] sm:$0xff] }
 0x48c   :  { %5833 = vrot.lane.b32.xlu0 %v11016_v30, %s6572_s19  ;;  %5803 = vrot.lane.b32.xlu1 %v5802_v0, %s6576_s28  ;;  %v8813_v30 = vmul.f32 %v8668_v8, %v10942_v49  ;;  %v8825_v0 = vmul.f32 %v8668_v8, %v10954_v58  ;;  %11026 = vst [vmem:[#allocation15_spill] sm:$0xff] %v8853_v7 }
 0x48d   :  { %11022 = vst [vmem:[#allocation49_spill] sm:$0xff] %v8829_v25  ;;  %11029 = vst [vmem:[#allocation4_spill] sm:$0xff] %v8873_v14  ;;  %v8889_v25 = vmul.f32 %v8668_v8, %v10958_v38  ;;  %v8897_v27 = vmul.f32 %v8696_v29, %v10946_v19  ;;  %v8908_v7 = vmul.f32 %v8668_v8, %v10960_v1 }
 0x48e   :  { %11020 = vst [vmem:[#allocation12_spill] sm:$0xff] %v8813_v30  ;;  %11021 = vst [vmem:[#allocation20_spill] sm:$0xff] %v8825_v0  ;;  %v8885_v0 = vmul.f32 %v8561_v35, %v10984_v60  ;;  %v11034_v30 = vld [vmem:[#allocation18_spill] sm:$0xff]  ;;  %v2608_v19 = vmul.f32 %v8413_v2, %v10956_v53  ;;  %v5857_v38 = vpack.i.bf16 %v11019_v32, %v2591_v23 }
 0x48f   :  { %11031 = vst [vmem:[#allocation6_spill] sm:$0xff] %v8877_v43  ;;  %v11035_v14 = vpack.i.bf16 %v11033_v5, %v11034_v30  ;;  %v8925_v1 = vmul.f32 %v8561_v35, %v10990_v15  ;;  %v8929_v30 = vmul.f32 %v8668_v8, %v10966_v17  ;;  %v8933_v53 = vmul.f32 %v8678_v45, %v10957_v20  ;;  %v11040_v5 = vld [vmem:[#allocation23_spill] sm:$0xff] }
 0x490   :  { %5843 = vrot.lane.b32.xlu0 %v11025_v3, %s6565_s14  ;;  %5813 = vrot.lane.b32.xlu1 %v11028_v9, %s6564_s13  ;;  %v8865_v3 = vmul.f32 %v8561_v35, %v10953_v55  ;;  %v8901_v9 = vmul.f32 %v8770_v62, %v11032_v6  ;;  %v8946_v17 = vmul.f32 %v8678_v45, %v10959_v4 }
 0x491   :  { %11036 = vst [vmem:[#allocation8_spill] sm:$0xff] %v8925_v1  ;;  %v8950_v20 = vmul.f32 %v8696_v29, %v10984_v60  ;;  %v8962_v23 = vmul.f32 %v8696_v29, %v10962_v33  ;;  %v8966_v4 = vmul.f32 %v8770_v62, %v10965_v21  ;;  %v11044_v60 = vld [vmem:[#allocation26_spill] sm:$0xff]  ;;  %v11054_v21 = vld [vmem:[#allocation36_spill] sm:$0xff] }
 0x492   :  { %11037 = vst [vmem:[#allocation17_spill] sm:$0xff] %v8946_v17  ;;  %v5862_v1 = vpack.i.bf16 %v2608_v19, %v11044_v60  ;;  %v11046_v19 = vld [vmem:[#allocation22_spill] sm:$0xff]  ;;  %v11050_v17 = vld [vmem:[#allocation25_spill] sm:$0xff] }
 0x493   :  { %11038 = vst [vmem:[#allocation18_spill] sm:$0xff] %v8950_v20  ;;  %v11052_v33 = vld [vmem:[#allocation30_spill] sm:$0xff] }
 0x494   :  { %5848 = vrot.lane.b32.xlu0 %v5847_v50, %s6573_s25  ;;  %5818 = vrot.lane.b32.xlu1 %v11035_v14, %s6567_s16  ;;  %v8920_v50 = vmul.f32 %v8678_v45, %v10961_v16  ;;  %v8939_v16 = vmul.f32 %v8696_v29, %v10953_v55  ;;  %v11039_v14 = vld [vmem:[#allocation13_spill] sm:$0xff]  ;;  %v11042_v55 = vld [vmem:[#allocation24_spill] sm:$0xff] }
 0x495   :  { %v11041_v2 = vpack.i.bf16 %v11039_v14, %v11040_v5  ;;  %v2611_v43 = vmul.f32 %v8441_v22, %v11042_v55  ;;  %11043 = vst [vmem:[#allocation13_spill] sm:$0xff] %v8962_v23  ;;  %v8977_v5 = vmul.f32 %v8696_v29, %v10990_v15  ;;  %v11049_v15 = vld [vmem:[#allocation28_spill] sm:$0xff]  ;;  %v11053_v23 = vld [vmem:[#allocation37_spill] sm:$0xff] }
 0x496   :  { %v11051_v20 = vpack.i.bf16 %v11049_v15, %v11050_v17  ;;  %v11060_v17 = vld [vmem:[#allocation27_spill] sm:$0xff]  ;;  %v11062_v15 = vpack.i.bf16 %v8624_v44, %v8620_v63  ;;  %v2651_v63 = vmul.f32 %v8441_v22, %v11002_v11  ;;  %v11067_v44 = vld [vmem:[#allocation5_spill] sm:$0xff] }
 0x498   :  { %5858 = vrot.lane.b32.xlu0 %v5857_v38, %s6573_s25  ;;  %5828 = vrot.lane.b32.xlu1 %v11041_v2, %s6572_s19  ;;  %v8973_v2 = vmul.f32 %v8678_v45, %v10968_v42  ;;  %v11047_v38 = vld [vmem:[#allocation21_spill] sm:$0xff]  ;;  %v5872_v42 = vpack.i.bf16 %v11044_v60, %v2611_v43  ;;  %v11059_v43 = vld [vmem:[#allocation31_spill] sm:$0xff] }
 0x499   :  { %v11048_v14 = vpack.i.bf16 %v11046_v19, %v11047_v38  ;;  %v11056_v38 = vld [vmem:[#allocation3_spill] sm:$0xff] }
 0x49a   :  { %11045 = vst [vmem:[#allocation23_spill] sm:$0xff] %v8973_v2  ;;  %v11055_v2 = vpack.i.bf16 %v11053_v23, %v11054_v21  ;;  %v11063_v23 = vld [vmem:[#allocation34_spill] sm:$0xff]  ;;  %v2514_v21 = vmul.f32 %v8586_v40, %v6779_v12  ;;  %v11068_v12 = vpack.i.bf16 %v8654_v34, %v8650_v52  ;;  %v11070_v52 = vpack.i.bf16 %v8613_v57, %v8586_v40 }
 0x49b   :  { %v2557_v57 = vmul.f32 %v8574_v39, %v11032_v6  ;;  %v11081_v6 = vpack.i.bf16 %v8728_v48, %v8722_v47  ;;  %v2636_v48 = vmul.f32 %v8574_v39, %v11052_v33  ;;  %v11087_v47 = vld [vmem:[#allocation10_spill] sm:$0xff] }
 0x49c   :  { %5863 = vrot.lane.b32.xlu0 %v5862_v1, %s6574_s26  ;;  %5838 = vrot.lane.b32.xlu1 %v11048_v14, %s6565_s14  ;;  %v2631_v1 = vmul.f32 %v8441_v22, %v11052_v33  ;;  %v11057_v14 = vld [vmem:[#allocation38_spill] sm:$0xff]  ;;  %v11069_v22 = vld [vmem:[#allocation7_spill] sm:$0xff] }
 0x49d   :  { %v11058_v19 = vpack.i.bf16 %v11056_v38, %v11057_v14  ;;  %v5927_v38 = vpack.i.bf16 %v2514_v21, %v11067_v44  ;;  %v2537_v14 = vmul.f32 %v8574_v39, %v11030_v37  ;;  %v11074_v37 = vld [vmem:[#allocation9_spill] sm:$0xff]  ;;  %v11079_v21 = vld [vmem:[#allocation43_spill] sm:$0xff] }
 0x49f   :  { %v5952_v34 = vpack.i.bf16 %v11069_v22, %v2537_v14  ;;  %v11090_v14 = vld [vmem:[#allocation48_spill] sm:$0xff] }
 0x4a0   :  { %5873 = vrot.lane.b32.xlu0 %v5872_v42, %s6574_s26  ;;  %5853 = vrot.lane.b32.xlu1 %v11051_v20, %s6573_s25  ;;  %v5887_v42 = vpack.i.bf16 %v11059_v43, %v2631_v1  ;;  %v11061_v20 = vpack.i.bf16 %v8603_v36, %v11060_v17  ;;  %v11065_v1 = vpack.i.bf16 %v8642_v10, %v8634_v18 }
 0x4a1   :  { %v11066_v36 = vpack.i.bf16 %v8574_v39, %v8561_v35  ;;  %v5912_v10 = vpack.i.bf16 %v11013_v59, %v2651_v63  ;;  %v2534_v18 = vmul.f32 %v8586_v40, %v10942_v49  ;;  %v2554_v49 = vmul.f32 %v8586_v40, %v10954_v58  ;;  %v11078_v40 = vld [vmem:[#allocation44_spill] sm:$0xff]  ;;  %v11082_v63 = vld [vmem:[#allocation33_spill] sm:$0xff] }
 0x4a2   :  { %v5967_v58 = vpack.i.bf16 %v11074_v37, %v2557_v57  ;;  %v11095_v57 = vpack.i.bf16 %v8785_v31, %v8781_v24 }
 0x4a4   :  { %5883 = vrot.lane.b32.xlu0 %v11055_v2, %s6575_s27  ;;  %5868 = vrot.lane.b32.xlu1 %v11058_v19, %s6574_s26  ;;  %v11064_v2 = vpack.i.bf16 %v8611_v51, %v11063_v23  ;;  %v2517_v51 = vmul.f32 %v8574_v39, %v11027_v61  ;;  %v5942_v61 = vpack.i.bf16 %v2534_v18, %v11069_v22  ;;  %v11071_v19 = vld [vmem:[#allocation32_spill] sm:$0xff]  ;;  %v11076_v23 = vld [vmem:[#allocation41_spill] sm:$0xff]  ;;  %v11088_v22 = vld [vmem:[#allocation11_spill] sm:$0xff] }
 0x4a6   :  { %v5937_v35 = vpack.i.bf16 %v11067_v44, %v2517_v51  ;;  %v11083_v44 = vld [vmem:[#allocation45_spill] sm:$0xff] }
 0x4a8   :  { %5888 = vrot.lane.b32.xlu0 %v5887_v42, %s6575_s27  ;;  %5878 = vrot.lane.b32.xlu1 %v11061_v20, %s6575_s27  ;;  %v11072_v42 = vld [vmem:[#allocation29_spill] sm:$0xff]  ;;  %v5957_v20 = vpack.i.bf16 %v2554_v49, %v11074_v37 }
 0x4a9   :  { %v11073_v17 = vpack.i.bf16 %v11071_v19, %v11072_v42  ;;  %v5997_v19 = vpack.i.bf16 %v11059_v43, %v2636_v48  ;;  %v11093_v42 = vpack.i.bf16 %v8678_v45, %v8668_v8  ;;  %v11108_v48 = vld [vmem:[#allocation15_spill] sm:$0xff] }
 0x4ac   :  { %5893 = vrot.lane.b32.xlu0 %v11062_v15, %s6571_s24  ;;  %5908 = vrot.lane.b32.xlu1 %v11064_v2, %s6576_s28  ;;  %v11075_v15 = vld [vmem:[#allocation42_spill] sm:$0xff] }
 0x4ad   :  { %v11077_v2 = vpack.i.bf16 %v11075_v15, %v11076_v23  ;;  %v2656_v23 = vmul.f32 %v8574_v39, %v11002_v11 }
 0x4af   :  { %v6017_v24 = vpack.i.bf16 %v11013_v59, %v2656_v23 }
 0x4b0   :  { %5898 = vrot.lane.b32.xlu0 %v11065_v1, %s6571_s24  ;;  %5923 = vrot.lane.b32.xlu1 %v11066_v36, %s6564_s13  ;;  %v11080_v1 = vpack.i.bf16 %v11078_v40, %v11079_v21  ;;  %v2616_v36 = vmul.f32 %v8574_v39, %v11042_v55 }
 0x4b2   :  { %v5987_v51 = vpack.i.bf16 %v11044_v60, %v2616_v36  ;;  %v11102_v36 = vld [vmem:[#allocation20_spill] sm:$0xff] }
 0x4b4   :  { %5903 = vrot.lane.b32.xlu0 %v11068_v12, %s6576_s28  ;;  %5928 = vrot.lane.b32.xlu1 %v5927_v38, %s6567_s16  ;;  %v11084_v38 = vpack.i.bf16 %v11082_v63, %v11083_v44  ;;  %v11085_v12 = vld [vmem:[#allocation46_spill] sm:$0xff] }
 0x4b5   :  { %v11104_v63 = vld [vmem:[#allocation50_spill] sm:$0xff] }
 0x4b6   :  { %v11105_v44 = vpack.i.bf16 %v8849_v26, %v11104_v63 }
 0x4b8   :  { %5913 = vrot.lane.b32.xlu0 %v5912_v10, %s6576_s28  ;;  %5938 = vrot.lane.b32.xlu1 %v5937_v35, %s6567_s16  ;;  %v11086_v10 = vpack.i.bf16 %v8736_v54, %v11085_v12 }
 0x4bc   :  { %5918 = vrot.lane.b32.xlu0 %v11070_v52, %s6564_s13  ;;  %5943 = vrot.lane.b32.xlu1 %v5942_v61, %s6572_s19  ;;  %v11089_v61 = vpack.i.bf16 %v11087_v47, %v11088_v22  ;;  %v11091_v52 = vld [vmem:[#allocation47_spill] sm:$0xff]  ;;  %v11109_v47 = vpack.i.bf16 %v8857_v41, %v11108_v48 }
 0x4c0   :  { %5933 = vrot.lane.b32.xlu0 %v11073_v17, %s6567_s16  ;;  %5953 = vrot.lane.b32.xlu1 %v5952_v34, %s6572_s19  ;;  %v11092_v34 = vpack.i.bf16 %v11090_v14, %v11091_v52 }
 0x4c4   :  { %5948 = vrot.lane.b32.xlu0 %v11077_v2, %s6572_s19  ;;  %5958 = vrot.lane.b32.xlu1 %v5957_v20, %s6565_s14  ;;  %v11094_v20 = vpack.i.bf16 %v8797_v46, %v8789_v28  ;;  %v11096_v2 = vld [vmem:[#allocation12_spill] sm:$0xff]  ;;  %v11098_v46 = vld [vmem:[#allocation14_spill] sm:$0xff]  ;;  %v11099_v28 = vld [vmem:[#allocation35_spill] sm:$0xff] }
 0x4c5   :  { %v11100_v40 = vpack.i.bf16 %v11098_v46, %v11099_v28 }
 0x4c8   :  { %5963 = vrot.lane.b32.xlu0 %v11080_v1, %s6565_s14  ;;  %5968 = vrot.lane.b32.xlu1 %v5967_v58, %s6565_s14  ;;  %v11097_v58 = vpack.i.bf16 %v8817_v13, %v11096_v2  ;;  %v11101_v1 = vld [vmem:[#allocation49_spill] sm:$0xff] }
 0x4c9   :  { %v11103_v39 = vpack.i.bf16 %v11101_v1, %v11102_v36  ;;  %v2621_v1 = vmul.f32 %v8770_v62, %v11042_v55 }
 0x4cc   :  { %5978 = vrot.lane.b32.xlu0 %v11081_v6, %s6573_s25  ;;  %5973 = vrot.lane.b32.xlu1 %v11084_v38, %s6573_s25  ;;  %v11106_v38 = vpack.i.bf16 %v8770_v62, %v8696_v29  ;;  %v2641_v29 = vmul.f32 %v8770_v62, %v11052_v33 }
 0x4ce   :  { %v6102_v41 = vpack.i.bf16 %v11059_v43, %v2641_v29 }
 0x4d0   :  { %5988 = vrot.lane.b32.xlu0 %v5987_v51, %s6574_s26  ;;  %5983 = vrot.lane.b32.xlu1 %v11086_v10, %s6574_s26  ;;  %v11107_v10 = vpack.i.bf16 %v8869_v56, %v8865_v3  ;;  %v11111_v3 = vld [vmem:[#allocation6_spill] sm:$0xff]  ;;  %v11112_v56 = vld [vmem:[#allocation4_spill] sm:$0xff] }
 0x4d1   :  { %v11113_v14 = vpack.i.bf16 %v11111_v3, %v11112_v56 }
 0x4d2   :  { %v9090_v35 = vpop.permute.xlu0 %5703  ;;  %v9092_v18 = vpop.permute.xlu1 %5708 }
 0x4d3   :  { %v5706_v2 = vunpack.i.h.bf16 %v9090_v35 }
 0x4d4   :  { %6008 = vrot.lane.b32.xlu0 %v11089_v61, %s6571_s24  ;;  %5993 = vrot.lane.b32.xlu1 %v11092_v34, %s6575_s27  ;;  %v11110_v61 = vpack.i.bf16 %v8889_v25, %v8885_v0  ;;  %v11115_v0 = vpack.i.bf16 %v8901_v9, %v8897_v27  ;;  %v2661_v27 = vmul.f32 %v8770_v62, %v11002_v11  ;;  %v5710_v9 = vunpack.i.l.bf16 %v9092_v18 }
 0x4d6   :  { %v9104_v49 = vpop.permute.xlu0 %5723  ;;  %v9106_v54 = vpop.permute.xlu1 %5713  ;;  %v2940_v36 = vsel %vm161_vm7, %v5706_v2, %v5710_v9 }
 0x4d7   :  { %v5716_v63 = vunpack.i.h.bf16 %v9106_v54 }
 0x4d8   :  { %6023 = vrot.lane.b32.xlu0 %v11093_v42, %s6564_s13  ;;  %5998 = vrot.lane.b32.xlu1 %v5997_v19, %s6575_s27  ;;  %v11114_v19 = vld [vmem:[#allocation16_spill] sm:$0xff] }
 0x4d9   :  { %v2598_v33 = vmul.f32 %v8668_v8, %v11114_v19  ;;  %v11117_v8 = vpack.i.bf16 %v8920_v50, %v8908_v7  ;;  %v11118_v7 = vld [vmem:[#allocation8_spill] sm:$0xff]  ;;  %v11121_v19 = vld [vmem:[#allocation18_spill] sm:$0xff] }
 0x4da   :  { %v9114_v17 = vpop.permute.xlu0 %5728  ;;  %v9116_v37 = vpop.permute.xlu1 %5718  ;;  %v11119_v50 = vpack.i.bf16 %v8929_v30, %v11118_v7  ;;  %v5711_v7 = vunpack.i.h.bf16 %v9092_v18 }
 0x4db   :  { %v5721_v30 = vunpack.i.h.bf16 %v9116_v37 }
 0x4dc   :  { %6033 = vrot.lane.b32.xlu0 %v11094_v20, %s6567_s16  ;;  %6003 = vrot.lane.b32.xlu1 %v11095_v57, %s6571_s24  ;;  %v6062_v20 = vpack.i.bf16 %v2598_v33, %v11019_v32  ;;  %v11116_v57 = vld [vmem:[#allocation19_spill] sm:$0xff]  ;;  %v11122_v33 = vld [vmem:[#allocation17_spill] sm:$0xff] }
 0x4dd   :  { %v2601_v43 = vmul.f32 %v8770_v62, %v11116_v57 }
 0x4de   :  { %v9126_v15 = vpop.permute.xlu0 %5738  ;;  %v9128_v45 = vpop.permute.xlu1 %5733 }
 0x4df   :  { %v6072_v28 = vpack.i.bf16 %v11019_v32, %v2601_v43 }
 0x4e0   :  { %6043 = vrot.lane.b32.xlu0 %v11097_v58, %s6572_s19  ;;  %6013 = vrot.lane.b32.xlu1 %v11100_v40, %s6576_s28  ;;  %v5705_v58 = vunpack.i.l.bf16 %v9090_v35  ;;  %v5720_v40 = vunpack.i.l.bf16 %v9116_v37 }
 0x4e2   :  { %v9140_v21 = vpop.permute.xlu0 %5743  ;;  %v9142_v31 = vpop.permute.xlu1 %5748  ;;  %v2939_v32 = vsel %vm161_vm7, %v5705_v58, %v5706_v2  ;;  %v2724_v62 = vsel %vm332_vm2, %v5716_v63, %v5720_v40 }
 0x4e3   :  { %v6132_v37 = vpack.i.bf16 %v2940_v36, %v2939_v32  ;;  %v5750_v48 = vunpack.i.l.bf16 %v9142_v31 }
 0x4e4   :  { %6053 = vrot.lane.b32.xlu0 %v11103_v39, %s6565_s14  ;;  %6018 = vrot.lane.b32.xlu1 %v6017_v24, %s6576_s28  ;;  %v6127_v24 = vpack.i.bf16 %v11013_v59, %v2661_v27  ;;  %v11120_v59 = vpack.i.bf16 %v8939_v16, %v8933_v53 }
 0x4e6   :  { %v9150_v13 = vpop.permute.xlu0 %5753  ;;  %v9152_v6 = vpop.permute.xlu1 %5763 }
 0x4e8   :  { %6068 = vrot.lane.b32.xlu0 %v11105_v44, %s6573_s25  ;;  %6028 = vrot.lane.b32.xlu1 %v11106_v38, %s6564_s13  ;;  %v6087_v44 = vpack.i.bf16 %v11044_v60, %v2621_v1  ;;  %v2725_v38 = vsel %vm332_vm2, %v5720_v40, %v5721_v30  ;;  %v11124_v40 = vld [vmem:[#allocation13_spill] sm:$0xff] }
 0x4e9   :  { %v6142_v16 = vpack.i.bf16 %v2725_v38, %v2724_v62  ;;  %v2941_v62 = vsel %vm161_vm7, %v5710_v9, %v5711_v7 }
 0x4ea   :  { %v9162_v51 = vpop.permute.xlu0 %5758  ;;  %v9164_v12 = vpop.permute.xlu1 %5773 }
 0x4eb   :  { %v5761_v3 = vunpack.i.h.bf16 %v9162_v51  ;;  %v5760_v56 = vunpack.i.l.bf16 %v9162_v51 }
 0x4ec   :  { %6078 = vrot.lane.b32.xlu0 %v11107_v10, %s6574_s26  ;;  %6038 = vrot.lane.b32.xlu1 %v11109_v47, %s6567_s16  ;;  %v5751_v10 = vunpack.i.h.bf16 %v9142_v31  ;;  %v5746_v47 = vunpack.i.h.bf16 %v9140_v21  ;;  %v5766_v31 = vunpack.i.h.bf16 %v9152_v6 }
 0x4ee   :  { %v9174_v26 = vpop.permute.xlu0 %5768  ;;  %v9178_v22 = vpop.permute.xlu1 %5783  ;;  %v2877_v60 = vsel %vm218_vm0, %v5750_v48, %v5751_v10 }
 0x4ef   :  { %v5771_v27 = vunpack.i.h.bf16 %v9174_v26  ;;  %v5770_v2 = vunpack.i.l.bf16 %v9174_v26 }
 0x4f0   :  { %6093 = vrot.lane.b32.xlu0 %v11110_v61, %s6575_s27  ;;  %6048 = vrot.lane.b32.xlu1 %v11113_v14, %s6572_s19  ;;  %v2876_v61 = vsel %vm218_vm0, %v5746_v47, %v5750_v48 }
 0x4f1   :  { %v6162_v57 = vpack.i.bf16 %v2877_v60, %v2876_v61  ;;  %v3087_v18 = vsel %vm1035_vm10, %v5770_v2, %v5771_v27  ;;  %v6137_v60 = vpack.i.bf16 %v5711_v7, %v2941_v62 }
 0x4f2   :  { %v9188_v52 = vpop.permute.xlu0 %5778  ;;  %v9191_v34 = vpop.permute.xlu1 %5788 }
 0x4f4   :  { %6103 = vrot.lane.b32.xlu0 %v6102_v41, %s6575_s27  ;;  %6058 = vrot.lane.b32.xlu1 %v11115_v0, %s6565_s14  ;;  %v5765_v41 = vunpack.i.l.bf16 %v9152_v6  ;;  %v11123_v0 = vpack.i.bf16 %v11121_v19, %v11122_v33  ;;  %v5736_v33 = vunpack.i.h.bf16 %v9128_v45 }
 0x4f6   :  { %v9200_v25 = vpop.permute.xlu0 %5808  ;;  %v9202_v42 = vpop.permute.xlu1 %5793  ;;  %v3012_v43 = vsel %vm958_vm9, %v5761_v3, %v5765_v41  ;;  %v3013_v26 = vsel %vm958_vm9, %v5765_v41, %v5766_v31  ;;  %v5776_v41 = vunpack.i.h.bf16 %v9164_v12 }
 0x4f7   :  { %v5810_v38 = vunpack.i.l.bf16 %v9200_v25 }
 0x4f8   :  { %6108 = vrot.lane.b32.xlu0 %v11117_v8, %s6571_s24  ;;  %6063 = vrot.lane.b32.xlu1 %v6062_v20, %s6573_s25  ;;  %v3011_v8 = vsel %vm958_vm9, %v5760_v56, %v5761_v3 }
 0x4f9   :  { %v6172_v36 = vpack.i.bf16 %v3012_v43, %v3011_v8  ;;  %v5740_v8 = vunpack.i.l.bf16 %v9126_v15 }
 0x4fa   :  { %v9212_v23 = vpop.permute.xlu0 %5823  ;;  %v9219_v46 = vpop.permute.xlu1 %5798 }
 0x4fc   :  { %6118 = vrot.lane.b32.xlu0 %v11119_v50, %s6576_s28  ;;  %6073 = vrot.lane.b32.xlu1 %v6072_v28, %s6573_s25  ;;  %v5775_v50 = vunpack.i.l.bf16 %v9164_v12 }
 0x4fe   :  { %v9228_v11 = vpop.permute.xlu0 %5833  ;;  %v9238_v39 = vpop.permute.xlu1 %5803  ;;  %v3088_v32 = vsel %vm1035_vm10, %v5771_v27, %v5775_v50 }
 0x500   :  { %6128 = vrot.lane.b32.xlu0 %v6127_v24, %s6576_s28  ;;  %6083 = vrot.lane.b32.xlu1 %v11120_v59, %s6574_s26  ;;  %v11125_v24 = vpack.i.bf16 %v8966_v4, %v11124_v40  ;;  %v11126_v4 = vld [vmem:[#allocation23_spill] sm:$0xff]  ;;  %v5715_v40 = vunpack.i.l.bf16 %v9106_v54 }
 0x502   :  { %v9249_v55 = vpop.permute.xlu0 %5843  ;;  %v9256_v29 = vpop.permute.xlu1 %5813 }
 0x503   :  { %v5816_v61 = vunpack.i.h.bf16 %v9256_v29  ;;  %v5815_v3 = vunpack.i.l.bf16 %v9256_v29  ;;  %v5836_v29 = vunpack.i.h.bf16 %v9228_v11 }
 0x504   :  { %6133 = vrot.lane.b32.xlu0 %v6132_v37, %s6571_s24  ;;  %6088 = vrot.lane.b32.xlu1 %v6087_v44, %s6574_s26  ;;  %v11127_v44 = vpack.i.bf16 %v8977_v5, %v11126_v4  ;;  %v5725_v37 = vunpack.i.l.bf16 %v9104_v49  ;;  %v5735_v5 = vunpack.i.l.bf16 %v9128_v45 }
 0x506   :  { %v9260_v53 = vpop.permute.xlu0 %5848  ;;  %v9270_v14 = vpop.permute.xlu1 %5818  ;;  %v2726_v19 = vsel %vm332_vm2, %v5721_v30, %v5725_v37  ;;  %v2944_v30 = vsel %vm161_vm7, %v5815_v3, %v5816_v61  ;;  %v2801_v35 = vsel %vm745_vm8, %v5735_v5, %v5736_v33 }
 0x507   :  { %v6147_v27 = vpack.i.bf16 %v5725_v37, %v2726_v19  ;;  %v5726_v19 = vunpack.i.h.bf16 %v9104_v49  ;;  %v5850_v51 = vunpack.i.l.bf16 %v9260_v53  ;;  %v5821_v12 = vunpack.i.h.bf16 %v9270_v14 }
 0x508   :  { %6143 = vrot.lane.b32.xlu0 %v6142_v16, %s6571_s24  ;;  %6098 = vrot.lane.b32.xlu1 %v11123_v0, %s6575_s27  ;;  %v6182_v16 = vpack.i.bf16 %v3088_v32, %v3087_v18  ;;  %v5731_v0 = vunpack.i.h.bf16 %v9114_v17  ;;  %v2802_v18 = vsel %vm745_vm8, %v5736_v33, %v5740_v8  ;;  %v2723_v33 = vsel %vm332_vm2, %v5715_v40, %v5716_v63 }
 0x50a   :  { %v9278_v20 = vpop.permute.xlu0 %5858  ;;  %v9288_v28 = vpop.permute.xlu1 %5828  ;;  %v2800_v7 = vsel %vm745_vm8, %v5731_v0, %v5735_v5  ;;  %v5791_v5 = vunpack.i.h.bf16 %v9191_v34 }
 0x50b   :  { %v6152_v4 = vpack.i.bf16 %v2801_v35, %v2800_v7 }
 0x50c   :  { %6163 = vrot.lane.b32.xlu0 %v6162_v57, %s6571_s24  ;;  %6113 = vrot.lane.b32.xlu1 %v11125_v24, %s6571_s24  ;;  %v6192_v57 = vpack.i.bf16 %v5810_v38, %v5705_v58  ;;  %v5755_v58 = vunpack.i.l.bf16 %v9150_v13  ;;  %v6202_v24 = vpack.i.bf16 %v5816_v61, %v2944_v30 }
 0x50e   :  { %v9297_v1 = vpop.permute.xlu0 %5863  ;;  %v9305_v59 = vpop.permute.xlu1 %5838  ;;  %v2878_v61 = vsel %vm218_vm0, %v5751_v10, %v5755_v58  ;;  %v5820_v10 = vunpack.i.l.bf16 %v9270_v14 }
 0x50f   :  { %v5866_v49 = vunpack.i.h.bf16 %v9297_v1  ;;  %v6167_v54 = vpack.i.bf16 %v5755_v58, %v2878_v61  ;;  %v5826_v58 = vunpack.i.h.bf16 %v9212_v23 }
 0x510   :  { %6173 = vrot.lane.b32.xlu0 %v6172_v36, %s6571_s24  ;;  %6123 = vrot.lane.b32.xlu1 %v11127_v44, %s6576_s28  ;;  %v5851_v36 = vunpack.i.h.bf16 %v9260_v53  ;;  %v11128_v44 = vld [vmem:[#allocation39_spill] sm:$0xff] }
 0x511   :  { %v5694_v37 = vunpack.i.h.bf16 %v11128_v44 }
 0x512   :  { %v9315_v48 = vpop.permute.xlu0 %5873  ;;  %v9319_v9 = vpop.permute.xlu1 %5853  ;;  %v6207_v30 = vpack.i.bf16 %v5851_v36, %v5760_v56  ;;  %v5796_v56 = vunpack.i.h.bf16 %v9202_v42 }
 0x514   :  { %6183 = vrot.lane.b32.xlu0 %v6182_v16, %s6571_s24  ;;  %6138 = vrot.lane.b32.xlu1 %v6137_v60, %s6571_s24  ;;  %v5790_v16 = vunpack.i.l.bf16 %v9191_v34  ;;  %v5693_v60 = vunpack.i.l.bf16 %v11128_v44 }
 0x516   :  { %v9331_v43 = vpop.permute.xlu0 %5883  ;;  %v9337_v45 = vpop.permute.xlu1 %5868  ;;  %v3635_v63 = vsel %vm580_vm6, %v5693_v60, %v5790_v16 }
 0x518   :  { %6193 = vrot.lane.b32.xlu0 %v6192_v57, %s6571_s24  ;;  %6148 = vrot.lane.b32.xlu1 %v6147_v27, %s6571_s24  ;;  %v6157_v57 = vpack.i.bf16 %v5740_v8, %v2802_v18  ;;  %v5795_v8 = vunpack.i.l.bf16 %v9202_v42  ;;  %v5825_v42 = vunpack.i.l.bf16 %v9212_v23 }
 0x51a   :  { %v9348_v32 = vpop.permute.xlu0 %5888  ;;  %v9351_v62 = vpop.permute.xlu1 %5878 }
 0x51c   :  { %6203 = vrot.lane.b32.xlu0 %v6202_v24, %s6571_s24  ;;  %6153 = vrot.lane.b32.xlu1 %v6152_v4, %s6571_s24  ;;  %v3636_v24 = vsel %vm580_vm6, %v5790_v16, %v5791_v5  ;;  %v6212_v4 = vpack.i.bf16 %v5866_v49, %v5770_v2  ;;  %v3014_v2 = vsel %vm958_vm9, %v5766_v31, %v5850_v51 }
 0x51e   :  { %v5894_v27 = vpop.permute.xlu0 %5893  ;;  %v9373_v34 = vpop.permute.xlu1 %5908 }
 0x51f   :  { %v5896_v7 = vunpack.i.h.bf16 %v5894_v27  ;;  %v5895_v35 = vunpack.i.l.bf16 %v5894_v27  ;;  %v3637_v27 = vsel %vm580_vm6, %v5791_v5, %v5795_v8 }
 0x520   :  { %6208 = vrot.lane.b32.xlu0 %v6207_v30, %s6571_s24  ;;  %6158 = vrot.lane.b32.xlu1 %v6157_v57, %s6571_s24 }
 0x521   :  { %v3639_v40 = vsel %vm580_vm6, %v5694_v37, %v5895_v35  ;;  %v3640_v18 = vsel %vm580_vm6, %v5895_v35, %v5896_v7  ;;  %v2727_v37 = vsel %vm332_vm2, %v5726_v19, %v5820_v10  ;;  %v5865_v35 = vunpack.i.l.bf16 %v9297_v1 }
 0x522   :  { %v5899_v44 = vpop.permute.xlu0 %5898  ;;  %v4659_v60 = vpack.c.bf16 %v3640_v18, %v3636_v24  ;;  %v4661_v61 = vpack.c.bf16 %v3639_v40, %v3635_v63  ;;  %v9393_v57 = vpop.permute.xlu1 %5923  ;;  %v3638_v19 = vsel %vm580_vm6, %v5795_v8, %v5796_v56  ;;  %v6222_v31 = vpack.i.bf16 %v2727_v37, %v2723_v33 }
 0x523   :  { %v5901_v16 = vunpack.i.h.bf16 %v5899_v44  ;;  %v5900_v30 = vunpack.i.l.bf16 %v5899_v44  ;;  %v2730_v40 = vsel %vm332_vm2, %v5825_v42, %v5826_v58  ;;  %v5831_v24 = vunpack.i.h.bf16 %v9288_v28 }
 0x524   :  { %4660 = vmatprep.subr.bf16.mxu0 %v4659_v60  ;;  %6213 = vrot.lane.b32.xlu0 %v6212_v4, %s6571_s24  ;;  %v3090_v8 = vsel %vm1035_vm10, %v5776_v41, %v5865_v35  ;;  %v5835_v56 = vunpack.i.l.bf16 %v9228_v11  ;;  %v3089_v33 = vsel %vm1035_vm10, %v5775_v50, %v5776_v41  ;;  %v5811_v4 = vunpack.i.h.bf16 %v9200_v25 }
 0x525   :  { %v3641_v23 = vsel %vm580_vm6, %v5896_v7, %v5900_v30  ;;  %6168 = vrot.lane.b32.xlu1 %v6167_v54, %s6571_s24  ;;  %4662 = vmatpush1.bf16.msra.mxu0 %v4661_v61  ;;  %v3642_v6 = vsel %vm580_vm6, %v5900_v30, %v5901_v16  ;;  %v5830_v7 = vunpack.i.l.bf16 %v9288_v28  ;;  %v6177_v54 = vpack.i.bf16 %v3014_v2, %v3013_v26 }
 0x526   :  { %v9407_v63 = vpop.permute.xlu0 %5903  ;;  %v4731_v5 = vpack.c.bf16 %v3642_v6, %v3638_v19  ;;  %v4733_v51 = vpack.c.bf16 %v3641_v23, %v3637_v27  ;;  %v9412_v18 = vpop.permute.xlu1 %5928  ;;  %v6227_v44 = vpack.i.bf16 %v5826_v58, %v2730_v40  ;;  %v2805_v61 = vsel %vm745_vm8, %v5831_v24, %v5835_v56 }
 0x527   :  { %v2804_v60 = vsel %vm745_vm8, %v5830_v7, %v5831_v24  ;;  %v6187_v16 = vpack.i.bf16 %v3090_v8, %v3089_v33  ;;  %v2943_v30 = vsel %vm161_vm7, %v5811_v4, %v5815_v3  ;;  %v5730_v50 = vunpack.i.l.bf16 %v9114_v17 }
 0x528   :  { %4732 = vmatprep.subr.bf16.mxu1 %v4731_v5  ;;  %6223 = vrot.lane.b32.xlu0 %v6222_v31, %s6571_s24  ;;  %v5741_v58 = vunpack.i.h.bf16 %v9126_v15  ;;  %v2942_v26 = vsel %vm161_vm7, %v5810_v38, %v5811_v4  ;;  %v6232_v2 = vpack.i.bf16 %v2805_v61, %v2804_v60  ;;  %v2728_v15 = vsel %vm332_vm2, %v5820_v10, %v5821_v12 }
 0x529   :  { %6178 = vrot.lane.b32.xlu1 %v6177_v54, %s6571_s24  ;;  %4734 = vmatpush1.bf16.msra.mxu1 %v4733_v51  ;;  %v6197_v23 = vpack.i.bf16 %v2943_v30, %v2942_v26  ;;  %v2729_v19 = vsel %vm332_vm2, %v5821_v12, %v5825_v42  ;;  %v5841_v25 = vunpack.i.h.bf16 %v9305_v59  ;;  %v5840_v38 = vunpack.i.l.bf16 %v9305_v59 }
 0x52a   :  { %v9422_v28 = vpop.permute.xlu0 %5913  ;;  %v9426_v37 = vpop.permute.xlu1 %5938  ;;  %v2803_v3 = vsel %vm745_vm8, %v5741_v58, %v5830_v7  ;;  %v2799_v11 = vsel %vm745_vm8, %v5730_v50, %v5731_v0  ;;  %v5845_v6 = vunpack.i.l.bf16 %v9249_v55  ;;  %v2806_v10 = vsel %vm745_vm8, %v5835_v56, %v5836_v29 }
 0x52b   :  { %v6237_v14 = vpack.i.bf16 %v2803_v3, %v2799_v11  ;;  %v6217_v5 = vpack.i.bf16 %v2729_v19, %v2728_v15  ;;  %v2880_v59 = vsel %vm218_vm0, %v5840_v38, %v5841_v25  ;;  %v5856_v17 = vunpack.i.h.bf16 %v9319_v9 }
 0x52c   :  { %6228 = vrot.lane.b32.xlu0 %v6227_v44, %s6571_s24  ;;  %v2881_v31 = vsel %vm218_vm0, %v5841_v25, %v5845_v6  ;;  %v5855_v0 = vunpack.i.l.bf16 %v9319_v9  ;;  %v5745_v51 = vunpack.i.l.bf16 %v9140_v21  ;;  %v5756_v40 = vunpack.i.h.bf16 %v9150_v13 }
 0x52d   :  { %6188 = vrot.lane.b32.xlu1 %v6187_v16, %s6571_s24  ;;  %v6242_v24 = vpack.i.bf16 %v5836_v29, %v2806_v10  ;;  %v5846_v54 = vunpack.i.h.bf16 %v9249_v55  ;;  %v6247_v33 = vpack.i.bf16 %v2881_v31, %v2880_v59  ;;  %v10862_v13 = vunpack.i.h.bf16 %v9337_v45 }
 0x52e   :  { %v9439_v27 = vpop.permute.xlu0 %5918  ;;  %v9443_v35 = vpop.permute.xlu1 %5943  ;;  %v2879_v8 = vsel %vm218_vm0, %v5756_v40, %v5840_v38  ;;  %v3015_v9 = vsel %vm958_vm9, %v5851_v36, %v5855_v0  ;;  %v3016_v4 = vsel %vm958_vm9, %v5855_v0, %v5856_v17  ;;  %v5870_v44 = vunpack.i.l.bf16 %v9337_v45 }
 0x52f   :  { %v2875_v55 = vsel %vm218_vm0, %v5745_v51, %v5746_v47  ;;  %v2882_v53 = vsel %vm218_vm0, %v5845_v6, %v5846_v54  ;;  %v6262_v16 = vpack.i.bf16 %v3016_v4, %v3015_v9  ;;  %v5921_v47 = vunpack.i.h.bf16 %v9439_v27 }
 0x530   :  { %6233 = vrot.lane.b32.xlu0 %v6232_v2, %s6571_s24  ;;  %v6252_v61 = vpack.i.bf16 %v2879_v8, %v2875_v55  ;;  %v3091_v30 = vsel %vm1035_vm10, %v5866_v49, %v5870_v44  ;;  %v3092_v21 = vsel %vm1035_vm10, %v5870_v44, %v10862_v13  ;;  %v5920_v12 = vunpack.i.l.bf16 %v9439_v27 }
 0x531   :  { %6198 = vrot.lane.b32.xlu1 %v6197_v23, %s6571_s24  ;;  %v5861_v50 = vunpack.i.h.bf16 %v9278_v20  ;;  %v5860_v58 = vunpack.i.l.bf16 %v9278_v20  ;;  %v6257_v26 = vpack.i.bf16 %v5846_v54, %v2882_v53  ;;  %v5925_v1 = vunpack.i.l.bf16 %v9393_v57 }
 0x532   :  { %v9457_v41 = vpop.permute.xlu0 %5933  ;;  %v9460_v42 = vpop.permute.xlu1 %5953  ;;  %v5926_v29 = vunpack.i.h.bf16 %v9393_v57  ;;  %v6272_v23 = vpack.i.bf16 %v3092_v21, %v3091_v30  ;;  %v2945_v20 = vsel %vm161_vm7, %v5920_v12, %v5921_v47  ;;  %v10864_v57 = vunpack.i.h.bf16 %v9412_v18 }
 0x533   :  { %v3017_v2 = vsel %vm958_vm9, %v5856_v17, %v5860_v58  ;;  %v2946_v15 = vsel %vm161_vm7, %v5921_v47, %v5925_v1  ;;  %v5936_v19 = vunpack.i.h.bf16 %v9457_v41  ;;  %v5935_v25 = vunpack.i.l.bf16 %v9457_v41 }
 0x534   :  { %6238 = vrot.lane.b32.xlu0 %v6237_v14, %s6571_s24  ;;  %v3018_v38 = vsel %vm958_vm9, %v5860_v58, %v5861_v50  ;;  %v2947_v14 = vsel %vm161_vm7, %v5925_v1, %v5926_v29  ;;  %v6277_v59 = vpack.i.bf16 %v2946_v15, %v2945_v20  ;;  %v5955_v17 = vunpack.i.l.bf16 %v9460_v42 }
 0x535   :  { %6218 = vrot.lane.b32.xlu1 %v6217_v5, %s6571_s24  ;;  %v6267_v6 = vpack.i.bf16 %v3018_v38, %v3017_v2  ;;  %v2732_v41 = vsel %vm332_vm2, %v10864_v57, %v5935_v25  ;;  %v2733_v31 = vsel %vm332_vm2, %v5935_v25, %v5936_v19  ;;  %v6282_v0 = vpack.i.bf16 %v5926_v29, %v2947_v14 }
 0x536   :  { %v9470_v7 = vpop.permute.xlu0 %5948  ;;  %v9474_v56 = vpop.permute.xlu1 %5958  ;;  %v5940_v51 = vunpack.i.l.bf16 %v9426_v37  ;;  %v6287_v9 = vpack.i.bf16 %v2733_v31, %v2732_v41  ;;  %v10866_v55 = vunpack.i.h.bf16 %v9443_v35 }
 0x537   :  { %v5951_v10 = vunpack.i.h.bf16 %v9470_v7  ;;  %v5950_v44 = vunpack.i.l.bf16 %v9470_v7  ;;  %v10863_v58 = vunpack.i.h.bf16 %v9474_v56 }
 0x538   :  { %6243 = vrot.lane.b32.xlu0 %v6242_v24, %s6571_s24  ;;  %v2734_v4 = vsel %vm332_vm2, %v5936_v19, %v5940_v51 }
 0x539   :  { %6248 = vrot.lane.b32.xlu1 %v6247_v33, %s6571_s24  ;;  %v2810_v24 = vsel %vm745_vm8, %v5951_v10, %v5955_v17  ;;  %v6292_v47 = vpack.i.bf16 %v5940_v51, %v2734_v4  ;;  %v2808_v7 = vsel %vm745_vm8, %v10866_v55, %v5950_v44  ;;  %v2809_v50 = vsel %vm745_vm8, %v5950_v44, %v5951_v10 }
 0x53a   :  { %v9487_v60 = vpop.permute.xlu0 %5963  ;;  %v9490_v36 = vpop.permute.xlu1 %5968  ;;  %v6302_v53 = vpack.i.bf16 %v5955_v17, %v2810_v24  ;;  %v6297_v29 = vpack.i.bf16 %v2809_v50, %v2808_v7  ;;  %v11129_v50 = vld [vmem:[#allocation40_spill] sm:$0xff] }
 0x53b   :  { %v5970_v54 = vunpack.i.l.bf16 %v9490_v36  ;;  %v5966_v8 = vunpack.i.h.bf16 %v9487_v60  ;;  %v5965_v30 = vunpack.i.l.bf16 %v9487_v60 }
 0x53c   :  { %6253 = vrot.lane.b32.xlu0 %v6252_v61, %s6571_s24 }
 0x53d   :  { %6263 = vrot.lane.b32.xlu1 %v6262_v16, %s6571_s24  ;;  %v2886_v16 = vsel %vm218_vm0, %v5966_v8, %v5970_v54  ;;  %v2884_v60 = vsel %vm218_vm0, %v10863_v58, %v5965_v30 }
 0x53e   :  { %v9505_v49 = vpop.permute.xlu0 %5978  ;;  %v9509_v3 = vpop.permute.xlu1 %5973  ;;  %v6312_v1 = vpack.i.bf16 %v5970_v54, %v2886_v16 }
 0x53f   :  { %v5976_v15 = vunpack.i.h.bf16 %v9509_v3  ;;  %v5975_v20 = vunpack.i.l.bf16 %v9509_v3  ;;  %v5980_v19 = vunpack.i.l.bf16 %v9505_v49 }
 0x540   :  { %6258 = vrot.lane.b32.xlu0 %v6257_v26, %s6571_s24 }
 0x541   :  { %6273 = vrot.lane.b32.xlu1 %v6272_v23, %s6571_s24  ;;  %v2885_v23 = vsel %vm218_vm0, %v5965_v30, %v5966_v8  ;;  %v3019_v14 = vsel %vm958_vm9, %v5975_v20, %v5976_v15  ;;  %v3020_v10 = vsel %vm958_vm9, %v5976_v15, %v5980_v19 }
 0x542   :  { %v9521_v11 = vpop.permute.xlu0 %5988  ;;  %v9525_v5 = vpop.permute.xlu1 %5983  ;;  %v6317_v31 = vpack.i.bf16 %v3020_v10, %v3019_v14 }
 0x543   :  { %v5986_v10 = vunpack.i.h.bf16 %v9525_v5 }
 0x544   :  { %6268 = vrot.lane.b32.xlu0 %v6267_v6, %s6571_s24  ;;  %v6307_v6 = vpack.i.bf16 %v2885_v23, %v2884_v60  ;;  %v5698_v60 = vunpack.i.l.bf16 %v11129_v50 }
 0x545   :  { %6278 = vrot.lane.b32.xlu1 %v6277_v59, %s6571_s24 }
 0x546   :  { %v9535_v40 = vpop.permute.xlu0 %6008  ;;  %v9540_v33 = vpop.permute.xlu1 %5993 }
 0x548   :  { %6283 = vrot.lane.b32.xlu0 %v6282_v0, %s6571_s24 }
 0x549   :  { %6288 = vrot.lane.b32.xlu1 %v6287_v9, %s6571_s24 }
 0x54a   :  { %v9547_v61 = vpop.permute.xlu0 %6023  ;;  %v9551_v21 = vpop.permute.xlu1 %5998 }
 0x54b   :  { %v6025_v3 = vunpack.i.l.bf16 %v9547_v61 }
 0x54c   :  { %6303 = vrot.lane.b32.xlu0 %v6302_v53, %s6571_s24 }
 0x54d   :  { %6293 = vrot.lane.b32.xlu1 %v6292_v47, %s6571_s24  ;;  %v6327_v0 = vpack.i.bf16 %v6025_v3, %v5920_v12  ;;  %v5981_v12 = vunpack.i.h.bf16 %v9505_v49 }
 0x54e   :  { %v9560_v26 = vpop.permute.xlu0 %6033  ;;  %v9565_v2 = vpop.permute.xlu1 %6003 }
 0x54f   :  { %v10865_v47 = vunpack.i.h.bf16 %v9565_v2  ;;  %v6005_v7 = vunpack.i.l.bf16 %v9565_v2  ;;  %v3021_v23 = vsel %vm958_vm9, %v5980_v19, %v5981_v12 }
 0x550   :  { %6313 = vrot.lane.b32.xlu0 %v6312_v1, %s6571_s24  ;;  %v5699_v1 = vunpack.i.h.bf16 %v11129_v50 }
 0x551   :  { %6298 = vrot.lane.b32.xlu1 %v6297_v29, %s6571_s24  ;;  %v3643_v50 = vsel %vm580_vm6, %v5698_v60, %v6005_v7  ;;  %v6036_v60 = vunpack.i.h.bf16 %v9560_v26 }
 0x552   :  { %v9573_v25 = vpop.permute.xlu0 %6043  ;;  %v9575_v38 = vpop.permute.xlu1 %6013 }
 0x555   :  { %6308 = vrot.lane.b32.xlu1 %v6307_v6, %s6571_s24 }
 0x556   :  { %v9580_v59 = vpop.permute.xlu0 %6053  ;;  %v9583_v41 = vpop.permute.xlu1 %6018 }
 0x559   :  { %6318 = vrot.lane.b32.xlu1 %v6317_v31, %s6571_s24  ;;  %v5985_v31 = vunpack.i.l.bf16 %v9525_v5 }
 0x55a   :  { %v9586_v17 = vpop.permute.xlu0 %6068  ;;  %v6029_v51 = vpop.permute.xlu1 %6028 }
 0x55b   :  { %v6031_v24 = vunpack.i.h.bf16 %v6029_v51  ;;  %v6030_v54 = vunpack.i.l.bf16 %v6029_v51 }
 0x55d   :  { %6328 = vrot.lane.b32.xlu1 %v6327_v0, %s6571_s24  ;;  %v2950_v8 = vsel %vm161_vm7, %v6030_v54, %v6031_v24 }
 0x55e   :  { %v9592_v9 = vpop.permute.xlu0 %6078  ;;  %v6337_v4 = vpack.i.bf16 %v6031_v24, %v2950_v8  ;;  %v9594_v44 = vpop.permute.xlu1 %6038  ;;  %v6026_v24 = vunpack.i.h.bf16 %v9547_v61  ;;  %v3644_v8 = vsel %vm580_vm6, %v6005_v7, %v10865_v47 }
 0x55f   :  { %v6080_v15 = vunpack.i.l.bf16 %v9592_v9  ;;  %v6040_v7 = vunpack.i.l.bf16 %v9594_v44 }
 0x561   :  { %6338 = vrot.lane.b32.xlu1 %v6337_v4, %s6571_s24 }
 0x562   :  { %v9597_v53 = vpop.permute.xlu0 %6093  ;;  %v9599_v16 = vpop.permute.xlu1 %6048 }
 0x566   :  { %v9601_v27 = vpop.permute.xlu0 %6103  ;;  %v9604_v30 = vpop.permute.xlu1 %6058 }
 0x56a   :  { %v9610_v29 = vpop.permute.xlu0 %6108  ;;  %v9614_v6 = vpop.permute.xlu1 %6063 }
 0x56b   :  { %v6111_v49 = vunpack.i.h.bf16 %v9610_v29  ;;  %v6110_v14 = vunpack.i.l.bf16 %v9610_v29  ;;  %v6066_v0 = vunpack.i.h.bf16 %v9614_v6  ;;  %v6065_v51 = vunpack.i.l.bf16 %v9614_v6 }
 0x56c   :  { %v5886_v29 = vunpack.i.h.bf16 %v9331_v43 }
 0x56d   :  { %v3647_v19 = vsel %vm580_vm6, %v5699_v1, %v6110_v14  ;;  %v3648_v4 = vsel %vm580_vm6, %v6110_v14, %v6111_v49  ;;  %v6342_v5 = vpack.i.bf16 %v6066_v0, %v5975_v20  ;;  %v3022_v13 = vsel %vm958_vm9, %v5981_v12, %v6065_v51 }
 0x56e   :  { %v9634_v58 = vpop.permute.xlu0 %6118  ;;  %v4663_v61 = vpack.c.bf16 %v3648_v4, %v3644_v8  ;;  %v3096_v1 = vsel %vm1035_vm10, %v5986_v10, %v6080_v15  ;;  %v9639_v57 = vpop.permute.xlu1 %6073  ;;  %v6322_v47 = vpack.i.bf16 %v3022_v13, %v3021_v23  ;;  %v4665_v55 = vpack.c.bf16 %v3647_v19, %v3643_v50 }
 0x56f   :  { %v2949_v14 = vsel %vm161_vm7, %v6026_v24, %v6030_v54  ;;  %6343 = vrot.lane.b32.xlu1 %v6342_v5, %s6571_s24  ;;  %v3095_v20 = vsel %vm1035_vm10, %v5985_v31, %v5986_v10  ;;  %v2948_v12 = vsel %vm161_vm7, %v6025_v3, %v6026_v24  ;;  %v6035_v51 = vunpack.i.l.bf16 %v9560_v26 }
 0x570   :  { %4664 = vmatprep.subr.bf16.mxu0 %v4663_v61  ;;  %6323 = vrot.lane.b32.xlu0 %v6322_v47, %s6571_s24  ;;  %v10867_v13 = vunpack.i.h.bf16 %v9592_v9  ;;  %v6372_v54 = vpack.i.bf16 %v3096_v1, %v3095_v20  ;;  %v6045_v19 = vunpack.i.l.bf16 %v9573_v25  ;;  %v6332_v4 = vpack.i.bf16 %v2949_v14, %v2948_v12 }
 0x571   :  { %4666 = vmatpush1.bf16.msra.mxu0 %v4665_v55  ;;  %v2737_v10 = vsel %vm332_vm2, %v6036_v60, %v6040_v7  ;;  %v5945_v55 = vunpack.i.l.bf16 %v9443_v35  ;;  %v5956_v3 = vunpack.i.h.bf16 %v9460_v42  ;;  %v5930_v26 = vunpack.i.l.bf16 %v9412_v18 }
 0x572   :  { %v9650_v23 = vpop.permute.xlu0 %6128  ;;  %v9653_v8 = vpop.permute.xlu1 %6083  ;;  %v5941_v47 = vunpack.i.h.bf16 %v9426_v37  ;;  %v2736_v24 = vsel %vm332_vm2, %v6035_v51, %v6036_v60  ;;  %v6377_v50 = vpack.i.bf16 %v10867_v13, %v5985_v31  ;;  %v6051_v1 = vunpack.i.h.bf16 %v9599_v16 }
 0x573   :  { %6373 = vrot.lane.b32.xlu1 %v6372_v54, %s6571_s24  ;;  %v2811_v61 = vsel %vm745_vm8, %v5956_v3, %v6045_v19  ;;  %v6050_v14 = vunpack.i.l.bf16 %v9599_v16  ;;  %v6347_v20 = vpack.i.bf16 %v2737_v10, %v2736_v24  ;;  %v6041_v37 = vunpack.i.h.bf16 %v9594_v44 }
 0x574   :  { %6333 = vrot.lane.b32.xlu0 %v6332_v4, %s6571_s24  ;;  %v2735_v12 = vsel %vm332_vm2, %v5941_v47, %v6035_v51  ;;  %v11130_v60 = vunpack.i.h.bf16 %v9443_v35  ;;  %v11131_v54 = vunpack.i.h.bf16 %v9412_v18  ;;  %v6055_v10 = vunpack.i.l.bf16 %v9580_v59 }
 0x575   :  { %v2814_v51 = vsel %vm745_vm8, %v6050_v14, %v6051_v1  ;;  %v5786_v35 = vunpack.i.h.bf16 %v9178_v22  ;;  %v5960_v18 = vunpack.i.l.bf16 %v9474_v56  ;;  %v6011_v24 = vunpack.i.h.bf16 %v9535_v40 }
 0x576   :  { %v9665_v5 = vpop.permute.xlu0 %6133  ;;  %v9670_v42 = vpop.permute.xlu1 %6088  ;;  %v2807_v31 = vsel %vm745_vm8, %v5945_v55, %v11130_v60  ;;  %v2731_v4 = vsel %vm332_vm2, %v5930_v26, %v11131_v54  ;;  %v2738_v55 = vsel %vm332_vm2, %v6040_v7, %v6041_v37  ;;  %v5971_v26 = vunpack.i.h.bf16 %v9490_v36 }
 0x577   :  { %6378 = vrot.lane.b32.xlu1 %v6377_v50, %s6571_s24  ;;  %v6382_v3 = vpack.i.bf16 %v2811_v61, %v2807_v31  ;;  %v6352_v47 = vpack.i.bf16 %v2735_v12, %v2731_v4  ;;  %v6010_v50 = vunpack.i.l.bf16 %v9535_v40  ;;  %v5785_v61 = vunpack.i.l.bf16 %v9178_v22 }
 0x578   :  { %6348 = vrot.lane.b32.xlu0 %v6347_v20, %s6571_s24  ;;  %v5876_v20 = vunpack.i.h.bf16 %v9315_v48  ;;  %v6046_v12 = vunpack.i.h.bf16 %v9573_v25  ;;  %v6387_v60 = vpack.i.bf16 %v6051_v1, %v2814_v51  ;;  %v2887_v31 = vsel %vm218_vm0, %v5971_v26, %v6055_v10 }
 0x579   :  { %v6357_v36 = vpack.i.bf16 %v6041_v37, %v2738_v55  ;;  %v6061_v54 = vunpack.i.h.bf16 %v9604_v30  ;;  %v6060_v40 = vunpack.i.l.bf16 %v9604_v30  ;;  %v5881_v25 = vunpack.i.h.bf16 %v9351_v62 }
 0x57a   :  { %v9682_v16 = vpop.permute.xlu0 %6143  ;;  %v9686_v44 = vpop.permute.xlu1 %6098  ;;  %v2813_v22 = vsel %vm745_vm8, %v6046_v12, %v6050_v14  ;;  %v11132_v1 = vunpack.i.h.bf16 %v9474_v56  ;;  %v11133_v37 = vunpack.i.h.bf16 %v9565_v2  ;;  %v2812_v30 = vsel %vm745_vm8, %v6045_v19, %v6046_v12 }
 0x57b   :  { %6383 = vrot.lane.b32.xlu1 %v6382_v3, %s6571_s24  ;;  %v5875_v3 = vunpack.i.l.bf16 %v9315_v48  ;;  %v3646_v48 = vsel %vm580_vm6, %v6010_v50, %v6011_v24  ;;  %v11134_v24 = vunpack.i.h.bf16 %v9337_v45  ;;  %v6056_v12 = vunpack.i.h.bf16 %v9580_v59 }
 0x57c   :  { %6353 = vrot.lane.b32.xlu0 %v6352_v47, %s6571_s24  ;;  %v2883_v51 = vsel %vm218_vm0, %v5960_v18, %v11132_v1  ;;  %v3645_v55 = vsel %vm580_vm6, %v11133_v37, %v6010_v50  ;;  %v2890_v18 = vsel %vm218_vm0, %v6060_v40, %v6061_v54  ;;  %v5880_v50 = vunpack.i.l.bf16 %v9351_v62 }
 0x57d   :  { %v3093_v19 = vsel %vm1035_vm10, %v11134_v24, %v5875_v3  ;;  %v5891_v24 = vunpack.i.h.bf16 %v9348_v32 }
 0x57e   :  { %v9699_v7 = vpop.permute.xlu0 %6163  ;;  %v6114_v4 = vpop.permute.xlu1 %6113 }
 0x57f   :  { %v6116_v47 = vunpack.i.h.bf16 %v6114_v4  ;;  %v6115_v13 = vunpack.i.l.bf16 %v6114_v4  ;;  %6388 = vrot.lane.b32.xlu1 %v6387_v60, %s6571_s24  ;;  %v6407_v60 = vpack.i.bf16 %v2887_v31, %v2883_v51  ;;  %v6412_v31 = vpack.i.bf16 %v6061_v54, %v2890_v18 }
 0x580   :  { %6358 = vrot.lane.b32.xlu0 %v6357_v36, %s6571_s24  ;;  %v6362_v36 = vpack.i.bf16 %v2813_v22, %v2812_v30  ;;  %v3166_v22 = vsel %vm1112_vm11, %v5785_v61, %v5786_v35  ;;  %v3165_v30 = vsel %vm1112_vm11, %v5880_v50, %v5785_v61 }
 0x581   :  { %v3649_v14 = vsel %vm580_vm6, %v6111_v49, %v6115_v13  ;;  %v3650_v56 = vsel %vm580_vm6, %v6115_v13, %v6116_v47  ;;  %v5885_v49 = vunpack.i.l.bf16 %v9331_v43  ;;  %v3094_v13 = vsel %vm1035_vm10, %v5875_v3, %v5876_v20 }
 0x582   :  { %v9722_v26 = vpop.permute.xlu0 %6173  ;;  %v4737_v2 = vpack.c.bf16 %v3649_v14, %v3645_v55  ;;  %v9726_v4 = vpop.permute.xlu1 %6123  ;;  %v4735_v1 = vpack.c.bf16 %v3650_v56, %v3646_v48  ;;  %v5781_v47 = vunpack.i.h.bf16 %v9188_v52  ;;  %v6367_v55 = vpack.i.bf16 %v3094_v13, %v3093_v19 }
 0x583   :  { %6408 = vrot.lane.b32.xlu1 %v6407_v60, %s6571_s24  ;;  %v3167_v51 = vsel %vm1112_vm11, %v5881_v25, %v5885_v49  ;;  %v5780_v48 = vunpack.i.l.bf16 %v9188_v52  ;;  %v2889_v20 = vsel %vm218_vm0, %v6056_v12, %v6060_v40  ;;  %v10880_v3 = vunpack.i.h.bf16 %v9665_v5 }
 0x584   :  { %4736 = vmatprep.subr.bf16.mxu1 %v4735_v1  ;;  %6363 = vrot.lane.b32.xlu0 %v6362_v36, %s6571_s24  ;;  %v3168_v35 = vsel %vm1112_vm11, %v5885_v49, %v5886_v29  ;;  %v5991_v14 = vunpack.i.h.bf16 %v9521_v11  ;;  %v5990_v60 = vunpack.i.l.bf16 %v9521_v11  ;;  %v2888_v52 = vsel %vm218_vm0, %v6055_v10, %v6056_v12 }
 0x585   :  { %4738 = vmatpush1.bf16.msra.mxu1 %v4737_v2  ;;  %v6095_v40 = vunpack.i.l.bf16 %v9597_v53  ;;  %v6417_v61 = vpack.i.bf16 %v3168_v35, %v3167_v51  ;;  %v10872_v2 = vunpack.i.l.bf16 %v9665_v5  ;;  %v6392_v10 = vpack.i.bf16 %v2889_v20, %v2888_v52 }
 0x586   :  { %v9738_v45 = vpop.permute.xlu0 %6183  ;;  %v6139_v37 = vpop.permute.xlu1 %6138  ;;  %v3097_v11 = vsel %vm1035_vm10, %v6080_v15, %v5990_v60  ;;  %v3163_v36 = vsel %vm1112_vm11, %v5780_v48, %v5781_v47  ;;  %v5890_v19 = vunpack.i.l.bf16 %v9348_v32  ;;  %v5996_v49 = vunpack.i.h.bf16 %v9540_v33 }
 0x587   :  { %v6140_v54 = vunpack.i.l.bf16 %v6139_v37  ;;  %6413 = vrot.lane.b32.xlu1 %v6412_v31, %s6571_s24  ;;  %v3098_v13 = vsel %vm1035_vm10, %v5990_v60, %v5991_v14  ;;  %v5995_v15 = vunpack.i.l.bf16 %v9540_v33  ;;  %v6141_v12 = vunpack.i.h.bf16 %v6139_v37 }
 0x588   :  { %6368 = vrot.lane.b32.xlu0 %v6367_v55, %s6571_s24  ;;  %v3164_v51 = vsel %vm1112_vm11, %v5781_v47, %v5880_v50  ;;  %v3172_v55 = vsel %vm1112_vm11, %v5996_v49, %v6095_v40  ;;  %v6427_v35 = vpack.i.bf16 %v3166_v22, %v3165_v30  ;;  %v6397_v14 = vpack.i.bf16 %v3098_v13, %v3097_v11 }
 0x589   :  { %v9763_v56 = vsel %vm580_vm6, %v10880_v3, %v6140_v54  ;;  %v6076_v60 = vunpack.i.h.bf16 %v9639_v57  ;;  %v6075_v37 = vunpack.i.l.bf16 %v9639_v57  ;;  %v5806_v47 = vunpack.i.h.bf16 %v9238_v39 }
 0x58a   :  { %11135 = vst [vmem:[#allocation24_spill] sm:$0xff] %v9763_v56  ;;  %v9765_v18 = vpop.permute.xlu0 %6193  ;;  %v9771_v1 = vpop.permute.xlu1 %6148  ;;  %v3171_v57 = vsel %vm1112_vm11, %v5995_v15, %v5996_v49  ;;  %v6071_v22 = vunpack.i.h.bf16 %v9586_v17  ;;  %v9810_v30 = vsel %vm580_vm6, %v6140_v54, %v6141_v12  ;;  %v9820_v32 = vsel %vm1112_vm11, %v5886_v29, %v5890_v19 }
 0x58b   :  { %v6195_v59 = vunpack.i.l.bf16 %v9765_v18  ;;  %6418 = vrot.lane.b32.xlu1 %v6417_v61, %s6571_s24  ;;  %11136 = vst [vmem:[#allocation26_spill] sm:$0xff] %v9810_v30  ;;  %v6442_v49 = vpack.i.bf16 %v3172_v55, %v3171_v57  ;;  %v3026_v12 = vsel %vm958_vm9, %v6075_v37, %v6076_v60  ;;  %v10869_v50 = vunpack.i.l.bf16 %v9722_v26 }
 0x58c   :  { %6393 = vrot.lane.b32.xlu0 %v6392_v10, %s6571_s24  ;;  %v5805_v10 = vunpack.i.l.bf16 %v9238_v39  ;;  %v3025_v54 = vsel %vm958_vm9, %v6071_v22, %v6075_v37  ;;  %v6422_v29 = vpack.i.bf16 %v5881_v25, %v5780_v48  ;;  %v10876_v55 = vunpack.i.h.bf16 %v9373_v34 }
 0x58d   :  { %v9784_v31 = vsel %vm580_vm6, %v6195_v59, %v10872_v2  ;;  %v5910_v60 = vunpack.i.l.bf16 %v9373_v34  ;;  %v10877_v37 = vunpack.i.h.bf16 %v9407_v63  ;;  %v6070_v25 = vunpack.i.l.bf16 %v9586_v17 }
 0x58e   :  { %v9791_v20 = vpop.permute.xlu0 %6203  ;;  %v9795_v52 = vpop.permute.xlu1 %6153  ;;  %v10879_v48 = vunpack.i.h.bf16 %v9597_v53  ;;  %v6447_v57 = vpack.i.bf16 %v3026_v12, %v3025_v54  ;;  %v10875_v54 = vunpack.i.h.bf16 %v9699_v7  ;;  %v6186_v3 = vunpack.i.h.bf16 %v9738_v45 }
 0x58f   :  { %v6206_v61 = vunpack.i.h.bf16 %v9791_v20  ;;  %v10868_v59 = vunpack.i.l.bf16 %v9791_v20  ;;  %6428 = vrot.lane.b32.xlu1 %v6427_v35, %s6571_s24  ;;  %v6402_v35 = vpack.i.bf16 %v3164_v51, %v3163_v36  ;;  %v10871_v36 = vunpack.i.h.bf16 %v9795_v52 }
 0x590   :  { %6398 = vrot.lane.b32.xlu0 %v6397_v14, %s6571_s24 }
 0x591   :  { %v9815_v11 = vsel %vm580_vm6, %v10868_v59, %v6206_v61  ;;  %v9835_v59 = vsel %vm1112_vm11, %v5890_v19, %v5891_v24 }
 0x592   :  { %v9822_v13 = vpop.permute.xlu0 %6208  ;;  %v9829_v61 = vpop.permute.xlu1 %6158  ;;  %v6437_v6 = vpack.i.bf16 %v9835_v59, %v9820_v32  ;;  %v3243_v59 = vsel %vm1189_vm12, %v10877_v37, %v5910_v60 }
 0x593   :  { %v6210_v43 = vunpack.i.l.bf16 %v9822_v13  ;;  %v10870_v51 = vunpack.i.l.bf16 %v9829_v61  ;;  %6443 = vrot.lane.b32.xlu1 %v6442_v49, %s6571_s24  ;;  %v6091_v49 = vunpack.i.h.bf16 %v9670_v42 }
 0x594   :  { %6403 = vrot.lane.b32.xlu0 %v6402_v35, %s6571_s24  ;;  %v10873_v35 = vunpack.i.l.bf16 %v9738_v45 }
 0x595   :  { %v9846_v62 = vsel %vm580_vm6, %v6210_v43, %v10869_v50  ;;  %v9856_v24 = vsel %vm580_vm6, %v10871_v36, %v10870_v51  ;;  %v6090_v43 = vunpack.i.l.bf16 %v9670_v42  ;;  %v9869_v50 = vsel %vm1189_vm12, %v5805_v10, %v5806_v47 }
 0x596   :  { %11137 = vst [vmem:[#allocation22_spill] sm:$0xff] %v9846_v62  ;;  %v9858_v19 = vpop.permute.xlu0 %6213  ;;  %v3023_v51 = vsel %vm958_vm9, %v6066_v0, %v6070_v25  ;;  %v10878_v42 = vunpack.i.l.bf16 %v9407_v63  ;;  %v6086_v36 = vunpack.i.h.bf16 %v9653_v8  ;;  %v3244_v0 = vsel %vm1189_vm12, %v5910_v60, %v10876_v55 }
 0x597   :  { %v9863_v14 = vpop.permute.xlu1 %6168  ;;  %v6215_v17 = vunpack.i.l.bf16 %v9858_v19  ;;  %6448 = vrot.lane.b32.xlu1 %v6447_v57, %s6571_s24  ;;  %v3024_v47 = vsel %vm958_vm9, %v6070_v25, %v6071_v22  ;;  %v6452_v57 = vpack.i.bf16 %v10879_v48, %v5995_v15  ;;  %v3102_v33 = vsel %vm1035_vm10, %v6090_v43, %v6091_v49 }
 0x598   :  { %v10874_v12 = vunpack.i.l.bf16 %v9863_v14  ;;  %6423 = vrot.lane.b32.xlu0 %v6422_v29, %s6571_s24  ;;  %v3101_v22 = vsel %vm1035_vm10, %v6086_v36, %v6090_v43  ;;  %v6432_v15 = vpack.i.bf16 %v3024_v47, %v3023_v51  ;;  %v6000_v25 = vunpack.i.l.bf16 %v9551_v21 }
 0x599   :  { %v9882_v2 = vsel %vm580_vm6, %v6215_v17, %v10873_v35  ;;  %v6085_v35 = vunpack.i.l.bf16 %v9653_v8  ;;  %v9921_v60 = vsel %vm1189_vm12, %v10878_v42, %v5805_v10  ;;  %v6001_v49 = vunpack.i.h.bf16 %v9551_v21 }
 0x59a   :  { %11138 = vst [vmem:[#allocation21_spill] sm:$0xff] %v9882_v2  ;;  %v9900_v29 = vsel %vm580_vm6, %v10875_v54, %v10874_v12  ;;  %v9902_v17 = vpop.permute.xlu0 %6223  ;;  %v10882_v12 = vunpack.i.h.bf16 %v9722_v26  ;;  %v6151_v51 = vunpack.i.h.bf16 %v9771_v1  ;;  %v6150_v43 = vunpack.i.l.bf16 %v9771_v1 }
 0x59b   :  { %v9909_v32 = vpop.permute.xlu1 %6178  ;;  %6453 = vrot.lane.b32.xlu1 %v6452_v57, %s6571_s24  ;;  %v3173_v8 = vsel %vm1112_vm11, %v6095_v40, %v6000_v25  ;;  %v6101_v47 = vunpack.i.h.bf16 %v9686_v44  ;;  %v6467_v10 = vpack.i.bf16 %v3102_v33, %v3101_v22  ;;  %v6106_v57 = vunpack.i.h.bf16 %v9601_v27 }
 0x59c   :  { %v10881_v54 = vunpack.i.l.bf16 %v9909_v32  ;;  %6433 = vrot.lane.b32.xlu0 %v6432_v15, %s6571_s24  ;;  %v6105_v1 = vunpack.i.l.bf16 %v9601_v27  ;;  %v11140_v40 = vunpack.i.h.bf16 %v9592_v9  ;;  %v3100_v48 = vsel %vm1035_vm10, %v6085_v35, %v6086_v36 }
 0x59d   :  { %v3174_v22 = vsel %vm1112_vm11, %v6000_v25, %v6001_v49  ;;  %v6482_v27 = vpack.i.bf16 %v3244_v0, %v3243_v59  ;;  %v3654_v33 = vsel %vm580_vm6, %v6150_v43, %v6151_v51  ;;  %v6016_v9 = vunpack.i.h.bf16 %v9575_v38 }
 0x59e   :  { %v9936_v39 = vsel %vm580_vm6, %v10882_v12, %v10881_v54  ;;  %v6229_v21 = vpop.permute.xlu0 %6228  ;;  %v3099_v42 = vsel %vm1035_vm10, %v11140_v40, %v6085_v35  ;;  %v3177_v40 = vsel %vm1112_vm11, %v6101_v47, %v6105_v1  ;;  %v6100_v0 = vunpack.i.l.bf16 %v9686_v44 }
 0x59f   :  { %11139 = vst [vmem:[#allocation28_spill] sm:$0xff] %v9936_v39  ;;  %v9940_v15 = vpop.permute.xlu1 %6188  ;;  %v6231_v55 = vunpack.i.h.bf16 %v6229_v21  ;;  %v6230_v37 = vunpack.i.l.bf16 %v6229_v21  ;;  %6468 = vrot.lane.b32.xlu1 %v6467_v10, %s6571_s24  ;;  %v6462_v49 = vpack.i.bf16 %v3174_v22, %v3173_v8  ;;  %v6120_v51 = vunpack.i.l.bf16 %v9634_v58 }
 0x5a0   :  { %v10884_v54 = vunpack.i.l.bf16 %v9940_v15  ;;  %6438 = vrot.lane.b32.xlu0 %v6437_v6, %s6571_s24  ;;  %v3178_v6 = vsel %vm1112_vm11, %v6105_v1, %v6106_v57  ;;  %v6196_v10 = vunpack.i.h.bf16 %v9765_v18  ;;  %v11141_v44 = vunpack.i.h.bf16 %v9665_v5 }
 0x5a1   :  { %v3658_v21 = vsel %vm580_vm6, %v6230_v37, %v6231_v55  ;;  %v6457_v55 = vpack.i.bf16 %v3100_v48, %v3099_v42  ;;  %v6492_v57 = vpack.i.bf16 %v3178_v6, %v3177_v40  ;;  %v11142_v48 = vunpack.i.l.bf16 %v9665_v5 }
 0x5a2   :  { %v9960_v36 = vsel %vm580_vm6, %v6186_v3, %v10884_v54  ;;  %v9962_v35 = vpop.permute.xlu0 %6233  ;;  %v4739_v25 = vpack.c.bf16 %v3658_v21, %v3654_v33  ;;  %v6146_v54 = vunpack.i.h.bf16 %v9682_v16  ;;  %v6145_v33 = vunpack.i.l.bf16 %v9682_v16 }
 0x5a3   :  { %v6199_v59 = vpop.permute.xlu1 %6198  ;;  %6483 = vrot.lane.b32.xlu1 %v6482_v27, %s6571_s24  ;;  %v9977_v42 = vsel %vm580_vm6, %v11142_v48, %v11141_v44  ;;  %v6225_v18 = vunpack.i.l.bf16 %v9902_v17  ;;  %v11143_v1 = vunpack.i.l.bf16 %v9791_v20  ;;  %v11144_v5 = vunpack.i.h.bf16 %v9597_v53 }
 0x5a4   :  { %v6201_v12 = vunpack.i.h.bf16 %v6199_v59  ;;  %v6200_v30 = vunpack.i.l.bf16 %v6199_v59  ;;  %4740 = vmatprep.subr.bf16.mxu1 %v4739_v25  ;;  %6458 = vrot.lane.b32.xlu0 %v6457_v55, %s6571_s24  ;;  %v3176_v40 = vsel %vm1112_vm11, %v6100_v0, %v6101_v47  ;;  %v6226_v59 = vunpack.i.h.bf16 %v9902_v17 }
 0x5a5   :  { %v3175_v21 = vsel %vm1112_vm11, %v11144_v5, %v6100_v0  ;;  %v3653_v47 = vsel %vm580_vm6, %v6146_v54, %v6150_v43  ;;  %v6497_v17 = vpack.i.bf16 %v9869_v50, %v9921_v60  ;;  %v3651_v0 = vsel %vm580_vm6, %v6225_v18, %v6145_v33  ;;  %v2428_v18 = vld [vmem:[%s10730_s5 + $0x8] sm:$0xff] }
 0x5a6   :  { %v9981_v8 = vsel %vm580_vm6, %v6196_v10, %v6200_v30  ;;  %v9986_v22 = vsel %vm580_vm6, %v6201_v12, %v11143_v1  ;;  %v9988_v16 = vpop.permute.xlu0 %6238  ;;  %v9991_v27 = vsel %vm580_vm6, %v6200_v30, %v6201_v12  ;;  %v6015_v30 = vunpack.i.l.bf16 %v9575_v38  ;;  %3999 = vmatprep.mubr.f32.mxu0 %v2428_v18  ;;  %4177 = vmatprep.mubr.f32.mxu1 %v2428_v18 }
 0x5a7   :  { %v6219_v6 = vpop.permute.xlu1 %6218  ;;  %6493 = vrot.lane.b32.xlu1 %v6492_v57, %s6571_s24  ;;  %v3248_v12 = vsel %vm1189_vm12, %v6016_v9, %v6120_v51  ;;  %v3652_v43 = vsel %vm580_vm6, %v6145_v33, %v6146_v54  ;;  %v11145_v20 = vunpack.i.l.bf16 %v9407_v63  ;;  %v11146_v50 = vunpack.i.h.bf16 %v9219_v46 }
 0x5a8   :  { %v6221_v55 = vunpack.i.h.bf16 %v6219_v6  ;;  %v6220_v10 = vunpack.i.l.bf16 %v6219_v6  ;;  %6463 = vrot.lane.b32.xlu0 %v6462_v49, %s6571_s24  ;;  %v6472_v49 = vpack.i.bf16 %v3176_v40, %v3175_v21  ;;  %v11148_v33 = vunpack.i.l.bf16 %v9219_v46 }
 0x5a9   :  { %v3240_v60 = vsel %vm1189_vm12, %v11146_v50, %v11145_v20  ;;  %v11147_v54 = vmov %v11146_v50  ;;  %v6121_v40 = vunpack.i.h.bf16 %v9634_v58  ;;  %v6130_v50 = vunpack.i.l.bf16 %v9650_v23 }
 0x5aa   :  { %v3655_v57 = vsel %vm580_vm6, %v6226_v59, %v6220_v10  ;;  %v3657_v44 = vsel %vm580_vm6, %v6221_v55, %v6230_v37  ;;  %v10016_v48 = vpop.permute.xlu0 %6243  ;;  %v3656_v38 = vsel %vm580_vm6, %v6220_v10, %v6221_v55  ;;  %v5915_v59 = vunpack.i.l.bf16 %v9422_v28 }
 0x5ab   :  { %v4669_v1 = vpack.c.bf16 %v3655_v57, %v3651_v0  ;;  %v4741_v5 = vpack.c.bf16 %v3657_v44, %v3653_v47  ;;  %v10019_v6 = vpop.permute.xlu1 %6248  ;;  %6498 = vrot.lane.b32.xlu1 %v6497_v17, %s6571_s24  ;;  %v4667_v37 = vpack.c.bf16 %v3656_v38, %v3652_v43  ;;  %v3247_v55 = vsel %vm1189_vm12, %v6015_v30, %v6016_v9 }
 0x5ac   :  { %6473 = vrot.lane.b32.xlu0 %v6472_v49, %s6571_s24  ;;  %v3239_v21 = vsel %vm1189_vm12, %v11148_v33, %v11147_v54  ;;  %v6507_v10 = vpack.i.bf16 %v3248_v12, %v3247_v55  ;;  %v5916_v47 = vunpack.i.h.bf16 %v9422_v28  ;;  %v6126_v9 = vunpack.i.h.bf16 %v9726_v4 }
 0x5ad   :  { %4742 = vmatpush1.bf16.msra.mxu1 %v4741_v5  ;;  %4668 = vmatprep.subr.bf16.mxu0 %v4667_v37  ;;  %v6477_v0 = vpack.i.bf16 %v3240_v60, %v3239_v21  ;;  %v6211_v57 = vunpack.i.h.bf16 %v9822_v13  ;;  %v11149_v5 = vmov %v11148_v33  ;;  %v11150_v43 = vunpack.i.h.bf16 %v9407_v63 }
 0x5ae   :  { %v10040_v20 = vpop.permute.xlu0 %6253  ;;  %4670 = vmatpush1.bf16.msra.mxu0 %v4669_v1  ;;  %v11151_v49 = vunpack.i.h.bf16 %v9373_v34  ;;  %v6131_v1 = vunpack.i.h.bf16 %v9650_v23  ;;  %v6512_v13 = vpack.i.bf16 %v6121_v40, %v6015_v30  ;;  %v11153_v46 = vunpack.i.h.bf16 %v9722_v26 }
 0x5af   :  { %v6264_v17 = vpop.permute.xlu1 %6263  ;;  %6508 = vrot.lane.b32.xlu1 %v6507_v10, %s6571_s24  ;;  %v6487_v12 = vpack.i.bf16 %v11150_v43, %v11149_v5  ;;  %v11154_v63 = vunpack.i.l.bf16 %v9722_v26  ;;  %v3246_v23 = vsel %vm1189_vm12, %v5915_v59, %v5916_v47  ;;  %v3253_v55 = vsel %vm1189_vm12, %v6126_v9, %v6130_v50 }
 0x5b0   :  { %v6266_v44 = vunpack.i.h.bf16 %v6264_v17  ;;  %v6265_v38 = vunpack.i.l.bf16 %v6264_v17  ;;  %v3245_v28 = vsel %vm1189_vm12, %v11151_v49, %v5915_v59  ;;  %6478 = vrot.lane.b32.xlu0 %v6477_v0, %s6571_s24  ;;  %v6125_v26 = vunpack.i.l.bf16 %v9726_v4 }
 0x5b1   :  { %v10066_v34 = vsel %vm580_vm6, %v11154_v63, %v11153_v46  ;;  %v6216_v21 = vunpack.i.h.bf16 %v9858_v19  ;;  %v3254_v59 = vsel %vm1189_vm12, %v6130_v50, %v6131_v1  ;;  %v11158_v4 = vunpack.i.l.bf16 %v9738_v45 }
 0x5b2   :  { %v10057_v60 = vsel %vm580_vm6, %v6211_v57, %v6265_v38  ;;  %v10059_v37 = vpop.permute.xlu0 %6258  ;;  %11155 = vst [vmem:[#allocation30_spill] sm:$0xff] %v10066_v34  ;;  %v10069_v18 = vsel %vm580_vm6, %v6265_v38, %v6266_v44  ;;  %v6527_v47 = vpack.i.bf16 %v3254_v59, %v3253_v55  ;;  %v6502_v49 = vpack.i.bf16 %v3246_v23, %v3245_v28 }
 0x5b3   :  { %11152 = vst [vmem:[#allocation25_spill] sm:$0xff] %v10057_v60  ;;  %11156 = vst [vmem:[#allocation37_spill] sm:$0xff] %v10069_v18  ;;  %v10075_v54 = vpop.permute.xlu1 %6273  ;;  %6513 = vrot.lane.b32.xlu1 %v6512_v13, %s6571_s24  ;;  %v10096_v19 = vsel %vm580_vm6, %v11158_v4, %v6186_v3  ;;  %v3252_v45 = vsel %vm1189_vm12, %v6125_v26, %v6126_v9  ;;  %v3251_v3 = vsel %vm1189_vm12, %v6121_v40, %v6125_v26 }
 0x5b4   :  { %v10886_v10 = vunpack.i.h.bf16 %v10075_v54  ;;  %v6275_v17 = vunpack.i.l.bf16 %v10075_v54  ;;  %6488 = vrot.lane.b32.xlu0 %v6487_v12, %s6571_s24  ;;  %11159 = vst [vmem:[#allocation3_spill] sm:$0xff] %v10096_v19  ;;  %v6021_v13 = vunpack.i.h.bf16 %v9583_v41  ;;  %v6020_v28 = vunpack.i.l.bf16 %v9583_v41 }
 0x5b5   :  { %v6517_v63 = vpack.i.bf16 %v3252_v45, %v3251_v3  ;;  %v6155_v46 = vunpack.i.l.bf16 %v9795_v52  ;;  %v6161_v33 = vunpack.i.h.bf16 %v9829_v61  ;;  %v6245_v19 = vunpack.i.l.bf16 %v10016_v48 }
 0x5b6   :  { %v10087_v0 = vsel %vm580_vm6, %v6216_v21, %v6275_v17  ;;  %v10089_v57 = vpop.permute.xlu0 %6268  ;;  %v10101_v38 = vsel %vm580_vm6, %v6275_v17, %v10886_v10  ;;  %v3249_v40 = vsel %vm1189_vm12, %v6120_v51, %v6020_v28  ;;  %v11166_v62 = vunpack.i.h.bf16 %v9795_v52 }
 0x5b7   :  { %11157 = vst [vmem:[#allocation36_spill] sm:$0xff] %v10087_v0  ;;  %11160 = vst [vmem:[#allocation38_spill] sm:$0xff] %v10101_v38  ;;  %v10105_v43 = vpop.permute.xlu1 %6278  ;;  %v10885_v12 = vunpack.i.l.bf16 %v10089_v57  ;;  %6528 = vrot.lane.b32.xlu1 %v6527_v47, %s6571_s24  ;;  %v6246_v0 = vunpack.i.h.bf16 %v10016_v48  ;;  %v11167_v34 = vunpack.i.l.bf16 %v9829_v61  ;;  %v11168_v18 = vunpack.i.l.bf16 %v9863_v14 }
 0x5b8   :  { %6503 = vrot.lane.b32.xlu0 %v6502_v49, %s6571_s24 }
 0x5b9   :  { %v10116_v50 = vsel %vm580_vm6, %v6266_v44, %v10885_v12  ;;  %v3250_v44 = vsel %vm1189_vm12, %v6020_v28, %v6021_v13  ;;  %v6236_v28 = vunpack.i.h.bf16 %v9962_v35  ;;  %v6171_v12 = vunpack.i.h.bf16 %v9863_v14 }
 0x5ba   :  { %11161 = vst [vmem:[#allocation31_spill] sm:$0xff] %v10116_v50  ;;  %v6522_v23 = vpack.i.bf16 %v3250_v44, %v3249_v40  ;;  %v10139_v17 = vpop.permute.xlu0 %6283  ;;  %v6241_v40 = vunpack.i.h.bf16 %v9988_v16  ;;  %v6240_v44 = vunpack.i.l.bf16 %v9988_v16  ;;  %v11164_v13 = vunpack.i.h.bf16 %v9699_v7 }
 0x5bb   :  { %v10123_v9 = vpop.permute.xlu1 %6288  ;;  %v3670_v48 = vsel %vm580_vm6, %v11167_v34, %v6161_v33  ;;  %v3674_v14 = vsel %vm580_vm6, %v6245_v19, %v6246_v0  ;;  %v6255_v33 = vunpack.i.l.bf16 %v10040_v20 }
 0x5bc   :  { %6518 = vrot.lane.b32.xlu0 %v6517_v63, %s6571_s24  ;;  %v6235_v63 = vunpack.i.l.bf16 %v9962_v35  ;;  %v6290_v5 = vunpack.i.l.bf16 %v10123_v9  ;;  %v3667_v35 = vsel %vm580_vm6, %v6240_v44, %v6155_v46 }
 0x5be   :  { %v10143_v51 = vpop.permute.xlu0 %6303  ;;  %v3671_v10 = vsel %vm580_vm6, %v6241_v40, %v6235_v63  ;;  %v3672_v16 = vsel %vm580_vm6, %v6235_v63, %v6236_v28  ;;  %v6250_v63 = vunpack.i.l.bf16 %v10019_v6 }
 0x5bf   :  { %v10130_v55 = vpop.permute.xlu1 %6293  ;;  %v4677_v40 = vpack.c.bf16 %v3671_v10, %v3667_v35  ;;  %v6306_v0 = vunpack.i.h.bf16 %v10143_v51 }
 0x5c0   :  { %6523 = vrot.lane.b32.xlu0 %v6522_v23, %s6571_s24  ;;  %v6291_v23 = vunpack.i.h.bf16 %v10123_v9  ;;  %v11165_v9 = vunpack.i.l.bf16 %v9699_v7 }
 0x5c2   :  { %v10147_v47 = vpop.permute.xlu0 %6313  ;;  %v10177_v2 = vsel %vm580_vm6, %v11165_v9, %v11164_v13  ;;  %v3668_v13 = vsel %vm580_vm6, %v6155_v46, %v11166_v62  ;;  %v10199_v62 = vsel %vm580_vm6, %v6236_v28, %v6245_v19  ;;  %v11169_v46 = vunpack.i.h.bf16 %v10019_v6 }
 0x5c3   :  { %v10133_v41 = vpop.permute.xlu1 %6298  ;;  %v4675_v52 = vpack.c.bf16 %v3672_v16, %v3668_v13 }
 0x5c7   :  { %v10135_v26 = vpop.permute.xlu1 %6308 }
 0x5cb   :  { %v10137_v21 = vpop.permute.xlu1 %6318 }
 0x5cf   :  { %v10141_v58 = vpop.permute.xlu1 %6328 }
 0x5d3   :  { %v10145_v59 = vpop.permute.xlu1 %6338 }
 0x5e1   :  { %v10149_v4 = vpop.permute.xlu1 %6343 }
 0x5e2   :  { %v10151_v49 = vpop.permute.xlu0 %6323 }
 0x5e5   :  { %v10153_v45 = vpop.permute.xlu1 %6373 }
 0x5e6   :  { %11162 = vst [vmem:[#allocation27_spill] sm:$0xff] %v10153_v45  ;;  %v10155_v3 = vpop.permute.xlu0 %6333  ;;  %v6296_v45 = vunpack.i.h.bf16 %v10130_v55 }
 0x5e9   :  { %v10164_v1 = vpop.permute.xlu1 %6378 }
 0x5ea   :  { %11163 = vst [vmem:[#allocation34_spill] sm:$0xff] %v10164_v1  ;;  %v6349_v30 = vpop.permute.xlu0 %6348  ;;  %v10194_v1 = vsel %vm580_vm6, %v11168_v18, %v6171_v12  ;;  %v6256_v18 = vunpack.i.h.bf16 %v10040_v20 }
 0x5eb   :  { %v6351_v25 = vunpack.i.h.bf16 %v6349_v30  ;;  %v6350_v53 = vunpack.i.l.bf16 %v6349_v30  ;;  %v3660_v30 = vsel %vm580_vm6, %v6290_v5, %v6291_v23 }
 0x5ed   :  { %v6384_v38 = vpop.permute.xlu1 %6383  ;;  %v3664_v44 = vsel %vm580_vm6, %v6350_v53, %v6351_v25 }
 0x5ee   :  { %v6354_v39 = vpop.permute.xlu0 %6353  ;;  %v4671_v50 = vpack.c.bf16 %v3664_v44, %v3660_v30  ;;  %v6295_v30 = vunpack.i.l.bf16 %v10130_v55  ;;  %v6261_v55 = vunpack.i.h.bf16 %v10059_v37  ;;  %v6385_v19 = vunpack.i.l.bf16 %v6384_v38 }
 0x5ef   :  { %v6356_v9 = vunpack.i.h.bf16 %v6354_v39  ;;  %v6355_v60 = vunpack.i.l.bf16 %v6354_v39 }
 0x5f0   :  { %4672 = vmatprep.subr.bf16.mxu0 %v4671_v50  ;;  %v10209_v50 = vsel %vm580_vm6, %v6250_v63, %v11169_v46  ;;  %v3661_v28 = vsel %vm580_vm6, %v6291_v23, %v6295_v30  ;;  %v3662_v20 = vsel %vm580_vm6, %v6295_v30, %v6296_v45  ;;  %v4749_v30 = vpack.c.bf16 %v10199_v62, %v9856_v24 }
 0x5f1   :  { %v3659_v39 = vsel %vm580_vm6, %v6355_v60, %v6290_v5  ;;  %v3663_v61 = vsel %vm580_vm6, %v6356_v9, %v6350_v53  ;;  %v6389_v34 = vpop.permute.xlu1 %6388  ;;  %v6305_v60 = vunpack.i.l.bf16 %v10143_v51  ;;  %v11170_v24 = vunpack.i.l.bf16 %v9699_v7 }
 0x5f2   :  { %v4673_v10 = vpack.c.bf16 %v3663_v61, %v3659_v39  ;;  %v6359_v12 = vpop.permute.xlu0 %6358  ;;  %v6391_v35 = vunpack.i.h.bf16 %v6389_v34  ;;  %v6390_v16 = vunpack.i.l.bf16 %v6389_v34  ;;  %v6301_v39 = vunpack.i.h.bf16 %v10133_v41 }
 0x5f3   :  { %v6361_v5 = vunpack.i.h.bf16 %v6359_v12  ;;  %v6360_v53 = vunpack.i.l.bf16 %v6359_v12  ;;  %v6300_v61 = vunpack.i.l.bf16 %v10133_v41  ;;  %v6315_v7 = vunpack.i.l.bf16 %v10147_v47 }
 0x5f4   :  { %4674 = vmatpush1.bf16.msra.mxu0 %v4673_v10  ;;  %v6386_v10 = vunpack.i.h.bf16 %v6384_v38  ;;  %v3682_v38 = vsel %vm580_vm6, %v6390_v16, %v6391_v35 }
 0x5f5   :  { %v3665_v44 = vsel %vm580_vm6, %v6351_v25, %v6360_v53  ;;  %v6409_v13 = vpop.permute.xlu1 %6408  ;;  %4676 = vmatprep.subr.bf16.mxu0 %v4675_v52  ;;  %v3666_v9 = vsel %vm580_vm6, %v6360_v53, %v6361_v5  ;;  %v4747_v25 = vpack.c.bf16 %v3674_v14, %v3670_v48  ;;  %v4683_v52 = vpack.c.bf16 %v10209_v50, %v10177_v2 }
 0x5f6   :  { %v4745_v12 = vpack.c.bf16 %v3665_v44, %v3661_v28  ;;  %v6364_v23 = vpop.permute.xlu0 %6363  ;;  %v4743_v46 = vpack.c.bf16 %v3666_v9, %v3662_v20  ;;  %v3675_v34 = vsel %vm580_vm6, %v6385_v19, %v6300_v61  ;;  %v3687_v53 = vsel %vm580_vm6, %v6256_v18, %v6250_v63 }
 0x5f7   :  { %v6366_v56 = vunpack.i.h.bf16 %v6364_v23  ;;  %v6365_v45 = vunpack.i.l.bf16 %v6364_v23  ;;  %v3676_v2 = vsel %vm580_vm6, %v6300_v61, %v6301_v39  ;;  %v3678_v28 = vsel %vm580_vm6, %v6305_v60, %v6306_v0 }
 0x5f8   :  { %4678 = vmatpush1.bf16.msra.mxu0 %v4677_v40  ;;  %4744 = vmatprep.subr.bf16.mxu1 %v4743_v46  ;;  %v3683_v40 = vsel %vm580_vm6, %v6255_v33, %v11170_v24  ;;  %v11171_v19 = vunpack.i.l.bf16 %v10059_v37  ;;  %v6316_v63 = vunpack.i.h.bf16 %v10147_v47  ;;  %v4751_v33 = vpack.c.bf16 %v3682_v38, %v3678_v28 }
 0x5f9   :  { %v3679_v41 = vsel %vm580_vm6, %v6386_v10, %v6365_v45  ;;  %v6414_v5 = vpop.permute.xlu1 %6413  ;;  %4746 = vmatpush1.bf16.msra.mxu1 %v4745_v12  ;;  %v3680_v51 = vsel %vm580_vm6, %v6365_v45, %v6366_v56  ;;  %v3681_v18 = vsel %vm580_vm6, %v6366_v56, %v6390_v16  ;;  %v6410_v35 = vunpack.i.l.bf16 %v6409_v13 }
 0x5fa   :  { %v4681_v48 = vpack.c.bf16 %v3679_v41, %v3675_v34  ;;  %v10233_v62 = vpop.permute.xlu0 %6368  ;;  %4748 = vmatprep.subr.bf16.mxu1 %v4747_v25  ;;  %v4679_v50 = vpack.c.bf16 %v3680_v51, %v3676_v2  ;;  %v3690_v20 = vsel %vm580_vm6, %v11171_v19, %v6261_v55  ;;  %v6416_v44 = vunpack.i.h.bf16 %v6414_v5 }
 0x5fb   :  { %v6370_v14 = vunpack.i.l.bf16 %v10233_v62  ;;  %v6415_v9 = vunpack.i.l.bf16 %v6414_v5  ;;  %v11172_v61 = vunpack.i.h.bf16 %v10075_v54  ;;  %v3677_v55 = vsel %vm580_vm6, %v6301_v39, %v6305_v60 }
 0x5fc   :  { %4680 = vmatprep.subr.bf16.mxu0 %v4679_v50  ;;  %v6311_v47 = vunpack.i.h.bf16 %v10135_v26  ;;  %v6310_v56 = vunpack.i.l.bf16 %v10135_v26  ;;  %v6411_v54 = vunpack.i.h.bf16 %v6409_v13  ;;  %v4753_v46 = vpack.c.bf16 %v3681_v18, %v3677_v55 }
 0x5fd   :  { %v10249_v0 = vsel %vm580_vm6, %v11172_v61, %v6370_v14  ;;  %v10251_v12 = vpop.permute.xlu1 %6418  ;;  %4750 = vmatpush1.bf16.msra.mxu1 %v4749_v30  ;;  %4682 = vmatpush1.bf16.msra.mxu0 %v4681_v48  ;;  %v4685_v25 = vpack.c.bf16 %v3687_v53, %v3683_v40  ;;  %v11173_v30 = vmov %v11171_v19  ;;  %v11174_v60 = vunpack.i.h.bf16 %v10019_v6 }
 0x5fe   :  { %v4781_v16 = vpack.c.bf16 %v10249_v0, %v9960_v36  ;;  %v6394_v23 = vpop.permute.xlu0 %6393  ;;  %4752 = vmatprep.subr.bf16.mxu1 %v4751_v33  ;;  %4684 = vmatprep.subr.bf16.mxu0 %v4683_v52  ;;  %v4755_v26 = vpack.c.bf16 %v3690_v20, %v10194_v1  ;;  %v3691_v34 = vsel %vm580_vm6, %v6410_v35, %v6310_v56  ;;  %v6336_v51 = vunpack.i.h.bf16 %v10155_v3 }
 0x5ff   :  { %v6396_v10 = vunpack.i.h.bf16 %v6394_v23  ;;  %v6395_v45 = vunpack.i.l.bf16 %v6394_v23  ;;  %v3689_v39 = vsel %vm580_vm6, %v11174_v60, %v11173_v30  ;;  %v3698_v52 = vsel %vm580_vm6, %v6415_v9, %v6416_v44 }
 0x600   :  { %v6335_v37 = vunpack.i.l.bf16 %v10155_v3  ;;  %v3692_v1 = vsel %vm580_vm6, %v6310_v56, %v6311_v47  ;;  %v4757_v53 = vpack.c.bf16 %v3689_v39, %v9900_v29  ;;  %v3694_v40 = vsel %vm580_vm6, %v6315_v7, %v6316_v63 }
 0x601   :  { %v3695_v41 = vsel %vm580_vm6, %v6411_v54, %v6395_v45  ;;  %v10266_v5 = vpop.permute.xlu1 %6428  ;;  %4754 = vmatpush1.bf16.msra.mxu1 %v4753_v46  ;;  %v3696_v13 = vsel %vm580_vm6, %v6395_v45, %v6396_v10  ;;  %4686 = vmatpush1.bf16.msra.mxu0 %v4685_v25  ;;  %v6281_v48 = vunpack.i.h.bf16 %v10105_v43  ;;  %v6280_v2 = vunpack.i.l.bf16 %v10105_v43 }
 0x602   :  { %v4689_v6 = vpack.c.bf16 %v3695_v41, %v3691_v34  ;;  %v10272_v38 = vpop.permute.xlu0 %6398  ;;  %4756 = vmatprep.subr.bf16.mxu1 %v4755_v26  ;;  %v4687_v24 = vpack.c.bf16 %v3696_v13, %v3692_v1  ;;  %v3697_v50 = vsel %vm580_vm6, %v6396_v10, %v6415_v9  ;;  %v4759_v28 = vpack.c.bf16 %v3698_v52, %v3694_v40 }
 0x603   :  { %v6181_v3 = vunpack.i.h.bf16 %v9909_v32  ;;  %v6341_v19 = vunpack.i.h.bf16 %v10145_v59  ;;  %v6340_v20 = vunpack.i.l.bf16 %v10145_v59  ;;  %v6271_v29 = vunpack.i.h.bf16 %v10089_v57 }
 0x604   :  { %4688 = vmatprep.subr.bf16.mxu0 %v4687_v24  ;;  %v6285_v63 = vunpack.i.l.bf16 %v10139_v17  ;;  %v3693_v33 = vsel %vm580_vm6, %v6311_v47, %v6315_v7  ;;  %v3712_v35 = vsel %vm580_vm6, %v6335_v37, %v6336_v51  ;;  %v6286_v44 = vunpack.i.h.bf16 %v10139_v17 }
 0x605   :  { %v10283_v18 = vpop.permute.xlu1 %6443  ;;  %4758 = vmatpush1.bf16.msra.mxu1 %v4757_v53  ;;  %4690 = vmatpush1.bf16.msra.mxu0 %v4689_v6  ;;  %v6331_v59 = vunpack.i.h.bf16 %v10141_v58  ;;  %v6330_v9 = vunpack.i.l.bf16 %v10141_v58  ;;  %v4761_v61 = vpack.c.bf16 %v3697_v50, %v3693_v33  ;;  %v11175_v55 = vpack.c.bf16 %v9991_v27, %v9977_v42  ;;  %v11177_v27 = vld [vmem:[#allocation26_spill] sm:$0xff]  ;;  %v11183_v53 = vld [vmem:[#allocation27_spill] sm:$0xff] }
 0x606   :  { %v10288_v43 = vpop.permute.xlu0 %6403  ;;  %4760 = vmatprep.subr.bf16.mxu1 %v4759_v28  ;;  %v3708_v56 = vsel %vm580_vm6, %v6280_v2, %v6281_v48  ;;  %v3714_v54 = vsel %vm580_vm6, %v6340_v20, %v6341_v19  ;;  %v6191_v17 = vunpack.i.h.bf16 %v9940_v15  ;;  %v3709_v46 = vsel %vm580_vm6, %v6281_v48, %v6285_v63 }
 0x607   :  { %4692 = vmatprep.subr.bf16.mxu0 %v11175_v55  ;;  %v3711_v7 = vsel %vm580_vm6, %v6331_v59, %v6335_v37  ;;  %v4695_v23 = vpack.c.bf16 %v3712_v35, %v3708_v56  ;;  %v11176_v58 = vpack.c.bf16 %v9981_v8, %v9784_v31  ;;  %v11178_v10 = vpack.c.bf16 %v9815_v11, %v11177_v27 }
 0x608   :  { %v11179_v45 = vunpack.i.l.bf16 %v9909_v32  ;;  %v11180_v30 = vunpack.i.l.bf16 %v10089_v57  ;;  %v6321_v39 = vunpack.i.h.bf16 %v10137_v21  ;;  %v3707_v26 = vsel %vm580_vm6, %v6330_v9, %v6280_v2  ;;  %v11184_v2 = vld [vmem:[#allocation34_spill] sm:$0xff] }
 0x609   :  { %v10299_v47 = vpop.permute.xlu1 %6448  ;;  %4762 = vmatpush1.bf16.msra.mxu1 %v4761_v61  ;;  %4694 = vmatpush1.bf16.msra.mxu0 %v11176_v58  ;;  %v3713_v31 = vsel %vm580_vm6, %v6336_v51, %v6340_v20  ;;  %v3710_v8 = vsel %vm580_vm6, %v6285_v63, %v6286_v44  ;;  %v6320_v11 = vunpack.i.l.bf16 %v10137_v21  ;;  %v6345_v34 = vunpack.i.l.bf16 %v10149_v4  ;;  %v11181_v51 = vld [vmem:[#allocation24_spill] sm:$0xff]  ;;  %v11185_v20 = vld [vmem:[#allocation37_spill] sm:$0xff] }
 0x60a   :  { %v10307_v42 = vpop.permute.xlu0 %6423  ;;  %4764 = vmatprep.subr.bf16.mxu1 %v11178_v10  ;;  %v3718_v25 = vsel %vm580_vm6, %v11179_v45, %v6181_v3  ;;  %v3722_v60 = vsel %vm580_vm6, %v11180_v30, %v6271_v29  ;;  %4696 = vmatprep.subr.bf16.mxu0 %v4695_v23  ;;  %v4697_v32 = vpack.c.bf16 %v3711_v7, %v3707_v26  ;;  %v6346_v13 = vunpack.i.h.bf16 %v10149_v4  ;;  %v11186_v29 = vld [vmem:[#allocation30_spill] sm:$0xff]  ;;  %v11189_v23 = vld [vmem:[#allocation25_spill] sm:$0xff] }
 0x60b   :  { %v4767_v41 = vpack.c.bf16 %v3714_v54, %v3710_v8  ;;  %v6325_v57 = vunpack.i.l.bf16 %v10151_v49  ;;  %v6451_v52 = vunpack.i.h.bf16 %v10299_v47  ;;  %v6450_v37 = vunpack.i.l.bf16 %v10299_v47  ;;  %v11190_v54 = vld [vmem:[#allocation22_spill] sm:$0xff] }
 0x60c   :  { %v11182_v1 = vpack.c.bf16 %v9986_v22, %v11181_v51  ;;  %v6326_v21 = vunpack.i.h.bf16 %v10151_v49  ;;  %v6376_v24 = vunpack.i.h.bf16 %v11183_v53  ;;  %v6375_v40 = vunpack.i.l.bf16 %v11183_v53 }
 0x60d   :  { %v10328_v6 = vpop.permute.xlu1 %6453  ;;  %v4769_v48 = vpack.c.bf16 %v3713_v31, %v3709_v46  ;;  %4698 = vmatpush1.bf16.msra.mxu0 %v4697_v32  ;;  %v6380_v50 = vunpack.i.l.bf16 %v11184_v2  ;;  %v6371_v28 = vunpack.i.h.bf16 %v10233_v62  ;;  %v11187_v22 = vpack.c.bf16 %v11185_v20, %v11186_v29  ;;  %v11193_v62 = vld [vmem:[#allocation28_spill] sm:$0xff] }
 0x60e   :  { %4766 = vmatpush1.bf16.msra.mxu1 %v11182_v1  ;;  %v6434_v4 = vpop.permute.xlu0 %6433  ;;  %v3723_v49 = vsel %vm580_vm6, %v6345_v34, %v6320_v11  ;;  %v4771_v63 = vpack.c.bf16 %v3722_v60, %v3718_v25  ;;  %v3724_v33 = vsel %vm580_vm6, %v6320_v11, %v6321_v39  ;;  %v11188_v35 = vunpack.i.l.bf16 %v9940_v15 }
 0x60f   :  { %4768 = vmatprep.subr.bf16.mxu1 %v4767_v41  ;;  %v6436_v3 = vunpack.i.h.bf16 %v6434_v4  ;;  %v6435_v19 = vunpack.i.l.bf16 %v6434_v4  ;;  %4700 = vmatprep.subr.bf16.mxu0 %v11187_v22  ;;  %v3725_v59 = vsel %vm580_vm6, %v6321_v39, %v6325_v57  ;;  %v3730_v56 = vsel %vm580_vm6, %v6450_v37, %v6451_v52  ;;  %v11192_v41 = vld [vmem:[#allocation31_spill] sm:$0xff]  ;;  %v11195_v4 = vld [vmem:[#allocation38_spill] sm:$0xff] }
 0x610   :  { %v3734_v44 = vsel %vm580_vm6, %v11188_v35, %v6191_v17  ;;  %v6381_v7 = vunpack.i.h.bf16 %v11184_v2  ;;  %v11191_v46 = vpack.c.bf16 %v11189_v23, %v11190_v54  ;;  %v3726_v17 = vsel %vm580_vm6, %v6325_v57, %v6326_v21  ;;  %v11196_v2 = vld [vmem:[#allocation3_spill] sm:$0xff]  ;;  %v11198_v35 = vld [vmem:[#allocation36_spill] sm:$0xff] }
 0x611   :  { %v3727_v9 = vsel %vm580_vm6, %v6346_v13, %v6435_v19  ;;  %v6469_v61 = vpop.permute.xlu1 %6468  ;;  %v3728_v55 = vsel %vm580_vm6, %v6435_v19, %v6436_v3  ;;  %v3740_v58 = vsel %vm580_vm6, %v6375_v40, %v6376_v24  ;;  %v10361_v27 = vsel %vm580_vm6, %v6380_v50, %v6375_v40 }
 0x612   :  { %4770 = vmatpush1.bf16.msra.mxu1 %v4769_v48  ;;  %v4705_v47 = vpack.c.bf16 %v3727_v9, %v3723_v49  ;;  %4702 = vmatpush1.bf16.msra.mxu0 %v11191_v46  ;;  %v10354_v15 = vpop.permute.xlu0 %6438  ;;  %v6421_v10 = vunpack.i.h.bf16 %v10251_v12  ;;  %v4703_v45 = vpack.c.bf16 %v3728_v55, %v3724_v33  ;;  %v3738_v25 = vsel %vm580_vm6, %v6370_v14, %v6371_v28 }
 0x613   :  { %4772 = vmatprep.subr.bf16.mxu1 %v4771_v63  ;;  %v6420_v30 = vunpack.i.l.bf16 %v10251_v12  ;;  %v6431_v60 = vunpack.i.h.bf16 %v10266_v5  ;;  %v3729_v39 = vsel %vm580_vm6, %v6436_v3, %v6450_v37  ;;  %v4775_v26 = vpack.c.bf16 %v3730_v56, %v3726_v17 }
 0x614   :  { %v6406_v31 = vunpack.i.h.bf16 %v10288_v43  ;;  %v6405_v8 = vunpack.i.l.bf16 %v10288_v43  ;;  %v6471_v11 = vunpack.i.h.bf16 %v6469_v61  ;;  %v6470_v34 = vunpack.i.l.bf16 %v6469_v61  ;;  %4704 = vmatprep.subr.bf16.mxu0 %v4703_v45 }
 0x615   :  { %v10372_v32 = vpop.permute.xlu1 %6483  ;;  %v11194_v13 = vpack.c.bf16 %v11192_v41, %v11193_v62  ;;  %v6430_v14 = vunpack.i.l.bf16 %v10266_v5  ;;  %v6401_v57 = vunpack.i.h.bf16 %v10272_v38  ;;  %v6400_v52 = vunpack.i.l.bf16 %v10272_v38 }
 0x616   :  { %v6426_v37 = vunpack.i.h.bf16 %v10307_v42  ;;  %4706 = vmatpush1.bf16.msra.mxu0 %v4705_v47  ;;  %v6459_v51 = vpop.permute.xlu0 %6458  ;;  %v6425_v1 = vunpack.i.l.bf16 %v10307_v42  ;;  %v4777_v21 = vpack.c.bf16 %v3729_v39, %v3725_v59  ;;  %v11197_v50 = vpack.c.bf16 %v11195_v4, %v11196_v2  ;;  %v2427_v2 = vld [vmem:[%s10730_s5] sm:$0xff] }
 0x617   :  { %4774 = vmatpush1.bf16.msra.mxu1 %v11194_v13  ;;  %v6461_v40 = vunpack.i.h.bf16 %v6459_v51  ;;  %v6460_v48 = vunpack.i.l.bf16 %v6459_v51  ;;  %v6441_v28 = vunpack.i.h.bf16 %v10354_v15  ;;  %v6440_v3 = vunpack.i.l.bf16 %v10354_v15 }
 0x618   :  { %4776 = vmatprep.subr.bf16.mxu1 %v4775_v26  ;;  %4708 = vmatprep.subr.bf16.mxu0 %v11197_v50  ;;  %v4779_v19 = vpack.c.bf16 %v3738_v25, %v3734_v44  ;;  %v3752_v38 = vsel %vm580_vm6, %v6420_v30, %v6421_v10  ;;  %v3748_v22 = vsel %vm580_vm6, %v6405_v8, %v6406_v31  ;;  %v6445_v63 = vunpack.i.l.bf16 %v10283_v18  ;;  %v11199_v44 = vld [vmem:[#allocation21_spill] sm:$0xff] }
 0x619   :  { %v3743_v20 = vsel %vm580_vm6, %v6381_v7, %v6460_v48  ;;  %v6494_v29 = vpop.permute.xlu1 %6493  ;;  %v3744_v42 = vsel %vm580_vm6, %v6460_v48, %v6461_v40  ;;  %v3746_v49 = vsel %vm580_vm6, %v6470_v34, %v6471_v11  ;;  %v11200_v59 = vpack.c.bf16 %v11198_v35, %v11199_v44  ;;  %v2430_v35 = vld [vmem:[%s10730_s5 + $0x18] sm:$0xff] }
 0x61a   :  { %v4713_v33 = vpack.c.bf16 %v3743_v20, %v10361_v27  ;;  %v6464_v9 = vpop.permute.xlu0 %6463  ;;  %v3742_v61 = vsel %vm580_vm6, %v6400_v52, %v6401_v57  ;;  %v3750_v55 = vsel %vm580_vm6, %v6430_v14, %v6431_v60  ;;  %v3751_v56 = vsel %vm580_vm6, %v6426_v37, %v6420_v30  ;;  %v2431_v20 = vld [vmem:[%s10730_s5 + $0x20] sm:$0xff] }
 0x61b   :  { %4778 = vmatpush1.bf16.msra.mxu1 %v4777_v21  ;;  %4710 = vmatpush1.bf16.msra.mxu0 %v11200_v59  ;;  %v3747_v7 = vsel %vm580_vm6, %v6425_v1, %v6405_v8  ;;  %v6455_v47 = vunpack.i.l.bf16 %v10328_v6  ;;  %v4711_v23 = vpack.c.bf16 %v3744_v42, %v3740_v58  ;;  %v3745_v54 = vsel %vm580_vm6, %v6461_v40, %v6470_v34 }
 0x61c   :  { %4780 = vmatprep.subr.bf16.mxu1 %v4779_v19  ;;  %v4715_v46 = vpack.c.bf16 %v3752_v38, %v3748_v22  ;;  %v4783_v15 = vpack.c.bf16 %v3746_v49, %v3742_v61  ;;  %v3754_v17 = vsel %vm580_vm6, %v6440_v3, %v6441_v28  ;;  %v6496_v27 = vunpack.i.h.bf16 %v6494_v29 }
 0x61d   :  { %v6495_v45 = vunpack.i.l.bf16 %v6494_v29  ;;  %v6466_v25 = vunpack.i.h.bf16 %v6464_v9  ;;  %v6465_v39 = vunpack.i.l.bf16 %v6464_v9  ;;  %4712 = vmatprep.subr.bf16.mxu0 %v4711_v23  ;;  %v10410_v26 = vpop.permute.xlu1 %6498  ;;  %v3741_v58 = vsel %vm580_vm6, %v6376_v24, %v6400_v52  ;;  %v2434_v9 = vld [vmem:[%s10730_s5 + $0x38] sm:$0xff] }
 0x61e   :  { %v6446_v30 = vunpack.i.h.bf16 %v10283_v18  ;;  %v4717_v60 = vpack.c.bf16 %v3751_v56, %v3747_v7  ;;  %v6456_v8 = vunpack.i.h.bf16 %v10328_v6  ;;  %v6474_v11 = vpop.permute.xlu0 %6473  ;;  %v3755_v34 = vsel %vm580_vm6, %v6455_v47, %v6445_v63 }
 0x61f   :  { %4782 = vmatpush1.bf16.msra.mxu1 %v4781_v16  ;;  %4714 = vmatpush1.bf16.msra.mxu0 %v4713_v33  ;;  %v4785_v41 = vpack.c.bf16 %v3745_v54, %v3741_v58  ;;  %v6476_v62 = vunpack.i.h.bf16 %v6474_v11  ;;  %v6475_v13 = vunpack.i.l.bf16 %v6474_v11  ;;  %v3753_v36 = vsel %vm580_vm6, %v6421_v10, %v6440_v3  ;;  %v2437_v58 = vld [vmem:[%s10730_s5 + $0x50] sm:$0xff] }
 0x620   :  { %4784 = vmatprep.subr.bf16.mxu1 %v4783_v15  ;;  %4716 = vmatprep.subr.bf16.mxu0 %v4715_v46  ;;  %v6486_v0 = vunpack.i.h.bf16 %v10372_v32  ;;  %v6485_v16 = vunpack.i.l.bf16 %v10372_v32  ;;  %v4787_v18 = vpack.c.bf16 %v3754_v17, %v3750_v55  ;;  %v3758_v57 = vsel %vm580_vm6, %v6465_v39, %v6466_v25 }
 0x621   :  { %v3759_v6 = vsel %vm580_vm6, %v6456_v8, %v6475_v13  ;;  %v10427_v53 = vpop.permute.xlu1 %6508  ;;  %v3760_v24 = vsel %vm580_vm6, %v6475_v13, %v6476_v62  ;;  %v3762_v52 = vsel %vm580_vm6, %v6495_v45, %v6496_v27  ;;  %v3749_v12 = vsel %vm580_vm6, %v6406_v31, %v6430_v14  ;;  %v2433_v27 = vld [vmem:[%s10730_s5 + $0x30] sm:$0xff] }
 0x622   :  { %v4721_v10 = vpack.c.bf16 %v3759_v6, %v3755_v34  ;;  %v6479_v32 = vpop.permute.xlu0 %6478  ;;  %v3756_v37 = vsel %vm580_vm6, %v6445_v63, %v6446_v30  ;;  %v4789_v51 = vpack.c.bf16 %v3753_v36, %v3749_v12  ;;  %v3761_v48 = vsel %vm580_vm6, %v6476_v62, %v6495_v45  ;;  %v2436_v36 = vld [vmem:[%s10730_s5 + $0x48] sm:$0xff] }
 0x623   :  { %4786 = vmatpush1.bf16.msra.mxu1 %v4785_v41  ;;  %4718 = vmatpush1.bf16.msra.mxu0 %v4717_v60  ;;  %v6481_v1 = vunpack.i.h.bf16 %v6479_v32  ;;  %v6480_v21 = vunpack.i.l.bf16 %v6479_v32  ;;  %v4719_v40 = vpack.c.bf16 %v3760_v24, %v3756_v37  ;;  %v4791_v4 = vpack.c.bf16 %v3762_v52, %v3758_v57  ;;  %v2432_v37 = vld [vmem:[%s10730_s5 + $0x28] sm:$0xff] }
 0x624   :  { %4788 = vmatprep.subr.bf16.mxu1 %v4787_v18  ;;  %v3768_v43 = vsel %vm580_vm6, %v6485_v16, %v6486_v0  ;;  %v3757_v31 = vsel %vm580_vm6, %v6446_v30, %v6465_v39  ;;  %v6501_v29 = vunpack.i.h.bf16 %v10410_v26  ;;  %v6500_v42 = vunpack.i.l.bf16 %v10410_v26 }
 0x625   :  { %4720 = vmatprep.subr.bf16.mxu0 %v4719_v40  ;;  %v3764_v5 = vsel %vm580_vm6, %v6480_v21, %v6481_v1  ;;  %v4793_v28 = vpack.c.bf16 %v3761_v48, %v3757_v31  ;;  %v6514_v3 = vpop.permute.xlu1 %6513  ;;  %v6511_v61 = vunpack.i.h.bf16 %v10427_v53  ;;  %v6510_v55 = vunpack.i.l.bf16 %v10427_v53 }
 0x626   :  { %v6489_v14 = vpop.permute.xlu0 %6488  ;;  %v4723_v50 = vpack.c.bf16 %v3768_v43, %v3764_v5  ;;  %v3766_v56 = vsel %vm580_vm6, %v6500_v42, %v6501_v29  ;;  %v3765_v7 = vsel %vm580_vm6, %v6481_v1, %v6500_v42  ;;  %v6515_v47 = vunpack.i.l.bf16 %v6514_v3  ;;  %v2438_v1 = vld [vmem:[%s10730_s5 + $0x58] sm:$0xff] }
 0x627   :  { %4790 = vmatpush1.bf16.msra.mxu1 %v4789_v51  ;;  %4722 = vmatpush1.bf16.msra.mxu0 %v4721_v10  ;;  %v6491_v19 = vunpack.i.h.bf16 %v6489_v14  ;;  %v6490_v38 = vunpack.i.l.bf16 %v6489_v14  ;;  %v6516_v25 = vunpack.i.h.bf16 %v6514_v3  ;;  %v3772_v8 = vsel %vm580_vm6, %v6510_v55, %v6511_v61  ;;  %v2429_v10 = vld [vmem:[%s10730_s5 + $0x10] sm:$0xff]  ;;  %v2435_v51 = vld [vmem:[%s10730_s5 + $0x40] sm:$0xff] }
 0x628   :  { %4792 = vmatprep.subr.bf16.mxu1 %v4791_v4  ;;  %4724 = vmatprep.subr.bf16.mxu0 %v4723_v50  ;;  %v3771_v11 = vsel %vm580_vm6, %v6515_v47, %v6510_v55  ;;  %v11201_v12 = vmov 0.0  }
 0x629   :  { %v3767_v22 = vsel %vm580_vm6, %v6491_v19, %v6485_v16  ;;  %v3763_v49 = vsel %vm580_vm6, %v6490_v38, %v6480_v21  ;;  %v6529_v23 = vpop.permute.xlu1 %6528 }
 0x62a   :  { %4000 = vmatmul.mubr.f32.vlgmr.msra.gmra.mrb[8].mxu0 %v2427_v2  ;;  %v4725_v63 = vpack.c.bf16 %v3767_v22, %v3763_v49  ;;  %v6504_v33 = vpop.permute.xlu0 %6503  ;;  %v6531_v30 = vunpack.i.h.bf16 %v6529_v23  ;;  %v6530_v60 = vunpack.i.l.bf16 %v6529_v23 }
 0x62b   :  { %4794 = vmatpush1.bf16.msra.mxu1 %v4793_v28  ;;  %4005 = vmatprep.mubr.f32.mxu0 %v2431_v20  ;;  %v6506_v44 = vunpack.i.h.bf16 %v6504_v33  ;;  %v6505_v59 = vunpack.i.l.bf16 %v6504_v33 }
 0x62c   :  { %4726 = vmatpush1.bf16.msra.mxu0 %v4725_v63  ;;  %v3778_v6 = vsel %vm580_vm6, %v6530_v60, %v6531_v30 }
 0x62d   :  { %v3769_v54 = vsel %vm580_vm6, %v6486_v0, %v6505_v59  ;;  %v3770_v46 = vsel %vm580_vm6, %v6505_v59, %v6506_v44 }
 0x62e   :  { %4178 = vmatmul.mubr.f32.vlgmr.msra.gmra.mrb[8].mxu1 %v2427_v2  ;;  %4006 = vmatmul.mubr.f32.gmra.mrb[10].mxu0 %v2430_v35  ;;  %v4797_v15 = vpack.c.bf16 %v3769_v54, %v3765_v7  ;;  %v6519_v17 = vpop.permute.xlu0 %6518  ;;  %v4795_v45 = vpack.c.bf16 %v3770_v46, %v3766_v56 }
 0x62f   :  { %4183 = vmatprep.mubr.f32.mxu1 %v2431_v20  ;;  %4011 = vmatprep.mubr.f32.mxu0 %v2434_v9  ;;  %v6521_v39 = vunpack.i.h.bf16 %v6519_v17  ;;  %v6520_v26 = vunpack.i.l.bf16 %v6519_v17 }
 0x630   :  { %4796 = vmatprep.subr.bf16.mxu1 %v4795_v45 }
 0x631   :  { %v3775_v34 = vsel %vm580_vm6, %v6516_v25, %v6520_v26  ;;  %4798 = vmatpush1.bf16.msra.mxu1 %v4797_v15  ;;  %v3776_v41 = vsel %vm580_vm6, %v6520_v26, %v6521_v39  ;;  %v3777_v53 = vsel %vm580_vm6, %v6521_v39, %v6530_v60 }
 0x632   :  { %4184 = vmatmul.mubr.f32.gmra.mrb[10].mxu1 %v2430_v35  ;;  %4012 = vmatmul.mubr.f32.gmra.mrb[12].mxu0 %v2433_v27  ;;  %v4729_v62 = vpack.c.bf16 %v3775_v34, %v3771_v11  ;;  %v6524_v13 = vpop.permute.xlu0 %6523  ;;  %v4727_v0 = vpack.c.bf16 %v3776_v41, %v3772_v8 }
 0x633   :  { %4017 = vmatprep.mubr.f32.mxu0 %v2437_v58  ;;  %4189 = vmatprep.mubr.f32.mxu1 %v2434_v9  ;;  %v6526_v16 = vunpack.i.h.bf16 %v6524_v13  ;;  %v6525_v18 = vunpack.i.l.bf16 %v6524_v13 }
 0x634   :  { %4728 = vmatprep.subr.bf16.mxu0 %v4727_v0 }
 0x635   :  { %v3773_v24 = vsel %vm580_vm6, %v6511_v61, %v6525_v18  ;;  %v3774_v57 = vsel %vm580_vm6, %v6525_v18, %v6526_v16  ;;  %4730 = vmatpush1.bf16.msra.mxu0 %v4729_v62 }
 0x636   :  { %4190 = vmatmul.mubr.f32.gmra.mrb[12].mxu1 %v2433_v27  ;;  %4018 = vmatmul.mubr.f32.gmra.mrb[14].mxu0 %v2436_v36  ;;  %v4801_v52 = vpack.c.bf16 %v3777_v53, %v3773_v24  ;;  %v4799_v32 = vpack.c.bf16 %v3778_v6, %v3774_v57 }
 0x637   :  { %4195 = vmatprep.mubr.f32.mxu1 %v2437_v58  ;;  %4088 = vmatprep.mubr.f32.mxu0 %v11201_v12 }
 0x638   :  { %4800 = vmatprep.subr.bf16.mxu1 %v4799_v32 }
 0x639   :  { %4802 = vmatpush1.bf16.msra.mxu1 %v4801_v52 }
 0x63a   :  { %4196 = vmatmul.mubr.f32.gmra.mrb[14].mxu1 %v2436_v36  ;;  %4507 = vmatmul.mubr.msk.f32.vlgmr.msra.gmra.mrb[8].mxu0 %vm1874_vm13, %v2429_v10 }
 0x63b   :  { %4094 = vmatprep.mubr.f32.mxu0 %v11201_v12  ;;  %4266 = vmatprep.mubr.f32.mxu1 %v11201_v12 }
 0x63e   :  { %4511 = vmatmul.mubr.msk.f32.vlgmr.msra.gmra.mrb[8].mxu1 %vm1874_vm13, %v2429_v10  ;;  %4508 = vmatmul.mubr.msk.f32.gmra.mrb[10].mxu0 %vm1874_vm13, %v2432_v37 }
 0x63f   :  { %4272 = vmatprep.mubr.f32.mxu1 %v11201_v12  ;;  %4100 = vmatprep.mubr.f32.mxu0 %v11201_v12 }
 0x642   :  { %4512 = vmatmul.mubr.msk.f32.gmra.mrb[10].mxu1 %vm1874_vm13, %v2432_v37  ;;  %4509 = vmatmul.mubr.msk.f32.gmra.mrb[12].mxu0 %vm1874_vm13, %v2435_v51 }
 0x643   :  { %4278 = vmatprep.mubr.f32.mxu1 %v11201_v12  ;;  %4106 = vmatprep.mubr.f32.mxu0 %v11201_v12 }
 0x646   :  { %4513 = vmatmul.mubr.msk.f32.gmra.mrb[12].mxu1 %vm1874_vm13, %v2435_v51  ;;  %4510 = vmatmul.mubr.msk.f32.gmra.mrb[14].mxu0 %vm1874_vm13, %v2438_v1 }
 0x647   :  { %4284 = vmatprep.mubr.f32.mxu1 %v11201_v12 }
 0x64a   :  { %4514 = vmatmul.mubr.msk.f32.gmra.mrb[14].mxu1 %vm1874_vm13, %v2438_v1 }
 0x70d   :  { %v10509_v21 = vpop.f32.mrb[8].mxu0 }
 0x70e   :  { %v4315_v40 = vmul.f32 %v10509_v21, %v10509_v21  ;;  %v10513_v48 = vpop.f32.mrb[9].mxu0 }
 0x70f   :  { %v4291_v4 = vadd.f32 %v10513_v48, %v10509_v21  ;;  %v4316_v5 = vmul.f32 %v10513_v48, %v10513_v48 }
 0x711   :  { %v10519_v43 = vpop.f32.mrb[8].mxu1  ;;  %v4331_v31 = vadd.f32 %v4316_v5, %v4315_v40  ;;  %v10521_v14 = vpop.f32.mrb[10].mxu0 }
 0x712   :  { %v4292_v2 = vadd.f32 %v4291_v4, %v10519_v43  ;;  %v4317_v50 = vmul.f32 %v10519_v43, %v10519_v43  ;;  %v10526_v28 = vpop.f32.mrb[9].mxu1  ;;  %v4319_v3 = vmul.f32 %v10521_v14, %v10521_v14  ;;  %v10530_v19 = vpop.f32.mrb[11].mxu0 }
 0x713   :  { %v4318_v38 = vmul.f32 %v10526_v28, %v10526_v28  ;;  %v4296_v29 = vadd.f32 %v10530_v19, %v10521_v14  ;;  %v4320_v42 = vmul.f32 %v10530_v19, %v10530_v19 }
 0x714   :  { %v4332_v20 = vadd.f32 %v4331_v31, %v4317_v50  ;;  %v4293_v22 = vadd.f32 %v4292_v2, %v10526_v28 }
 0x715   :  { %v10539_v49 = vpop.f32.mrb[10].mxu1  ;;  %v4336_v63 = vadd.f32 %v4320_v42, %v4319_v3  ;;  %v10541_v33 = vpop.f32.mrb[12].mxu0 }
 0x716   :  { %v4297_v35 = vadd.f32 %v4296_v29, %v10539_v49  ;;  %v4321_v44 = vmul.f32 %v10539_v49, %v10539_v49  ;;  %v10546_v59 = vpop.f32.mrb[11].mxu1  ;;  %4294 = vadd.xlane.f32.xlu0 %v4293_v22  ;;  %v4333_v9 = vadd.f32 %v4332_v20, %v4318_v38  ;;  %v4323_v61 = vmul.f32 %v10541_v33, %v10541_v33  ;;  %v10552_v56 = vpop.f32.mrb[13].mxu0 }
 0x717   :  { %v4322_v55 = vmul.f32 %v10546_v59, %v10546_v59  ;;  %v4301_v23 = vadd.f32 %v10552_v56, %v10541_v33  ;;  %v4324_v54 = vmul.f32 %v10552_v56, %v10552_v56 }
 0x718   :  { %v4337_v7 = vadd.f32 %v4336_v63, %v4321_v44  ;;  %v4298_v47 = vadd.f32 %v4297_v35, %v10546_v59  ;;  %4334 = vadd.xlane.f32.xlu1 %v4333_v9 }
 0x719   :  { %v10559_v46 = vpop.f32.mrb[12].mxu1  ;;  %v4341_v15 = vadd.f32 %v4324_v54, %v4323_v61  ;;  %v10561_v17 = vpop.f32.mrb[14].mxu0  ;;  %v2439_v54 = vld [vmem:[%s10731_s6] sm:$0xff] }
 0x71a   :  { %v4302_v27 = vadd.f32 %v4301_v23, %v10559_v46  ;;  %v4325_v45 = vmul.f32 %v10559_v46, %v10559_v46  ;;  %v10566_v25 = vpop.f32.mrb[13].mxu1  ;;  %v4338_v39 = vadd.f32 %v4337_v7, %v4322_v55  ;;  %v4327_v26 = vmul.f32 %v10561_v17, %v10561_v17  ;;  %v10570_v58 = vpop.f32.mrb[15].mxu0 }
 0x71b   :  { %v4326_v30 = vmul.f32 %v10566_v25, %v10566_v25  ;;  %v4306_v8 = vadd.f32 %v10570_v58, %v10561_v17  ;;  %v4328_v11 = vmul.f32 %v10570_v58, %v10570_v58 }
 0x71c   :  { %v4342_v60 = vadd.f32 %v4341_v15, %v4325_v45  ;;  %v4303_v34 = vadd.f32 %v4302_v27, %v10566_v25  ;;  %4339 = vadd.xlane.f32.xlu0 %v4338_v39  ;;  %4299 = vadd.xlane.f32.xlu1 %v4298_v47 }
 0x71d   :  { %v10579_v41 = vpop.f32.mrb[14].mxu1  ;;  %v4346_v62 = vadd.f32 %v4328_v11, %v4327_v26  ;;  %v2441_v11 = vld [vmem:[%s10731_s6 + $0x10] sm:$0xff] }
 0x71e   :  { %v4307_v13 = vadd.f32 %v4306_v8, %v10579_v41  ;;  %v4329_v36 = vmul.f32 %v10579_v41, %v10579_v41  ;;  %v10584_v0 = vpop.f32.mrb[15].mxu1  ;;  %v4343_v16 = vadd.f32 %v4342_v60, %v4326_v30  ;;  %v2440_v30 = vld [vmem:[%s10731_s6 + $0x8] sm:$0xff] }
 0x71f   :  { %v4330_v18 = vmul.f32 %v10584_v0, %v10584_v0 }
 0x720   :  { %v4347_v6 = vadd.f32 %v4346_v62, %v4329_v36  ;;  %v4308_v53 = vadd.f32 %v4307_v13, %v10584_v0  ;;  %4304 = vadd.xlane.f32.xlu0 %v4303_v34  ;;  %4344 = vadd.xlane.f32.xlu1 %v4343_v16  ;;  %v2443_v62 = vld [vmem:[%s10732_s7] sm:$0xff] }
 0x722   :  { %v4348_v24 = vadd.f32 %v4347_v6, %v4330_v18  ;;  %v2444_v18 = vld [vmem:[%s10732_s7 + $0x8] sm:$0xff]  ;;  %v2445_v6 = vld [vmem:[%s10732_s7 + $0x10] sm:$0xff] }
 0x724   :  { %4309 = vadd.xlane.f32.xlu0 %v4308_v53 }
 0x728   :  { %4349 = vadd.xlane.f32.xlu0 %v4348_v24 }
 0x7a3   :  { %v4295_v57 = vpop.xlane.xlu0 %4294 }
 0x7a4   :  { %v4311_v52 = vmul.f32 0.001953125, %v4295_v57  ;;  %v2442_v57 = vld [vmem:[%s10731_s6 + $0x18] sm:$0xff] }
 0x7a5   :  { %v4335_v12 = vpop.xlane.xlu1 %4334 }
 0x7a6   :  { %v4355_v10 = vmul.f32 %v4311_v52, %v4311_v52  ;;  %v4351_v32 = vmul.f32 0.001953125, %v4335_v12 }
 0x7a8   :  { %v4359_v37 = vsub.f32 %v4351_v32, %v4355_v10 }
 0x7a9   :  { %v4340_v51 = vpop.xlane.xlu0 %4339  ;;  %v4300_v40 = vpop.xlane.xlu1 %4299 }
 0x7aa   :  { %v4363_v1 = vmax.f32 %v4359_v37, 0.0  ;;  %v4312_v4 = vmul.f32 0.001953125, %v4300_v40  ;;  %v4352_v31 = vmul.f32 0.001953125, %v4340_v51  ;;  %v2446_v51 = vld [vmem:[%s10732_s7 + $0x18] sm:$0xff] }
 0x7ac   :  { %v4367_v5 = vadd.f32 1e-05, %v4363_v1  ;;  %v4356_v2 = vmul.f32 %v4312_v4, %v4312_v4 }
 0x7ad   :  { %v4305_v50 = vpop.xlane.xlu0 %4304  ;;  %v4345_v3 = vpop.xlane.xlu1 %4344 }
 0x7ae   :  { %6540 = vrsqrt.f32 %v4367_v5  ;;  %v4313_v38 = vmul.f32 0.001953125, %v4305_v50  ;;  %v4360_v20 = vsub.f32 %v4352_v31, %v4356_v2  ;;  %v4353_v29 = vmul.f32 0.001953125, %v4345_v3 }
 0x7b0   :  { %v4357_v42 = vmul.f32 %v4313_v38, %v4313_v38  ;;  %v4364_v22 = vmax.f32 %v4360_v20, 0.0 }
 0x7b1   :  { %v4310_v63 = vpop.xlane.xlu0 %4309 }
 0x7b2   :  { %v4361_v35 = vsub.f32 %v4353_v29, %v4357_v42  ;;  %v4314_v44 = vmul.f32 0.001953125, %v4310_v63  ;;  %v4368_v9 = vadd.f32 1e-05, %v4364_v22 }
 0x7b4   :  { %v4365_v61 = vmax.f32 %v4361_v35, 0.0  ;;  %6542 = vrsqrt.f32 %v4368_v9  ;;  %v4358_v47 = vmul.f32 %v4314_v44, %v4314_v44 }
 0x7b5   :  { %v4350_v55 = vpop.xlane.xlu0 %4349 }
 0x7b6   :  { %v4369_v7 = vadd.f32 1e-05, %v4365_v61  ;;  %v4354_v23 = vmul.f32 0.001953125, %v4350_v55 }
 0x7b8   :  { %v6541_v15 = vpop.eup %6540  ;;  %6544 = vrsqrt.f32 %v4369_v7  ;;  %v4362_v27 = vsub.f32 %v4354_v23, %v4358_v47 }
 0x7b9   :  { %v4375_v45 = vmul.f32 %v6541_v15, %v2439_v54 }
 0x7ba   :  { %v4366_v39 = vmax.f32 %v4362_v27, 0.0 }
 0x7bb   :  { %4389 = vperm.xlu1 %5700, %v4375_v45   ;;  %v4379_v34 = vmul.f32 %v4375_v45, %v4311_v52 }
 0x7bc   :  { %v4370_v26 = vadd.f32 1e-05, %v4366_v39 }
 0x7bd   :  { %v4383_v53 = vsub.f32 %v2443_v62, %v4379_v34  ;;  %v6555_v62 = vld [vmem:[%s10726_s1 + $0x38] sm:$0xff] }
 0x7be   :  { %6546 = vrsqrt.f32 %v4370_v26  ;;  %v6543_v60 = vpop.eup %6542  ;;  %v6552_v26 = vld [vmem:[%s10726_s1 + $0x20] sm:$0xff] }
 0x7bf   :  { %v4376_v8 = vmul.f32 %v6543_v60, %v2440_v30  ;;  %v6553_v60 = vld [vmem:[%s10726_s1 + $0x28] sm:$0xff] }
 0x7c1   :  { %4394 = vperm.xlu0 %5701, %v4376_v8   ;;  %v4380_v36 = vmul.f32 %v4376_v8, %v4312_v4 }
 0x7c2   :  { %v6545_v13 = vpop.eup %6544 }
 0x7c3   :  { %v4377_v16 = vmul.f32 %v6545_v13, %v2441_v11  ;;  %v4384_v52 = vsub.f32 %v2444_v18, %v4380_v36  ;;  %v6554_v11 = vld [vmem:[%s10726_s1 + $0x30] sm:$0xff]  ;;  %v6556_v36 = vld [vmem:[%s10726_s1 + $0x40] sm:$0xff]  ;;  %v6557_v18 = vld [vmem:[%s10726_s1 + $0x48] sm:$0xff] }
 0x7c5   :  { %v4381_v24 = vmul.f32 %v4377_v16, %v4313_v38  ;;  %4399 = vperm.xlu1 %5700, %v4377_v16   ;;  %4425 = vperm.xlu0 %5701, %v4383_v53   ;;  %v6558_v53 = vld [vmem:[%s10726_s1 + $0x50] sm:$0xff] }
 0x7c7   :  { %v4385_v12 = vsub.f32 %v2445_v6, %v4381_v24 }
 0x7c8   :  { %v6547_v10 = vpop.eup %6546 }
 0x7c9   :  { %4430 = vperm.xlu1 %5700, %v4384_v52   ;;  %v4378_v32 = vmul.f32 %v6547_v10, %v2442_v57  ;;  %4435 = vperm.xlu0 %5701, %v4385_v12   ;;  %v6559_v57 = vld [vmem:[%s10726_s1 + $0x58] sm:$0xff] }
 0x7cb   :  { %v4382_v37 = vmul.f32 %v4378_v32, %v4314_v44 }
 0x7cd   :  { %4404 = vperm.xlu1 %5700, %v4378_v32   ;;  %v4386_v1 = vsub.f32 %v2446_v51, %v4382_v37 }
 0x7d1   :  { %4440 = vperm.xlu1 %5700, %v4386_v1  }
 0x83a   :  { %v4390_v40 = vpop.permute.xlu1 %4389 }
 0x83b   :  { %v4407_v5 = vmul.f32 %v4390_v40, %v10509_v21  ;;  %v4408_v31 = vmul.f32 %v4390_v40, %v10513_v48  ;;  %v4409_v2 = vmul.f32 %v4390_v40, %v10519_v43  ;;  %v4410_v50 = vmul.f32 %v4390_v40, %v10526_v28 }
 0x840   :  { %v4395_v4 = vpop.permute.xlu0 %4394 }
 0x841   :  { %v4411_v38 = vmul.f32 %v4395_v4, %v10521_v14  ;;  %v4412_v20 = vmul.f32 %v4395_v4, %v10530_v19  ;;  %v4413_v29 = vmul.f32 %v4395_v4, %v10539_v49  ;;  %v4414_v42 = vmul.f32 %v4395_v4, %v10546_v59  ;;  %v6548_v14 = vld [vmem:[%s10726_s1] sm:$0xff]  ;;  %v6549_v49 = vld [vmem:[%s10726_s1 + $0x8] sm:$0xff] }
 0x844   :  { %v4400_v3 = vpop.permute.xlu1 %4399  ;;  %v4426_v22 = vpop.permute.xlu0 %4425 }
 0x845   :  { %v4443_v63 = vadd.f32 %v4426_v22, %v4407_v5  ;;  %v4444_v35 = vadd.f32 %v4426_v22, %v4408_v31  ;;  %v4445_v44 = vadd.f32 %v4426_v22, %v4409_v2  ;;  %v4446_v21 = vadd.f32 %v4426_v22, %v4410_v50  ;;  %v6560_v2 = vld [vmem:[%s10726_s1 + $0x60] sm:$0xff] }
 0x846   :  { %v4415_v48 = vmul.f32 %v4400_v3, %v10541_v33  ;;  %v4416_v43 = vmul.f32 %v4400_v3, %v10552_v56  ;;  %v4417_v28 = vmul.f32 %v4400_v3, %v10559_v46  ;;  %v4418_v9 = vmul.f32 %v4400_v3, %v10566_v25  ;;  %v6550_v33 = vld [vmem:[%s10726_s1 + $0x10] sm:$0xff]  ;;  %v6551_v56 = vld [vmem:[%s10726_s1 + $0x18] sm:$0xff] }
 0x847   :  { %v4459_v19 = vadd.f32 %v6548_v14, %v4443_v63  ;;  %v4460_v59 = vadd.f32 %v6549_v49, %v4444_v35  ;;  %v4461_v61 = vadd.f32 %v6550_v33, %v4445_v44  ;;  %v4462_v46 = vadd.f32 %v6551_v56, %v4446_v21 }
 0x848   :  { %v4431_v25 = vpop.permute.xlu1 %4430  ;;  %v4436_v54 = vpop.permute.xlu0 %4435 }
 0x849   :  { %v4447_v55 = vadd.f32 %v4431_v25, %v4411_v38  ;;  %v4448_v7 = vadd.f32 %v4431_v25, %v4412_v20  ;;  %v4449_v47 = vadd.f32 %v4431_v25, %v4413_v29  ;;  %v4450_v23 = vadd.f32 %v4431_v25, %v4414_v42  ;;  %4475 = vst [vmem:[%s10733_s8] sm:$0xff] %v4459_v19 }
 0x84a   :  { %4476 = vst [vmem:[%s10733_s8 + $0x8] sm:$0xff] %v4460_v59  ;;  %4477 = vst [vmem:[%s10733_s8 + $0x10] sm:$0xff] %v4461_v61  ;;  %v4451_v15 = vadd.f32 %v4436_v54, %v4415_v48  ;;  %v4452_v27 = vadd.f32 %v4436_v54, %v4416_v43  ;;  %v4453_v45 = vadd.f32 %v4436_v54, %v4417_v28 }
 0x84b   :  { %4478 = vst [vmem:[%s10733_s8 + $0x18] sm:$0xff] %v4462_v46  ;;  %v4454_v39 = vadd.f32 %v4436_v54, %v4418_v9  ;;  %v4463_v30 = vadd.f32 %v6552_v26, %v4447_v55  ;;  %v4464_v8 = vadd.f32 %v6553_v60, %v4448_v7  ;;  %v4465_v34 = vadd.f32 %v6554_v11, %v4449_v47 }
 0x84c   :  { %v4466_v13 = vadd.f32 %v6555_v62, %v4450_v23  ;;  %v4467_v16 = vadd.f32 %v6556_v36, %v4451_v15  ;;  %v4468_v6 = vadd.f32 %v6557_v18, %v4452_v27  ;;  %v4469_v24 = vadd.f32 %v6558_v53, %v4453_v45  ;;  %v4405_v12 = vpop.permute.xlu1 %4404 }
 0x84d   :  { %v4470_v52 = vadd.f32 %v6559_v57, %v4454_v39  ;;  %4479 = vst [vmem:[%s10733_s8 + $0x20] sm:$0xff] %v4463_v30  ;;  %4480 = vst [vmem:[%s10733_s8 + $0x28] sm:$0xff] %v4464_v8  ;;  %v4419_v10 = vmul.f32 %v4405_v12, %v10561_v17  ;;  %v4420_v32 = vmul.f32 %v4405_v12, %v10570_v58  ;;  %v6561_v17 = vld [vmem:[%s10726_s1 + $0x68] sm:$0xff]  ;;  %v6562_v58 = vld [vmem:[%s10726_s1 + $0x70] sm:$0xff] }
 0x84e   :  { %4481 = vst [vmem:[%s10733_s8 + $0x30] sm:$0xff] %v4465_v34  ;;  %4482 = vst [vmem:[%s10733_s8 + $0x38] sm:$0xff] %v4466_v13  ;;  %v4421_v37 = vmul.f32 %v4405_v12, %v10579_v41  ;;  %v4422_v51 = vmul.f32 %v4405_v12, %v10584_v0  ;;  %v6563_v0 = vld [vmem:[%s10726_s1 + $0x78] sm:$0xff] }
 0x84f   :  { %4483 = vst [vmem:[%s10733_s8 + $0x40] sm:$0xff] %v4467_v16  ;;  %4484 = vst [vmem:[%s10733_s8 + $0x48] sm:$0xff] %v4468_v6 }
 0x850   :  { %4485 = vst [vmem:[%s10733_s8 + $0x50] sm:$0xff] %v4469_v24  ;;  %4486 = vst [vmem:[%s10733_s8 + $0x58] sm:$0xff] %v4470_v52  ;;  %v4441_v1 = vpop.permute.xlu1 %4440 }
 0x851   :  { %v4455_v40 = vadd.f32 %v4441_v1, %v4419_v10  ;;  %v4456_v4 = vadd.f32 %v4441_v1, %v4420_v32  ;;  %v4457_v5 = vadd.f32 %v4441_v1, %v4421_v37  ;;  %v4458_v31 = vadd.f32 %v4441_v1, %v4422_v51 }
 0x853   :  { %v4471_v50 = vadd.f32 %v6560_v2, %v4455_v40  ;;  %v4472_v3 = vadd.f32 %v6561_v17, %v4456_v4  ;;  %v4473_v41 = vadd.f32 %v6562_v58, %v4457_v5  ;;  %v4474_v38 = vadd.f32 %v6563_v0, %v4458_v31 }
 0x855   :  { %4487 = vst [vmem:[%s10733_s8 + $0x60] sm:$0xff] %v4471_v50  ;;  %4488 = vst [vmem:[%s10733_s8 + $0x68] sm:$0xff] %v4472_v3 }
 0x856   :  { %4489 = vst [vmem:[%s10733_s8 + $0x70] sm:$0xff] %v4473_v41  ;;  %4490 = vst [vmem:[%s10733_s8 + $0x78] sm:$0xff] %v4474_v38 }

</bundles_post_ra>
